<compile_context>
chip_gen: v6e
topology: v6e:2x2x1
jax: 0.10.0
libtpu: 0.0.40
codegen_flags: <defaults>
</compile_context>

<pallas_src>
import functools

import numpy as np
import jax
import jax.numpy as jnp
from jax.experimental import pallas as pl
from jax.experimental.pallas import tpu as pltpu

DW_SIZES = (1, 3, 5, 7)          # dw_size of conv1..conv4 inside CEM
MAX_PAD = max(DW_SIZES) // 2     # single reflect pad applied in the wrapper (3)


def _round_up(x, m):
    return -(-x // m) * m


# ------------------------------------------------------------------
# The single fused kernel (one grid step == one batch element)
# ------------------------------------------------------------------
def _cem_kernel(xpf_ref, wp_ref, wdw_ref, neg_ref, w1_ref, w2_ref,
                o_ref, pool_ref, *, cinit, wrow, oflat, dw_sizes, pad):
    f32 = jnp.float32
    C = o_ref.shape[0]

    # (1) Fused primary 1x1 convs of all 4 Ghost branches on the MXU
    #     (bf16 operands, f32 accumulation).  The result is the reflect-padded
    #     x1 of every branch (reflection pads nest; cropped by slicing below).
    yp = jnp.dot(wp_ref[...], xpf_ref[...], preferred_element_type=f32)
    yp = jnp.maximum(yp, 0.0)                        # (4*cinit, inflat)

    neg = neg_ref[...]                               # (1, oflat) additive -inf mask
    wdw = wdw_ref[...].astype(f32)                   # (cinit, sum(d*d)) packed taps

    s0 = pad * wrow + pad                            # flat offset of unpadded x1
    x1s, x2s = [], []
    toff = 0
    for b, d in enumerate(dw_sizes):
        off = pad - d // 2                           # centering in the pad-3 frame
        yb = yp[b * cinit:(b + 1) * cinit, :]        # this branch's padded x1
        x1 = yb[:, s0:s0 + oflat]

        # (2) True-size depthwise "cheap" conv: only d*d taps per branch; the
        #     (cinit, oflat) accumulator stays vreg-resident at these sizes.
        #     TODO(synk): for large H*W, chunk the lane axis (yp in a VMEM ref,
        #     pl.ds reads) so the accumulator never spills.
        acc = jnp.zeros((cinit, oflat), f32)
        for a in range(d):
            for bb in range(d):
                s = (a + off) * wrow + (bb + off)
                t = toff + a * d + bb
                acc = acc + yb[:, s:s + oflat] * wdw[:, t:t + 1]
        x2 = jnp.maximum(acc, 0.0)
        toff += d * d

        # (3) Masked global max pool of this branch's x1/x2 (junk lanes -inf).
        base = 2 * cinit * b
        pool_ref[base:base + cinit, :] = jnp.max(x1 + neg, axis=1, keepdims=True)
        pool_ref[base + cinit:base + 2 * cinit, :] = jnp.max(x2 + neg, axis=1,
                                                             keepdims=True)
        x1s.append(x1)
        x2s.append(x2)

    # (4) CB channel attention: fc1 -> LeakyReLU(0.01) -> fc2 -> sigmoid.
    pooled = jnp.broadcast_to(pool_ref[...], (C, 128))       # lane-dense N
    h = jnp.dot(w1_ref[...], pooled, preferred_element_type=f32)
    h = jnp.where(h >= 0, h, 0.01 * h)                        # LeakyReLU
    sg = jax.nn.sigmoid(jnp.dot(w2_ref[...], h, preferred_element_type=f32))
    s_col = sg[:, 0:1]                                        # (C, 1) scales

    # (5) Scale and write straight into the interleaved channel slices of the
    #     output block (lane-dense stores: oflat is a multiple of 128).
    for b in range(len(dw_sizes)):
        base = 2 * cinit * b
        o_ref[base:base + cinit, :] = (
            x1s[b] * s_col[base:base + cinit, :]).astype(o_ref.dtype)
        o_ref[base + cinit:base + 2 * cinit, :] = (
            x2s[b] * s_col[base + cinit:base + 2 * cinit, :]).astype(o_ref.dtype)


# ------------------------------------------------------------------
# CEM forward: one pallas_call + minimal layout plumbing in XLA
# ------------------------------------------------------------------
def cem_forward(x, params):
    B, C, H, W = x.shape
    w_prim = params["w_primary"]                     # (4*cinit, C), branch-major
    cg4 = w_prim.shape[0]
    cinit = cg4 // len(DW_SIZES)
    pad = MAX_PAD

    # Flat NCHW layout: channels on sublanes, padded spatial (row stride wrow)
    # on lanes.  Tail-pad the flat output length to a multiple of 128 instead
    # of widening every row.
    wrow = _round_up(W + 2 * pad, 8)
    oflat = _round_up(H * wrow, 128)
    s_max = 2 * pad * wrow + 2 * pad                 # largest static tap shift
    hin = -(-(s_max + oflat) // wrow)                # rows so all slices in bounds
    inflat = hin * wrow

    # Reflection pad commutes with the 1x1 primary conv + ReLU -> pad the input
    # once (by 3); zero-extend to the lane-friendly (hin, wrow) grid; feed bf16.
    hp, wpw = H + 2 * pad, W + 2 * pad
    xp = jnp.pad(x, ((0, 0), (0, 0), (pad, pad), (pad, pad)), mode="reflect")
    xp = jnp.pad(xp, ((0, 0), (0, 0), (0, hin - hp), (0, wrow - wpw)))
    xpf = xp.reshape(B, C, inflat).astype(jnp.bfloat16)

    # Per-branch depthwise weights packed at their TRUE sizes: (cinit, 1+9+25+49).
    wdw = jnp.concatenate(
        [w.reshape(cinit, d * d) for w, d in zip(params["w_dw"], DW_SIZES)], axis=1)
    ntaps = wdw.shape[1]

    # Additive -inf mask selecting the valid (row < H, col < W) lanes for pooling.
    idx = jnp.arange(oflat, dtype=jnp.int32)
    valid = ((idx % wrow) < W) & ((idx // wrow) < H)
    neg = jnp.where(valid, 0.0, -jnp.inf).astype(jnp.float32).reshape(1, oflat)

    # Scoped-VMEM budget: double-buffered IO blocks + f32 working set + headroom.
    io_bytes = 2 * (C * inflat * 2) + 2 * (C * oflat * x.dtype.itemsize)
    work_bytes = (cg4 * inflat + 3 * C * oflat) * 4
    vmem_limit = int(min(64 << 20, max(32 << 20, 2 * (io_bytes + work_bytes))))

    kernel = functools.partial(_cem_kernel, cinit=cinit, wrow=wrow, oflat=oflat,
                               dw_sizes=DW_SIZES, pad=pad)

    out_flat = pl.pallas_call(
        kernel,
        out_shape=jax.ShapeDtypeStruct((B, C, oflat), x.dtype),
        grid=(B,),
        in_specs=[
            pl.BlockSpec((None, C, inflat), lambda b: (b, 0, 0)),   # padded input
            pl.BlockSpec((cg4, C), lambda b: (0, 0)),               # primary weights
            pl.BlockSpec((cinit, ntaps), lambda b: (0, 0)),         # packed dw taps
            pl.BlockSpec((1, oflat), lambda b: (0, 0)),             # pooling mask
            pl.BlockSpec((C // 4, C), lambda b: (0, 0)),            # CB fc1
            pl.BlockSpec((C, C // 4), lambda b: (0, 0)),            # CB fc2
        ],
        out_specs=pl.BlockSpec((None, C, oflat), lambda b: (b, 0, 0)),
        scratch_shapes=[pltpu.VMEM((C, 1), jnp.float32)],           # pooled vector
        compiler_params=pltpu.CompilerParams(
            dimension_semantics=("parallel",),
            vmem_limit_bytes=vmem_limit),
    )(xpf, w_prim.astype(jnp.bfloat16), wdw, neg, params["w1"], params["w2"])

    # TODO(synk): for large H*W or batch=1 on v7x, add a second "parallel" grid
    # axis tiling H with a 2*pad-row halo (and/or pack small batches per step).

    # Cheap crop of the flat padded layout back to (B, C, H, W).
    return out_flat[:, :, :H * wrow].reshape(B, C, H, wrow)[:, :, :, :W]


# ------------------------------------------------------------------
# Pure-JAX reference (mirrors the PyTorch CEM forward) for verification
# ------------------------------------------------------------------
def cem_reference(x, params):
    B, C, H, W = x.shape
    wp = params["w_primary"]
    cinit = wp.shape[0] // len(DW_SIZES)
    y = jnp.maximum(jnp.einsum("oc,bchw->bohw", wp, x), 0.0)
    branch_outs = []
    for bi, d in enumerate(DW_SIZES):
        x1 = y[:, bi * cinit:(bi + 1) * cinit]
        p = d // 2
        xpad = (jnp.pad(x1, ((0, 0), (0, 0), (p, p), (p, p)), mode="reflect")
                if p > 0 else x1)
        w = params["w_dw"][bi]
        acc = jnp.zeros_like(x1)
        for a in range(d):
            for bb in range(d):
                acc = acc + xpad[:, :, a:a + H, bb:bb + W] * w[:, a, bb][None, :, None, None]
        branch_outs.append(jnp.concatenate([x1, jnp.maximum(acc, 0.0)], axis=1))
    xc = jnp.concatenate(branch_outs, axis=1)
    pooled = jnp.max(xc, axis=(2, 3))                       # AdaptiveMaxPool2d(1)
    h = pooled @ params["w1"].T
    h = jnp.where(h >= 0, h, 0.01 * h)                      # LeakyReLU(0.01)
    s = jax.nn.sigmoid(h @ params["w2"].T)
    return xc * s[:, :, None, None]


def init_params(key, channel):
    cinit = channel // 8      # math.ceil((channel // 4) / 2) for channel % 8 == 0
    k1, k2, k3, k4 = jax.random.split(key, 4)
    # fused primary 1x1 conv weights, branch-major rows: (4*cinit, C)
    w_primary = jax.random.normal(k1, (4 * cinit, channel), jnp.float32) / np.sqrt(channel)
    # per-branch depthwise ("cheap") conv weights: (cinit, d, d)
    w_dw = [
        jax.random.normal(jax.random.fold_in(k2, i), (cinit, d, d), jnp.float32) / float(d)
        for i, d in enumerate(DW_SIZES)
    ]
    # CB: fc1 (C -> C//4) and fc2 (C//4 -> C), PyTorch Linear layout, no bias
    w1 = jax.random.normal(k3, (channel // 4, channel), jnp.float32) / np.sqrt(channel)
    w2 = jax.random.normal(k4, (channel, channel // 4), jnp.float32) / np.sqrt(channel // 4)
    return {"w_primary": w_primary, "w_dw": w_dw, "w1": w1, "w2": w2}


if __name__ == "__main__":
    B, C, H, W = 2, 16, 16, 16
    key = jax.random.PRNGKey(0)
    kx, kp = jax.random.split(key)
    x = jax.random.normal(kx, (B, C, H, W), jnp.float32)
    params = init_params(kp, C)

    cem_fn = jax.jit(cem_forward)
    out = jax.block_until_ready(cem_fn(x, params))

    ref = jax.block_until_ready(cem_reference(x, params))
    assert out.shape == (B, C, H, W)
    # bf16 MXU operands -> loosened tolerance vs the pure-f32 reference.
    np.testing.assert_allclose(np.asarray(out), np.asarray(ref), rtol=2e-2, atol=5e-2)
    print("KERNEL_OK")
</pallas_src>

<mosaic_0001>
module attributes {stable_mosaic.version = 11 : i64} {
  func.func @_cem_kernel(%arg0: i32, %arg1: memref<1x16x552xbf16, #tpu.memory_space<vmem>>, %arg2: memref<8x16xbf16, #tpu.memory_space<vmem>>, %arg3: memref<2x84xf32, #tpu.memory_space<vmem>>, %arg4: memref<1x384xf32, #tpu.memory_space<vmem>>, %arg5: memref<4x16xf32, #tpu.memory_space<vmem>>, %arg6: memref<16x4xf32, #tpu.memory_space<vmem>>, %arg7: memref<1x16x384xf32, #tpu.memory_space<vmem>>, %arg8: memref<16x1xf32, #tpu.memory_space<vmem>>) attributes {dimension_semantics = [#tpu.dimension_semantics<parallel>], iteration_bounds = array<i64: 2>, scalar_prefetch = 0 : i64, scratch_operands = 1 : i64, tpu.core_type = #tpu.core_type<tc>, window_params = [{transform_indices = @transform_0, window_bounds = array<i64: 1, 16, 552>}, {pipeline_mode = #tpu.pipeline_mode<synchronous>, transform_indices = @transform_1, window_bounds = array<i64: 8, 16>}, {pipeline_mode = #tpu.pipeline_mode<synchronous>, transform_indices = @transform_2, window_bounds = array<i64: 2, 84>}, {pipeline_mode = #tpu.pipeline_mode<synchronous>, transform_indices = @transform_3, window_bounds = array<i64: 1, 384>}, {pipeline_mode = #tpu.pipeline_mode<synchronous>, transform_indices = @transform_4, window_bounds = array<i64: 4, 16>}, {pipeline_mode = #tpu.pipeline_mode<synchronous>, transform_indices = @transform_5, window_bounds = array<i64: 16, 4>}, {transform_indices = @transform_6, window_bounds = array<i64: 1, 16, 384>}]} {
    %c0 = arith.constant 0 : index
    %c0_0 = arith.constant 0 : index
    %0 = vector.load %arg2[%c0, %c0_0] : memref<8x16xbf16, #tpu.memory_space<vmem>>, vector<8x16xbf16>
    %c0_1 = arith.constant 0 : index
    %c0_2 = arith.constant 0 : index
    %c0_3 = arith.constant 0 : index
    %1 = vector.load %arg1[%c0_1, %c0_2, %c0_3] : memref<1x16x552xbf16, #tpu.memory_space<vmem>>, vector<1x16x552xbf16>
    %2 = vector.shape_cast %1 : vector<1x16x552xbf16> to vector<16x552xbf16>
    %cst = arith.constant dense<0.000000e+00> : vector<8x552xf32>
    %3 = tpu.matmul %0, %2, %cst {dimension_numbers = #tpu.dot_dimension_numbers<[1], [0], [0], [1], [0, 0, 1, 1], [], []>} : vector<8x16xbf16>, vector<16x552xbf16>, vector<8x552xf32> -> vector<8x552xf32>
    %cst_4 = arith.constant 0.000000e+00 : f32
    %4 = vector.broadcast %cst_4 : f32 to vector<8x552xf32>
    %5 = arith.maximumf %3, %4 : vector<8x552xf32>
    %c0_5 = arith.constant 0 : index
    %c0_6 = arith.constant 0 : index
    %6 = vector.load %arg4[%c0_5, %c0_6] : memref<1x384xf32, #tpu.memory_space<vmem>>, vector<1x384xf32>
    %c0_7 = arith.constant 0 : index
    %c0_8 = arith.constant 0 : index
    %7 = vector.load %arg3[%c0_7, %c0_8] : memref<2x84xf32, #tpu.memory_space<vmem>>, vector<2x84xf32>
    %8 = vector.extract_strided_slice %5 {offsets = [0, 0], sizes = [2, 552], strides = [1, 1]} : vector<8x552xf32> to vector<2x552xf32>
    %9 = vector.extract_strided_slice %8 {offsets = [0, 75], sizes = [2, 384], strides = [1, 1]} : vector<2x552xf32> to vector<2x384xf32>
    %cst_9 = arith.constant 0.000000e+00 : f32
    %10 = vector.broadcast %cst_9 : f32 to vector<2x384xf32>
    %11 = vector.extract_strided_slice %8 {offsets = [0, 75], sizes = [2, 384], strides = [1, 1]} : vector<2x552xf32> to vector<2x384xf32>
    %12 = vector.extract_strided_slice %7 {offsets = [0, 0], sizes = [2, 1], strides = [1, 1]} : vector<2x84xf32> to vector<2x1xf32>
    %13 = vector.broadcast %12 : vector<2x1xf32> to vector<2x384xf32>
    %14 = arith.mulf %11, %13 : vector<2x384xf32>
    %15 = arith.addf %10, %14 : vector<2x384xf32>
    %cst_10 = arith.constant 0.000000e+00 : f32
    %16 = vector.broadcast %cst_10 : f32 to vector<2x384xf32>
    %17 = arith.maximumf %15, %16 : vector<2x384xf32>
    %18 = vector.broadcast %6 : vector<1x384xf32> to vector<2x384xf32>
    %19 = arith.addf %9, %18 : vector<2x384xf32>
    %cst_11 = arith.constant dense<0xFF800000> : vector<2xf32>
    %20 = vector.multi_reduction <maximumf>, %19, %cst_11 [1] : vector<2x384xf32> to vector<2xf32>
    %21 = vector.shape_cast %20 : vector<2xf32> to vector<2x1xf32>
    %c0_12 = arith.constant 0 : index
    %c0_13 = arith.constant 0 : index
    %22 = vector.load %arg8[%c0_12, %c0_13] : memref<16x1xf32, #tpu.memory_space<vmem>>, vector<2x1xf32>
    tpu.vector_store %arg8[%c0_12, %c0_13], %21 {strides = array<i32>} : memref<16x1xf32, #tpu.memory_space<vmem>>, vector<2x1xf32>,
    %23 = vector.broadcast %6 : vector<1x384xf32> to vector<2x384xf32>
    %24 = arith.addf %17, %23 : vector<2x384xf32>
    %cst_14 = arith.constant dense<0xFF800000> : vector<2xf32>
    %25 = vector.multi_reduction <maximumf>, %24, %cst_14 [1] : vector<2x384xf32> to vector<2xf32>
    %26 = vector.shape_cast %25 : vector<2xf32> to vector<2x1xf32>
    %c2 = arith.constant 2 : index
    %c0_15 = arith.constant 0 : index
    %27 = vector.load %arg8[%c2, %c0_15] : memref<16x1xf32, #tpu.memory_space<vmem>>, vector<2x1xf32>
    tpu.vector_store %arg8[%c2, %c0_15], %26 {strides = array<i32>} : memref<16x1xf32, #tpu.memory_space<vmem>>, vector<2x1xf32>,
    %28 = vector.extract_strided_slice %5 {offsets = [2, 0], sizes = [2, 552], strides = [1, 1]} : vector<8x552xf32> to vector<2x552xf32>
    %29 = vector.extract_strided_slice %28 {offsets = [0, 75], sizes = [2, 384], strides = [1, 1]} : vector<2x552xf32> to vector<2x384xf32>
    %cst_16 = arith.constant 0.000000e+00 : f32
    %30 = vector.broadcast %cst_16 : f32 to vector<2x384xf32>
    %31 = vector.extract_strided_slice %28 {offsets = [0, 50], sizes = [2, 384], strides = [1, 1]} : vector<2x552xf32> to vector<2x384xf32>
    %32 = vector.extract_strided_slice %7 {offsets = [0, 1], sizes = [2, 1], strides = [1, 1]} : vector<2x84xf32> to vector<2x1xf32>
    %33 = vector.broadcast %32 : vector<2x1xf32> to vector<2x384xf32>
    %34 = arith.mulf %31, %33 : vector<2x384xf32>
    %35 = arith.addf %30, %34 : vector<2x384xf32>
    %36 = vector.extract_strided_slice %28 {offsets = [0, 51], sizes = [2, 384], strides = [1, 1]} : vector<2x552xf32> to vector<2x384xf32>
    %37 = vector.extract_strided_slice %7 {offsets = [0, 2], sizes = [2, 1], strides = [1, 1]} : vector<2x84xf32> to vector<2x1xf32>
    %38 = vector.broadcast %37 : vector<2x1xf32> to vector<2x384xf32>
    %39 = arith.mulf %36, %38 : vector<2x384xf32>
    %40 = arith.addf %35, %39 : vector<2x384xf32>
    %41 = vector.extract_strided_slice %28 {offsets = [0, 52], sizes = [2, 384], strides = [1, 1]} : vector<2x552xf32> to vector<2x384xf32>
    %42 = vector.extract_strided_slice %7 {offsets = [0, 3], sizes = [2, 1], strides = [1, 1]} : vector<2x84xf32> to vector<2x1xf32>
    %43 = vector.broadcast %42 : vector<2x1xf32> to vector<2x384xf32>
    %44 = arith.mulf %41, %43 : vector<2x384xf32>
    %45 = arith.addf %40, %44 : vector<2x384xf32>
    %46 = vector.extract_strided_slice %28 {offsets = [0, 74], sizes = [2, 384], strides = [1, 1]} : vector<2x552xf32> to vector<2x384xf32>
    %47 = vector.extract_strided_slice %7 {offsets = [0, 4], sizes = [2, 1], strides = [1, 1]} : vector<2x84xf32> to vector<2x1xf32>
    %48 = vector.broadcast %47 : vector<2x1xf32> to vector<2x384xf32>
    %49 = arith.mulf %46, %48 : vector<2x384xf32>
    %50 = arith.addf %45, %49 : vector<2x384xf32>
    %51 = vector.extract_strided_slice %28 {offsets = [0, 75], sizes = [2, 384], strides = [1, 1]} : vector<2x552xf32> to vector<2x384xf32>
    %52 = vector.extract_strided_slice %7 {offsets = [0, 5], sizes = [2, 1], strides = [1, 1]} : vector<2x84xf32> to vector<2x1xf32>
    %53 = vector.broadcast %52 : vector<2x1xf32> to vector<2x384xf32>
    %54 = arith.mulf %51, %53 : vector<2x384xf32>
    %55 = arith.addf %50, %54 : vector<2x384xf32>
    %56 = vector.extract_strided_slice %28 {offsets = [0, 76], sizes = [2, 384], strides = [1, 1]} : vector<2x552xf32> to vector<2x384xf32>
    %57 = vector.extract_strided_slice %7 {offsets = [0, 6], sizes = [2, 1], strides = [1, 1]} : vector<2x84xf32> to vector<2x1xf32>
    %58 = vector.broadcast %57 : vector<2x1xf32> to vector<2x384xf32>
    %59 = arith.mulf %56, %58 : vector<2x384xf32>
    %60 = arith.addf %55, %59 : vector<2x384xf32>
    %61 = vector.extract_strided_slice %28 {offsets = [0, 98], sizes = [2, 384], strides = [1, 1]} : vector<2x552xf32> to vector<2x384xf32>
    %62 = vector.extract_strided_slice %7 {offsets = [0, 7], sizes = [2, 1], strides = [1, 1]} : vector<2x84xf32> to vector<2x1xf32>
    %63 = vector.broadcast %62 : vector<2x1xf32> to vector<2x384xf32>
    %64 = arith.mulf %61, %63 : vector<2x384xf32>
    %65 = arith.addf %60, %64 : vector<2x384xf32>
    %66 = vector.extract_strided_slice %28 {offsets = [0, 99], sizes = [2, 384], strides = [1, 1]} : vector<2x552xf32> to vector<2x384xf32>
    %67 = vector.extract_strided_slice %7 {offsets = [0, 8], sizes = [2, 1], strides = [1, 1]} : vector<2x84xf32> to vector<2x1xf32>
    %68 = vector.broadcast %67 : vector<2x1xf32> to vector<2x384xf32>
    %69 = arith.mulf %66, %68 : vector<2x384xf32>
    %70 = arith.addf %65, %69 : vector<2x384xf32>
    %71 = vector.extract_strided_slice %28 {offsets = [0, 100], sizes = [2, 384], strides = [1, 1]} : vector<2x552xf32> to vector<2x384xf32>
    %72 = vector.extract_strided_slice %7 {offsets = [0, 9], sizes = [2, 1], strides = [1, 1]} : vector<2x84xf32> to vector<2x1xf32>
    %73 = vector.broadcast %72 : vector<2x1xf32> to vector<2x384xf32>
    %74 = arith.mulf %71, %73 : vector<2x384xf32>
    %75 = arith.addf %70, %74 : vector<2x384xf32>
    %cst_17 = arith.constant 0.000000e+00 : f32
    %76 = vector.broadcast %cst_17 : f32 to vector<2x384xf32>
    %77 = arith.maximumf %75, %76 : vector<2x384xf32>
    %78 = vector.broadcast %6 : vector<1x384xf32> to vector<2x384xf32>
    %79 = arith.addf %29, %78 : vector<2x384xf32>
    %cst_18 = arith.constant dense<0xFF800000> : vector<2xf32>
    %80 = vector.multi_reduction <maximumf>, %79, %cst_18 [1] : vector<2x384xf32> to vector<2xf32>
    %81 = vector.shape_cast %80 : vector<2xf32> to vector<2x1xf32>
    %c4 = arith.constant 4 : index
    %c0_19 = arith.constant 0 : index
    %82 = vector.load %arg8[%c4, %c0_19] : memref<16x1xf32, #tpu.memory_space<vmem>>, vector<2x1xf32>
    tpu.vector_store %arg8[%c4, %c0_19], %81 {strides = array<i32>} : memref<16x1xf32, #tpu.memory_space<vmem>>, vector<2x1xf32>,
    %83 = vector.broadcast %6 : vector<1x384xf32> to vector<2x384xf32>
    %84 = arith.addf %77, %83 : vector<2x384xf32>
    %cst_20 = arith.constant dense<0xFF800000> : vector<2xf32>
    %85 = vector.multi_reduction <maximumf>, %84, %cst_20 [1] : vector<2x384xf32> to vector<2xf32>
    %86 = vector.shape_cast %85 : vector<2xf32> to vector<2x1xf32>
    %c6 = arith.constant 6 : index
    %c0_21 = arith.constant 0 : index
    %87 = vector.load %arg8[%c6, %c0_21] : memref<16x1xf32, #tpu.memory_space<vmem>>, vector<2x1xf32>
    tpu.vector_store %arg8[%c6, %c0_21], %86 {strides = array<i32>} : memref<16x1xf32, #tpu.memory_space<vmem>>, vector<2x1xf32>,
    %88 = vector.extract_strided_slice %5 {offsets = [4, 0], sizes = [2, 552], strides = [1, 1]} : vector<8x552xf32> to vector<2x552xf32>
    %89 = vector.extract_strided_slice %88 {offsets = [0, 75], sizes = [2, 384], strides = [1, 1]} : vector<2x552xf32> to vector<2x384xf32>
    %cst_22 = arith.constant 0.000000e+00 : f32
    %90 = vector.broadcast %cst_22 : f32 to vector<2x384xf32>
    %91 = vector.extract_strided_slice %88 {offsets = [0, 25], sizes = [2, 384], strides = [1, 1]} : vector<2x552xf32> to vector<2x384xf32>
    %92 = vector.extract_strided_slice %7 {offsets = [0, 10], sizes = [2, 1], strides = [1, 1]} : vector<2x84xf32> to vector<2x1xf32>
    %93 = vector.broadcast %92 : vector<2x1xf32> to vector<2x384xf32>
    %94 = arith.mulf %91, %93 : vector<2x384xf32>
    %95 = arith.addf %90, %94 : vector<2x384xf32>
    %96 = vector.extract_strided_slice %88 {offsets = [0, 26], sizes = [2, 384], strides = [1, 1]} : vector<2x552xf32> to vector<2x384xf32>
    %97 = vector.extract_strided_slice %7 {offsets = [0, 11], sizes = [2, 1], strides = [1, 1]} : vector<2x84xf32> to vector<2x1xf32>
    %98 = vector.broadcast %97 : vector<2x1xf32> to vector<2x384xf32>
    %99 = arith.mulf %96, %98 : vector<2x384xf32>
    %100 = arith.addf %95, %99 : vector<2x384xf32>
    %101 = vector.extract_strided_slice %88 {offsets = [0, 27], sizes = [2, 384], strides = [1, 1]} : vector<2x552xf32> to vector<2x384xf32>
    %102 = vector.extract_strided_slice %7 {offsets = [0, 12], sizes = [2, 1], strides = [1, 1]} : vector<2x84xf32> to vector<2x1xf32>
    %103 = vector.broadcast %102 : vector<2x1xf32> to vector<2x384xf32>
    %104 = arith.mulf %101, %103 : vector<2x384xf32>
    %105 = arith.addf %100, %104 : vector<2x384xf32>
    %106 = vector.extract_strided_slice %88 {offsets = [0, 28], sizes = [2, 384], strides = [1, 1]} : vector<2x552xf32> to vector<2x384xf32>
    %107 = vector.extract_strided_slice %7 {offsets = [0, 13], sizes = [2, 1], strides = [1, 1]} : vector<2x84xf32> to vector<2x1xf32>
    %108 = vector.broadcast %107 : vector<2x1xf32> to vector<2x384xf32>
    %109 = arith.mulf %106, %108 : vector<2x384xf32>
    %110 = arith.addf %105, %109 : vector<2x384xf32>
    %111 = vector.extract_strided_slice %88 {offsets = [0, 29], sizes = [2, 384], strides = [1, 1]} : vector<2x552xf32> to vector<2x384xf32>
    %112 = vector.extract_strided_slice %7 {offsets = [0, 14], sizes = [2, 1], strides = [1, 1]} : vector<2x84xf32> to vector<2x1xf32>
    %113 = vector.broadcast %112 : vector<2x1xf32> to vector<2x384xf32>
    %114 = arith.mulf %111, %113 : vector<2x384xf32>
    %115 = arith.addf %110, %114 : vector<2x384xf32>
    %116 = vector.extract_strided_slice %88 {offsets = [0, 49], sizes = [2, 384], strides = [1, 1]} : vector<2x552xf32> to vector<2x384xf32>
    %117 = vector.extract_strided_slice %7 {offsets = [0, 15], sizes = [2, 1], strides = [1, 1]} : vector<2x84xf32> to vector<2x1xf32>
    %118 = vector.broadcast %117 : vector<2x1xf32> to vector<2x384xf32>
    %119 = arith.mulf %116, %118 : vector<2x384xf32>
    %120 = arith.addf %115, %119 : vector<2x384xf32>
    %121 = vector.extract_strided_slice %88 {offsets = [0, 50], sizes = [2, 384], strides = [1, 1]} : vector<2x552xf32> to vector<2x384xf32>
    %122 = vector.extract_strided_slice %7 {offsets = [0, 16], sizes = [2, 1], strides = [1, 1]} : vector<2x84xf32> to vector<2x1xf32>
    %123 = vector.broadcast %122 : vector<2x1xf32> to vector<2x384xf32>
    %124 = arith.mulf %121, %123 : vector<2x384xf32>
    %125 = arith.addf %120, %124 : vector<2x384xf32>
    %126 = vector.extract_strided_slice %88 {offsets = [0, 51], sizes = [2, 384], strides = [1, 1]} : vector<2x552xf32> to vector<2x384xf32>
    %127 = vector.extract_strided_slice %7 {offsets = [0, 17], sizes = [2, 1], strides = [1, 1]} : vector<2x84xf32> to vector<2x1xf32>
    %128 = vector.broadcast %127 : vector<2x1xf32> to vector<2x384xf32>
    %129 = arith.mulf %126, %128 : vector<2x384xf32>
    %130 = arith.addf %125, %129 : vector<2x384xf32>
    %131 = vector.extract_strided_slice %88 {offsets = [0, 52], sizes = [2, 384], strides = [1, 1]} : vector<2x552xf32> to vector<2x384xf32>
    %132 = vector.extract_strided_slice %7 {offsets = [0, 18], sizes = [2, 1], strides = [1, 1]} : vector<2x84xf32> to vector<2x1xf32>
    %133 = vector.broadcast %132 : vector<2x1xf32> to vector<2x384xf32>
    %134 = arith.mulf %131, %133 : vector<2x384xf32>
    %135 = arith.addf %130, %134 : vector<2x384xf32>
    %136 = vector.extract_strided_slice %88 {offsets = [0, 53], sizes = [2, 384], strides = [1, 1]} : vector<2x552xf32> to vector<2x384xf32>
    %137 = vector.extract_strided_slice %7 {offsets = [0, 19], sizes = [2, 1], strides = [1, 1]} : vector<2x84xf32> to vector<2x1xf32>
    %138 = vector.broadcast %137 : vector<2x1xf32> to vector<2x384xf32>
    %139 = arith.mulf %136, %138 : vector<2x384xf32>
    %140 = arith.addf %135, %139 : vector<2x384xf32>
    %141 = vector.extract_strided_slice %88 {offsets = [0, 73], sizes = [2, 384], strides = [1, 1]} : vector<2x552xf32> to vector<2x384xf32>
    %142 = vector.extract_strided_slice %7 {offsets = [0, 20], sizes = [2, 1], strides = [1, 1]} : vector<2x84xf32> to vector<2x1xf32>
    %143 = vector.broadcast %142 : vector<2x1xf32> to vector<2x384xf32>
    %144 = arith.mulf %141, %143 : vector<2x384xf32>
    %145 = arith.addf %140, %144 : vector<2x384xf32>
    %146 = vector.extract_strided_slice %88 {offsets = [0, 74], sizes = [2, 384], strides = [1, 1]} : vector<2x552xf32> to vector<2x384xf32>
    %147 = vector.extract_strided_slice %7 {offsets = [0, 21], sizes = [2, 1], strides = [1, 1]} : vector<2x84xf32> to vector<2x1xf32>
    %148 = vector.broadcast %147 : vector<2x1xf32> to vector<2x384xf32>
    %149 = arith.mulf %146, %148 : vector<2x384xf32>
    %150 = arith.addf %145, %149 : vector<2x384xf32>
    %151 = vector.extract_strided_slice %88 {offsets = [0, 75], sizes = [2, 384], strides = [1, 1]} : vector<2x552xf32> to vector<2x384xf32>
    %152 = vector.extract_strided_slice %7 {offsets = [0, 22], sizes = [2, 1], strides = [1, 1]} : vector<2x84xf32> to vector<2x1xf32>
    %153 = vector.broadcast %152 : vector<2x1xf32> to vector<2x384xf32>
    %154 = arith.mulf %151, %153 : vector<2x384xf32>
    %155 = arith.addf %150, %154 : vector<2x384xf32>
    %156 = vector.extract_strided_slice %88 {offsets = [0, 76], sizes = [2, 384], strides = [1, 1]} : vector<2x552xf32> to vector<2x384xf32>
    %157 = vector.extract_strided_slice %7 {offsets = [0, 23], sizes = [2, 1], strides = [1, 1]} : vector<2x84xf32> to vector<2x1xf32>
    %158 = vector.broadcast %157 : vector<2x1xf32> to vector<2x384xf32>
    %159 = arith.mulf %156, %158 : vector<2x384xf32>
    %160 = arith.addf %155, %159 : vector<2x384xf32>
    %161 = vector.extract_strided_slice %88 {offsets = [0, 77], sizes = [2, 384], strides = [1, 1]} : vector<2x552xf32> to vector<2x384xf32>
    %162 = vector.extract_strided_slice %7 {offsets = [0, 24], sizes = [2, 1], strides = [1, 1]} : vector<2x84xf32> to vector<2x1xf32>
    %163 = vector.broadcast %162 : vector<2x1xf32> to vector<2x384xf32>
    %164 = arith.mulf %161, %163 : vector<2x384xf32>
    %165 = arith.addf %160, %164 : vector<2x384xf32>
    %166 = vector.extract_strided_slice %88 {offsets = [0, 97], sizes = [2, 384], strides = [1, 1]} : vector<2x552xf32> to vector<2x384xf32>
    %167 = vector.extract_strided_slice %7 {offsets = [0, 25], sizes = [2, 1], strides = [1, 1]} : vector<2x84xf32> to vector<2x1xf32>
    %168 = vector.broadcast %167 : vector<2x1xf32> to vector<2x384xf32>
    %169 = arith.mulf %166, %168 : vector<2x384xf32>
    %170 = arith.addf %165, %169 : vector<2x384xf32>
    %171 = vector.extract_strided_slice %88 {offsets = [0, 98], sizes = [2, 384], strides = [1, 1]} : vector<2x552xf32> to vector<2x384xf32>
    %172 = vector.extract_strided_slice %7 {offsets = [0, 26], sizes = [2, 1], strides = [1, 1]} : vector<2x84xf32> to vector<2x1xf32>
    %173 = vector.broadcast %172 : vector<2x1xf32> to vector<2x384xf32>
    %174 = arith.mulf %171, %173 : vector<2x384xf32>
    %175 = arith.addf %170, %174 : vector<2x384xf32>
    %176 = vector.extract_strided_slice %88 {offsets = [0, 99], sizes = [2, 384], strides = [1, 1]} : vector<2x552xf32> to vector<2x384xf32>
    %177 = vector.extract_strided_slice %7 {offsets = [0, 27], sizes = [2, 1], strides = [1, 1]} : vector<2x84xf32> to vector<2x1xf32>
    %178 = vector.broadcast %177 : vector<2x1xf32> to vector<2x384xf32>
    %179 = arith.mulf %176, %178 : vector<2x384xf32>
    %180 = arith.addf %175, %179 : vector<2x384xf32>
    %181 = vector.extract_strided_slice %88 {offsets = [0, 100], sizes = [2, 384], strides = [1, 1]} : vector<2x552xf32> to vector<2x384xf32>
    %182 = vector.extract_strided_slice %7 {offsets = [0, 28], sizes = [2, 1], strides = [1, 1]} : vector<2x84xf32> to vector<2x1xf32>
    %183 = vector.broadcast %182 : vector<2x1xf32> to vector<2x384xf32>
    %184 = arith.mulf %181, %183 : vector<2x384xf32>
    %185 = arith.addf %180, %184 : vector<2x384xf32>
    %186 = vector.extract_strided_slice %88 {offsets = [0, 101], sizes = [2, 384], strides = [1, 1]} : vector<2x552xf32> to vector<2x384xf32>
    %187 = vector.extract_strided_slice %7 {offsets = [0, 29], sizes = [2, 1], strides = [1, 1]} : vector<2x84xf32> to vector<2x1xf32>
    %188 = vector.broadcast %187 : vector<2x1xf32> to vector<2x384xf32>
    %189 = arith.mulf %186, %188 : vector<2x384xf32>
    %190 = arith.addf %185, %189 : vector<2x384xf32>
    %191 = vector.extract_strided_slice %88 {offsets = [0, 121], sizes = [2, 384], strides = [1, 1]} : vector<2x552xf32> to vector<2x384xf32>
    %192 = vector.extract_strided_slice %7 {offsets = [0, 30], sizes = [2, 1], strides = [1, 1]} : vector<2x84xf32> to vector<2x1xf32>
    %193 = vector.broadcast %192 : vector<2x1xf32> to vector<2x384xf32>
    %194 = arith.mulf %191, %193 : vector<2x384xf32>
    %195 = arith.addf %190, %194 : vector<2x384xf32>
    %196 = vector.extract_strided_slice %88 {offsets = [0, 122], sizes = [2, 384], strides = [1, 1]} : vector<2x552xf32> to vector<2x384xf32>
    %197 = vector.extract_strided_slice %7 {offsets = [0, 31], sizes = [2, 1], strides = [1, 1]} : vector<2x84xf32> to vector<2x1xf32>
    %198 = vector.broadcast %197 : vector<2x1xf32> to vector<2x384xf32>
    %199 = arith.mulf %196, %198 : vector<2x384xf32>
    %200 = arith.addf %195, %199 : vector<2x384xf32>
    %201 = vector.extract_strided_slice %88 {offsets = [0, 123], sizes = [2, 384], strides = [1, 1]} : vector<2x552xf32> to vector<2x384xf32>
    %202 = vector.extract_strided_slice %7 {offsets = [0, 32], sizes = [2, 1], strides = [1, 1]} : vector<2x84xf32> to vector<2x1xf32>
    %203 = vector.broadcast %202 : vector<2x1xf32> to vector<2x384xf32>
    %204 = arith.mulf %201, %203 : vector<2x384xf32>
    %205 = arith.addf %200, %204 : vector<2x384xf32>
    %206 = vector.extract_strided_slice %88 {offsets = [0, 124], sizes = [2, 384], strides = [1, 1]} : vector<2x552xf32> to vector<2x384xf32>
    %207 = vector.extract_strided_slice %7 {offsets = [0, 33], sizes = [2, 1], strides = [1, 1]} : vector<2x84xf32> to vector<2x1xf32>
    %208 = vector.broadcast %207 : vector<2x1xf32> to vector<2x384xf32>
    %209 = arith.mulf %206, %208 : vector<2x384xf32>
    %210 = arith.addf %205, %209 : vector<2x384xf32>
    %211 = vector.extract_strided_slice %88 {offsets = [0, 125], sizes = [2, 384], strides = [1, 1]} : vector<2x552xf32> to vector<2x384xf32>
    %212 = vector.extract_strided_slice %7 {offsets = [0, 34], sizes = [2, 1], strides = [1, 1]} : vector<2x84xf32> to vector<2x1xf32>
    %213 = vector.broadcast %212 : vector<2x1xf32> to vector<2x384xf32>
    %214 = arith.mulf %211, %213 : vector<2x384xf32>
    %215 = arith.addf %210, %214 : vector<2x384xf32>
    %cst_23 = arith.constant 0.000000e+00 : f32
    %216 = vector.broadcast %cst_23 : f32 to vector<2x384xf32>
    %217 = arith.maximumf %215, %216 : vector<2x384xf32>
    %218 = vector.broadcast %6 : vector<1x384xf32> to vector<2x384xf32>
    %219 = arith.addf %89, %218 : vector<2x384xf32>
    %cst_24 = arith.constant dense<0xFF800000> : vector<2xf32>
    %220 = vector.multi_reduction <maximumf>, %219, %cst_24 [1] : vector<2x384xf32> to vector<2xf32>
    %221 = vector.shape_cast %220 : vector<2xf32> to vector<2x1xf32>
    %c8 = arith.constant 8 : index
    %c0_25 = arith.constant 0 : index
    %222 = vector.load %arg8[%c8, %c0_25] : memref<16x1xf32, #tpu.memory_space<vmem>>, vector<2x1xf32>
    tpu.vector_store %arg8[%c8, %c0_25], %221 {strides = array<i32>} : memref<16x1xf32, #tpu.memory_space<vmem>>, vector<2x1xf32>,
    %223 = vector.broadcast %6 : vector<1x384xf32> to vector<2x384xf32>
    %224 = arith.addf %217, %223 : vector<2x384xf32>
    %cst_26 = arith.constant dense<0xFF800000> : vector<2xf32>
    %225 = vector.multi_reduction <maximumf>, %224, %cst_26 [1] : vector<2x384xf32> to vector<2xf32>
    %226 = vector.shape_cast %225 : vector<2xf32> to vector<2x1xf32>
    %c10 = arith.constant 10 : index
    %c0_27 = arith.constant 0 : index
    %227 = vector.load %arg8[%c10, %c0_27] : memref<16x1xf32, #tpu.memory_space<vmem>>, vector<2x1xf32>
    tpu.vector_store %arg8[%c10, %c0_27], %226 {strides = array<i32>} : memref<16x1xf32, #tpu.memory_space<vmem>>, vector<2x1xf32>,
    %228 = vector.extract_strided_slice %5 {offsets = [6, 0], sizes = [2, 552], strides = [1, 1]} : vector<8x552xf32> to vector<2x552xf32>
    %229 = vector.extract_strided_slice %228 {offsets = [0, 75], sizes = [2, 384], strides = [1, 1]} : vector<2x552xf32> to vector<2x384xf32>
    %cst_28 = arith.constant 0.000000e+00 : f32
    %230 = vector.broadcast %cst_28 : f32 to vector<2x384xf32>
    %231 = vector.extract_strided_slice %228 {offsets = [0, 0], sizes = [2, 384], strides = [1, 1]} : vector<2x552xf32> to vector<2x384xf32>
    %232 = vector.extract_strided_slice %7 {offsets = [0, 35], sizes = [2, 1], strides = [1, 1]} : vector<2x84xf32> to vector<2x1xf32>
    %233 = vector.broadcast %232 : vector<2x1xf32> to vector<2x384xf32>
    %234 = arith.mulf %231, %233 : vector<2x384xf32>
    %235 = arith.addf %230, %234 : vector<2x384xf32>
    %236 = vector.extract_strided_slice %228 {offsets = [0, 1], sizes = [2, 384], strides = [1, 1]} : vector<2x552xf32> to vector<2x384xf32>
    %237 = vector.extract_strided_slice %7 {offsets = [0, 36], sizes = [2, 1], strides = [1, 1]} : vector<2x84xf32> to vector<2x1xf32>
    %238 = vector.broadcast %237 : vector<2x1xf32> to vector<2x384xf32>
    %239 = arith.mulf %236, %238 : vector<2x384xf32>
    %240 = arith.addf %235, %239 : vector<2x384xf32>
    %241 = vector.extract_strided_slice %228 {offsets = [0, 2], sizes = [2, 384], strides = [1, 1]} : vector<2x552xf32> to vector<2x384xf32>
    %242 = vector.extract_strided_slice %7 {offsets = [0, 37], sizes = [2, 1], strides = [1, 1]} : vector<2x84xf32> to vector<2x1xf32>
    %243 = vector.broadcast %242 : vector<2x1xf32> to vector<2x384xf32>
    %244 = arith.mulf %241, %243 : vector<2x384xf32>
    %245 = arith.addf %240, %244 : vector<2x384xf32>
    %246 = vector.extract_strided_slice %228 {offsets = [0, 3], sizes = [2, 384], strides = [1, 1]} : vector<2x552xf32> to vector<2x384xf32>
    %247 = vector.extract_strided_slice %7 {offsets = [0, 38], sizes = [2, 1], strides = [1, 1]} : vector<2x84xf32> to vector<2x1xf32>
    %248 = vector.broadcast %247 : vector<2x1xf32> to vector<2x384xf32>
    %249 = arith.mulf %246, %248 : vector<2x384xf32>
    %250 = arith.addf %245, %249 : vector<2x384xf32>
    %251 = vector.extract_strided_slice %228 {offsets = [0, 4], sizes = [2, 384], strides = [1, 1]} : vector<2x552xf32> to vector<2x384xf32>
    %252 = vector.extract_strided_slice %7 {offsets = [0, 39], sizes = [2, 1], strides = [1, 1]} : vector<2x84xf32> to vector<2x1xf32>
    %253 = vector.broadcast %252 : vector<2x1xf32> to vector<2x384xf32>
    %254 = arith.mulf %251, %253 : vector<2x384xf32>
    %255 = arith.addf %250, %254 : vector<2x384xf32>
    %256 = vector.extract_strided_slice %228 {offsets = [0, 5], sizes = [2, 384], strides = [1, 1]} : vector<2x552xf32> to vector<2x384xf32>
    %257 = vector.extract_strided_slice %7 {offsets = [0, 40], sizes = [2, 1], strides = [1, 1]} : vector<2x84xf32> to vector<2x1xf32>
    %258 = vector.broadcast %257 : vector<2x1xf32> to vector<2x384xf32>
    %259 = arith.mulf %256, %258 : vector<2x384xf32>
    %260 = arith.addf %255, %259 : vector<2x384xf32>
    %261 = vector.extract_strided_slice %228 {offsets = [0, 6], sizes = [2, 384], strides = [1, 1]} : vector<2x552xf32> to vector<2x384xf32>
    %262 = vector.extract_strided_slice %7 {offsets = [0, 41], sizes = [2, 1], strides = [1, 1]} : vector<2x84xf32> to vector<2x1xf32>
    %263 = vector.broadcast %262 : vector<2x1xf32> to vector<2x384xf32>
    %264 = arith.mulf %261, %263 : vector<2x384xf32>
    %265 = arith.addf %260, %264 : vector<2x384xf32>
    %266 = vector.extract_strided_slice %228 {offsets = [0, 24], sizes = [2, 384], strides = [1, 1]} : vector<2x552xf32> to vector<2x384xf32>
    %267 = vector.extract_strided_slice %7 {offsets = [0, 42], sizes = [2, 1], strides = [1, 1]} : vector<2x84xf32> to vector<2x1xf32>
    %268 = vector.broadcast %267 : vector<2x1xf32> to vector<2x384xf32>
    %269 = arith.mulf %266, %268 : vector<2x384xf32>
    %270 = arith.addf %265, %269 : vector<2x384xf32>
    %271 = vector.extract_strided_slice %228 {offsets = [0, 25], sizes = [2, 384], strides = [1, 1]} : vector<2x552xf32> to vector<2x384xf32>
    %272 = vector.extract_strided_slice %7 {offsets = [0, 43], sizes = [2, 1], strides = [1, 1]} : vector<2x84xf32> to vector<2x1xf32>
    %273 = vector.broadcast %272 : vector<2x1xf32> to vector<2x384xf32>
    %274 = arith.mulf %271, %273 : vector<2x384xf32>
    %275 = arith.addf %270, %274 : vector<2x384xf32>
    %276 = vector.extract_strided_slice %228 {offsets = [0, 26], sizes = [2, 384], strides = [1, 1]} : vector<2x552xf32> to vector<2x384xf32>
    %277 = vector.extract_strided_slice %7 {offsets = [0, 44], sizes = [2, 1], strides = [1, 1]} : vector<2x84xf32> to vector<2x1xf32>
    %278 = vector.broadcast %277 : vector<2x1xf32> to vector<2x384xf32>
    %279 = arith.mulf %276, %278 : vector<2x384xf32>
    %280 = arith.addf %275, %279 : vector<2x384xf32>
    %281 = vector.extract_strided_slice %228 {offsets = [0, 27], sizes = [2, 384], strides = [1, 1]} : vector<2x552xf32> to vector<2x384xf32>
    %282 = vector.extract_strided_slice %7 {offsets = [0, 45], sizes = [2, 1], strides = [1, 1]} : vector<2x84xf32> to vector<2x1xf32>
    %283 = vector.broadcast %282 : vector<2x1xf32> to vector<2x384xf32>
    %284 = arith.mulf %281, %283 : vector<2x384xf32>
    %285 = arith.addf %280, %284 : vector<2x384xf32>
    %286 = vector.extract_strided_slice %228 {offsets = [0, 28], sizes = [2, 384], strides = [1, 1]} : vector<2x552xf32> to vector<2x384xf32>
    %287 = vector.extract_strided_slice %7 {offsets = [0, 46], sizes = [2, 1], strides = [1, 1]} : vector<2x84xf32> to vector<2x1xf32>
    %288 = vector.broadcast %287 : vector<2x1xf32> to vector<2x384xf32>
    %289 = arith.mulf %286, %288 : vector<2x384xf32>
    %290 = arith.addf %285, %289 : vector<2x384xf32>
    %291 = vector.extract_strided_slice %228 {offsets = [0, 29], sizes = [2, 384], strides = [1, 1]} : vector<2x552xf32> to vector<2x384xf32>
    %292 = vector.extract_strided_slice %7 {offsets = [0, 47], sizes = [2, 1], strides = [1, 1]} : vector<2x84xf32> to vector<2x1xf32>
    %293 = vector.broadcast %292 : vector<2x1xf32> to vector<2x384xf32>
    %294 = arith.mulf %291, %293 : vector<2x384xf32>
    %295 = arith.addf %290, %294 : vector<2x384xf32>
    %296 = vector.extract_strided_slice %228 {offsets = [0, 30], sizes = [2, 384], strides = [1, 1]} : vector<2x552xf32> to vector<2x384xf32>
    %297 = vector.extract_strided_slice %7 {offsets = [0, 48], sizes = [2, 1], strides = [1, 1]} : vector<2x84xf32> to vector<2x1xf32>
    %298 = vector.broadcast %297 : vector<2x1xf32> to vector<2x384xf32>
    %299 = arith.mulf %296, %298 : vector<2x384xf32>
    %300 = arith.addf %295, %299 : vector<2x384xf32>
    %301 = vector.extract_strided_slice %228 {offsets = [0, 48], sizes = [2, 384], strides = [1, 1]} : vector<2x552xf32> to vector<2x384xf32>
    %302 = vector.extract_strided_slice %7 {offsets = [0, 49], sizes = [2, 1], strides = [1, 1]} : vector<2x84xf32> to vector<2x1xf32>
    %303 = vector.broadcast %302 : vector<2x1xf32> to vector<2x384xf32>
    %304 = arith.mulf %301, %303 : vector<2x384xf32>
    %305 = arith.addf %300, %304 : vector<2x384xf32>
    %306 = vector.extract_strided_slice %228 {offsets = [0, 49], sizes = [2, 384], strides = [1, 1]} : vector<2x552xf32> to vector<2x384xf32>
    %307 = vector.extract_strided_slice %7 {offsets = [0, 50], sizes = [2, 1], strides = [1, 1]} : vector<2x84xf32> to vector<2x1xf32>
    %308 = vector.broadcast %307 : vector<2x1xf32> to vector<2x384xf32>
    %309 = arith.mulf %306, %308 : vector<2x384xf32>
    %310 = arith.addf %305, %309 : vector<2x384xf32>
    %311 = vector.extract_strided_slice %228 {offsets = [0, 50], sizes = [2, 384], strides = [1, 1]} : vector<2x552xf32> to vector<2x384xf32>
    %312 = vector.extract_strided_slice %7 {offsets = [0, 51], sizes = [2, 1], strides = [1, 1]} : vector<2x84xf32> to vector<2x1xf32>
    %313 = vector.broadcast %312 : vector<2x1xf32> to vector<2x384xf32>
    %314 = arith.mulf %311, %313 : vector<2x384xf32>
    %315 = arith.addf %310, %314 : vector<2x384xf32>
    %316 = vector.extract_strided_slice %228 {offsets = [0, 51], sizes = [2, 384], strides = [1, 1]} : vector<2x552xf32> to vector<2x384xf32>
    %317 = vector.extract_strided_slice %7 {offsets = [0, 52], sizes = [2, 1], strides = [1, 1]} : vector<2x84xf32> to vector<2x1xf32>
    %318 = vector.broadcast %317 : vector<2x1xf32> to vector<2x384xf32>
    %319 = arith.mulf %316, %318 : vector<2x384xf32>
    %320 = arith.addf %315, %319 : vector<2x384xf32>
    %321 = vector.extract_strided_slice %228 {offsets = [0, 52], sizes = [2, 384], strides = [1, 1]} : vector<2x552xf32> to vector<2x384xf32>
    %322 = vector.extract_strided_slice %7 {offsets = [0, 53], sizes = [2, 1], strides = [1, 1]} : vector<2x84xf32> to vector<2x1xf32>
    %323 = vector.broadcast %322 : vector<2x1xf32> to vector<2x384xf32>
    %324 = arith.mulf %321, %323 : vector<2x384xf32>
    %325 = arith.addf %320, %324 : vector<2x384xf32>
    %326 = vector.extract_strided_slice %228 {offsets = [0, 53], sizes = [2, 384], strides = [1, 1]} : vector<2x552xf32> to vector<2x384xf32>
    %327 = vector.extract_strided_slice %7 {offsets = [0, 54], sizes = [2, 1], strides = [1, 1]} : vector<2x84xf32> to vector<2x1xf32>
    %328 = vector.broadcast %327 : vector<2x1xf32> to vector<2x384xf32>
    %329 = arith.mulf %326, %328 : vector<2x384xf32>
    %330 = arith.addf %325, %329 : vector<2x384xf32>
    %331 = vector.extract_strided_slice %228 {offsets = [0, 54], sizes = [2, 384], strides = [1, 1]} : vector<2x552xf32> to vector<2x384xf32>
    %332 = vector.extract_strided_slice %7 {offsets = [0, 55], sizes = [2, 1], strides = [1, 1]} : vector<2x84xf32> to vector<2x1xf32>
    %333 = vector.broadcast %332 : vector<2x1xf32> to vector<2x384xf32>
    %334 = arith.mulf %331, %333 : vector<2x384xf32>
    %335 = arith.addf %330, %334 : vector<2x384xf32>
    %336 = vector.extract_strided_slice %228 {offsets = [0, 72], sizes = [2, 384], strides = [1, 1]} : vector<2x552xf32> to vector<2x384xf32>
    %337 = vector.extract_strided_slice %7 {offsets = [0, 56], sizes = [2, 1], strides = [1, 1]} : vector<2x84xf32> to vector<2x1xf32>
    %338 = vector.broadcast %337 : vector<2x1xf32> to vector<2x384xf32>
    %339 = arith.mulf %336, %338 : vector<2x384xf32>
    %340 = arith.addf %335, %339 : vector<2x384xf32>
    %341 = vector.extract_strided_slice %228 {offsets = [0, 73], sizes = [2, 384], strides = [1, 1]} : vector<2x552xf32> to vector<2x384xf32>
    %342 = vector.extract_strided_slice %7 {offsets = [0, 57], sizes = [2, 1], strides = [1, 1]} : vector<2x84xf32> to vector<2x1xf32>
    %343 = vector.broadcast %342 : vector<2x1xf32> to vector<2x384xf32>
    %344 = arith.mulf %341, %343 : vector<2x384xf32>
    %345 = arith.addf %340, %344 : vector<2x384xf32>
    %346 = vector.extract_strided_slice %228 {offsets = [0, 74], sizes = [2, 384], strides = [1, 1]} : vector<2x552xf32> to vector<2x384xf32>
    %347 = vector.extract_strided_slice %7 {offsets = [0, 58], sizes = [2, 1], strides = [1, 1]} : vector<2x84xf32> to vector<2x1xf32>
    %348 = vector.broadcast %347 : vector<2x1xf32> to vector<2x384xf32>
    %349 = arith.mulf %346, %348 : vector<2x384xf32>
    %350 = arith.addf %345, %349 : vector<2x384xf32>
    %351 = vector.extract_strided_slice %228 {offsets = [0, 75], sizes = [2, 384], strides = [1, 1]} : vector<2x552xf32> to vector<2x384xf32>
    %352 = vector.extract_strided_slice %7 {offsets = [0, 59], sizes = [2, 1], strides = [1, 1]} : vector<2x84xf32> to vector<2x1xf32>
    %353 = vector.broadcast %352 : vector<2x1xf32> to vector<2x384xf32>
    %354 = arith.mulf %351, %353 : vector<2x384xf32>
    %355 = arith.addf %350, %354 : vector<2x384xf32>
    %356 = vector.extract_strided_slice %228 {offsets = [0, 76], sizes = [2, 384], strides = [1, 1]} : vector<2x552xf32> to vector<2x384xf32>
    %357 = vector.extract_strided_slice %7 {offsets = [0, 60], sizes = [2, 1], strides = [1, 1]} : vector<2x84xf32> to vector<2x1xf32>
    %358 = vector.broadcast %357 : vector<2x1xf32> to vector<2x384xf32>
    %359 = arith.mulf %356, %358 : vector<2x384xf32>
    %360 = arith.addf %355, %359 : vector<2x384xf32>
    %361 = vector.extract_strided_slice %228 {offsets = [0, 77], sizes = [2, 384], strides = [1, 1]} : vector<2x552xf32> to vector<2x384xf32>
    %362 = vector.extract_strided_slice %7 {offsets = [0, 61], sizes = [2, 1], strides = [1, 1]} : vector<2x84xf32> to vector<2x1xf32>
    %363 = vector.broadcast %362 : vector<2x1xf32> to vector<2x384xf32>
    %364 = arith.mulf %361, %363 : vector<2x384xf32>
    %365 = arith.addf %360, %364 : vector<2x384xf32>
    %366 = vector.extract_strided_slice %228 {offsets = [0, 78], sizes = [2, 384], strides = [1, 1]} : vector<2x552xf32> to vector<2x384xf32>
    %367 = vector.extract_strided_slice %7 {offsets = [0, 62], sizes = [2, 1], strides = [1, 1]} : vector<2x84xf32> to vector<2x1xf32>
    %368 = vector.broadcast %367 : vector<2x1xf32> to vector<2x384xf32>
    %369 = arith.mulf %366, %368 : vector<2x384xf32>
    %370 = arith.addf %365, %369 : vector<2x384xf32>
    %371 = vector.extract_strided_slice %228 {offsets = [0, 96], sizes = [2, 384], strides = [1, 1]} : vector<2x552xf32> to vector<2x384xf32>
    %372 = vector.extract_strided_slice %7 {offsets = [0, 63], sizes = [2, 1], strides = [1, 1]} : vector<2x84xf32> to vector<2x1xf32>
    %373 = vector.broadcast %372 : vector<2x1xf32> to vector<2x384xf32>
    %374 = arith.mulf %371, %373 : vector<2x384xf32>
    %375 = arith.addf %370, %374 : vector<2x384xf32>
    %376 = vector.extract_strided_slice %228 {offsets = [0, 97], sizes = [2, 384], strides = [1, 1]} : vector<2x552xf32> to vector<2x384xf32>
    %377 = vector.extract_strided_slice %7 {offsets = [0, 64], sizes = [2, 1], strides = [1, 1]} : vector<2x84xf32> to vector<2x1xf32>
    %378 = vector.broadcast %377 : vector<2x1xf32> to vector<2x384xf32>
    %379 = arith.mulf %376, %378 : vector<2x384xf32>
    %380 = arith.addf %375, %379 : vector<2x384xf32>
    %381 = vector.extract_strided_slice %228 {offsets = [0, 98], sizes = [2, 384], strides = [1, 1]} : vector<2x552xf32> to vector<2x384xf32>
    %382 = vector.extract_strided_slice %7 {offsets = [0, 65], sizes = [2, 1], strides = [1, 1]} : vector<2x84xf32> to vector<2x1xf32>
    %383 = vector.broadcast %382 : vector<2x1xf32> to vector<2x384xf32>
    %384 = arith.mulf %381, %383 : vector<2x384xf32>
    %385 = arith.addf %380, %384 : vector<2x384xf32>
    %386 = vector.extract_strided_slice %228 {offsets = [0, 99], sizes = [2, 384], strides = [1, 1]} : vector<2x552xf32> to vector<2x384xf32>
    %387 = vector.extract_strided_slice %7 {offsets = [0, 66], sizes = [2, 1], strides = [1, 1]} : vector<2x84xf32> to vector<2x1xf32>
    %388 = vector.broadcast %387 : vector<2x1xf32> to vector<2x384xf32>
    %389 = arith.mulf %386, %388 : vector<2x384xf32>
    %390 = arith.addf %385, %389 : vector<2x384xf32>
    %391 = vector.extract_strided_slice %228 {offsets = [0, 100], sizes = [2, 384], strides = [1, 1]} : vector<2x552xf32> to vector<2x384xf32>
    %392 = vector.extract_strided_slice %7 {offsets = [0, 67], sizes = [2, 1], strides = [1, 1]} : vector<2x84xf32> to vector<2x1xf32>
    %393 = vector.broadcast %392 : vector<2x1xf32> to vector<2x384xf32>
    %394 = arith.mulf %391, %393 : vector<2x384xf32>
    %395 = arith.addf %390, %394 : vector<2x384xf32>
    %396 = vector.extract_strided_slice %228 {offsets = [0, 101], sizes = [2, 384], strides = [1, 1]} : vector<2x552xf32> to vector<2x384xf32>
    %397 = vector.extract_strided_slice %7 {offsets = [0, 68], sizes = [2, 1], strides = [1, 1]} : vector<2x84xf32> to vector<2x1xf32>
    %398 = vector.broadcast %397 : vector<2x1xf32> to vector<2x384xf32>
    %399 = arith.mulf %396, %398 : vector<2x384xf32>
    %400 = arith.addf %395, %399 : vector<2x384xf32>
    %401 = vector.extract_strided_slice %228 {offsets = [0, 102], sizes = [2, 384], strides = [1, 1]} : vector<2x552xf32> to vector<2x384xf32>
    %402 = vector.extract_strided_slice %7 {offsets = [0, 69], sizes = [2, 1], strides = [1, 1]} : vector<2x84xf32> to vector<2x1xf32>
    %403 = vector.broadcast %402 : vector<2x1xf32> to vector<2x384xf32>
    %404 = arith.mulf %401, %403 : vector<2x384xf32>
    %405 = arith.addf %400, %404 : vector<2x384xf32>
    %406 = vector.extract_strided_slice %228 {offsets = [0, 120], sizes = [2, 384], strides = [1, 1]} : vector<2x552xf32> to vector<2x384xf32>
    %407 = vector.extract_strided_slice %7 {offsets = [0, 70], sizes = [2, 1], strides = [1, 1]} : vector<2x84xf32> to vector<2x1xf32>
    %408 = vector.broadcast %407 : vector<2x1xf32> to vector<2x384xf32>
    %409 = arith.mulf %406, %408 : vector<2x384xf32>
    %410 = arith.addf %405, %409 : vector<2x384xf32>
    %411 = vector.extract_strided_slice %228 {offsets = [0, 121], sizes = [2, 384], strides = [1, 1]} : vector<2x552xf32> to vector<2x384xf32>
    %412 = vector.extract_strided_slice %7 {offsets = [0, 71], sizes = [2, 1], strides = [1, 1]} : vector<2x84xf32> to vector<2x1xf32>
    %413 = vector.broadcast %412 : vector<2x1xf32> to vector<2x384xf32>
    %414 = arith.mulf %411, %413 : vector<2x384xf32>
    %415 = arith.addf %410, %414 : vector<2x384xf32>
    %416 = vector.extract_strided_slice %228 {offsets = [0, 122], sizes = [2, 384], strides = [1, 1]} : vector<2x552xf32> to vector<2x384xf32>
    %417 = vector.extract_strided_slice %7 {offsets = [0, 72], sizes = [2, 1], strides = [1, 1]} : vector<2x84xf32> to vector<2x1xf32>
    %418 = vector.broadcast %417 : vector<2x1xf32> to vector<2x384xf32>
    %419 = arith.mulf %416, %418 : vector<2x384xf32>
    %420 = arith.addf %415, %419 : vector<2x384xf32>
    %421 = vector.extract_strided_slice %228 {offsets = [0, 123], sizes = [2, 384], strides = [1, 1]} : vector<2x552xf32> to vector<2x384xf32>
    %422 = vector.extract_strided_slice %7 {offsets = [0, 73], sizes = [2, 1], strides = [1, 1]} : vector<2x84xf32> to vector<2x1xf32>
    %423 = vector.broadcast %422 : vector<2x1xf32> to vector<2x384xf32>
    %424 = arith.mulf %421, %423 : vector<2x384xf32>
    %425 = arith.addf %420, %424 : vector<2x384xf32>
    %426 = vector.extract_strided_slice %228 {offsets = [0, 124], sizes = [2, 384], strides = [1, 1]} : vector<2x552xf32> to vector<2x384xf32>
    %427 = vector.extract_strided_slice %7 {offsets = [0, 74], sizes = [2, 1], strides = [1, 1]} : vector<2x84xf32> to vector<2x1xf32>
    %428 = vector.broadcast %427 : vector<2x1xf32> to vector<2x384xf32>
    %429 = arith.mulf %426, %428 : vector<2x384xf32>
    %430 = arith.addf %425, %429 : vector<2x384xf32>
    %431 = vector.extract_strided_slice %228 {offsets = [0, 125], sizes = [2, 384], strides = [1, 1]} : vector<2x552xf32> to vector<2x384xf32>
    %432 = vector.extract_strided_slice %7 {offsets = [0, 75], sizes = [2, 1], strides = [1, 1]} : vector<2x84xf32> to vector<2x1xf32>
    %433 = vector.broadcast %432 : vector<2x1xf32> to vector<2x384xf32>
    %434 = arith.mulf %431, %433 : vector<2x384xf32>
    %435 = arith.addf %430, %434 : vector<2x384xf32>
    %436 = vector.extract_strided_slice %228 {offsets = [0, 126], sizes = [2, 384], strides = [1, 1]} : vector<2x552xf32> to vector<2x384xf32>
    %437 = vector.extract_strided_slice %7 {offsets = [0, 76], sizes = [2, 1], strides = [1, 1]} : vector<2x84xf32> to vector<2x1xf32>
    %438 = vector.broadcast %437 : vector<2x1xf32> to vector<2x384xf32>
    %439 = arith.mulf %436, %438 : vector<2x384xf32>
    %440 = arith.addf %435, %439 : vector<2x384xf32>
    %441 = vector.extract_strided_slice %228 {offsets = [0, 144], sizes = [2, 384], strides = [1, 1]} : vector<2x552xf32> to vector<2x384xf32>
    %442 = vector.extract_strided_slice %7 {offsets = [0, 77], sizes = [2, 1], strides = [1, 1]} : vector<2x84xf32> to vector<2x1xf32>
    %443 = vector.broadcast %442 : vector<2x1xf32> to vector<2x384xf32>
    %444 = arith.mulf %441, %443 : vector<2x384xf32>
    %445 = arith.addf %440, %444 : vector<2x384xf32>
    %446 = vector.extract_strided_slice %228 {offsets = [0, 145], sizes = [2, 384], strides = [1, 1]} : vector<2x552xf32> to vector<2x384xf32>
    %447 = vector.extract_strided_slice %7 {offsets = [0, 78], sizes = [2, 1], strides = [1, 1]} : vector<2x84xf32> to vector<2x1xf32>
    %448 = vector.broadcast %447 : vector<2x1xf32> to vector<2x384xf32>
    %449 = arith.mulf %446, %448 : vector<2x384xf32>
    %450 = arith.addf %445, %449 : vector<2x384xf32>
    %451 = vector.extract_strided_slice %228 {offsets = [0, 146], sizes = [2, 384], strides = [1, 1]} : vector<2x552xf32> to vector<2x384xf32>
    %452 = vector.extract_strided_slice %7 {offsets = [0, 79], sizes = [2, 1], strides = [1, 1]} : vector<2x84xf32> to vector<2x1xf32>
    %453 = vector.broadcast %452 : vector<2x1xf32> to vector<2x384xf32>
    %454 = arith.mulf %451, %453 : vector<2x384xf32>
    %455 = arith.addf %450, %454 : vector<2x384xf32>
    %456 = vector.extract_strided_slice %228 {offsets = [0, 147], sizes = [2, 384], strides = [1, 1]} : vector<2x552xf32> to vector<2x384xf32>
    %457 = vector.extract_strided_slice %7 {offsets = [0, 80], sizes = [2, 1], strides = [1, 1]} : vector<2x84xf32> to vector<2x1xf32>
    %458 = vector.broadcast %457 : vector<2x1xf32> to vector<2x384xf32>
    %459 = arith.mulf %456, %458 : vector<2x384xf32>
    %460 = arith.addf %455, %459 : vector<2x384xf32>
    %461 = vector.extract_strided_slice %228 {offsets = [0, 148], sizes = [2, 384], strides = [1, 1]} : vector<2x552xf32> to vector<2x384xf32>
    %462 = vector.extract_strided_slice %7 {offsets = [0, 81], sizes = [2, 1], strides = [1, 1]} : vector<2x84xf32> to vector<2x1xf32>
    %463 = vector.broadcast %462 : vector<2x1xf32> to vector<2x384xf32>
    %464 = arith.mulf %461, %463 : vector<2x384xf32>
    %465 = arith.addf %460, %464 : vector<2x384xf32>
    %466 = vector.extract_strided_slice %228 {offsets = [0, 149], sizes = [2, 384], strides = [1, 1]} : vector<2x552xf32> to vector<2x384xf32>
    %467 = vector.extract_strided_slice %7 {offsets = [0, 82], sizes = [2, 1], strides = [1, 1]} : vector<2x84xf32> to vector<2x1xf32>
    %468 = vector.broadcast %467 : vector<2x1xf32> to vector<2x384xf32>
    %469 = arith.mulf %466, %468 : vector<2x384xf32>
    %470 = arith.addf %465, %469 : vector<2x384xf32>
    %471 = vector.extract_strided_slice %228 {offsets = [0, 150], sizes = [2, 384], strides = [1, 1]} : vector<2x552xf32> to vector<2x384xf32>
    %472 = vector.extract_strided_slice %7 {offsets = [0, 83], sizes = [2, 1], strides = [1, 1]} : vector<2x84xf32> to vector<2x1xf32>
    %473 = vector.broadcast %472 : vector<2x1xf32> to vector<2x384xf32>
    %474 = arith.mulf %471, %473 : vector<2x384xf32>
    %475 = arith.addf %470, %474 : vector<2x384xf32>
    %cst_29 = arith.constant 0.000000e+00 : f32
    %476 = vector.broadcast %cst_29 : f32 to vector<2x384xf32>
    %477 = arith.maximumf %475, %476 : vector<2x384xf32>
    %478 = vector.broadcast %6 : vector<1x384xf32> to vector<2x384xf32>
    %479 = arith.addf %229, %478 : vector<2x384xf32>
    %cst_30 = arith.constant dense<0xFF800000> : vector<2xf32>
    %480 = vector.multi_reduction <maximumf>, %479, %cst_30 [1] : vector<2x384xf32> to vector<2xf32>
    %481 = vector.shape_cast %480 : vector<2xf32> to vector<2x1xf32>
    %c12 = arith.constant 12 : index
    %c0_31 = arith.constant 0 : index
    %482 = vector.load %arg8[%c12, %c0_31] : memref<16x1xf32, #tpu.memory_space<vmem>>, vector<2x1xf32>
    tpu.vector_store %arg8[%c12, %c0_31], %481 {strides = array<i32>} : memref<16x1xf32, #tpu.memory_space<vmem>>, vector<2x1xf32>,
    %483 = vector.broadcast %6 : vector<1x384xf32> to vector<2x384xf32>
    %484 = arith.addf %477, %483 : vector<2x384xf32>
    %cst_32 = arith.constant dense<0xFF800000> : vector<2xf32>
    %485 = vector.multi_reduction <maximumf>, %484, %cst_32 [1] : vector<2x384xf32> to vector<2xf32>
    %486 = vector.shape_cast %485 : vector<2xf32> to vector<2x1xf32>
    %c14 = arith.constant 14 : index
    %c0_33 = arith.constant 0 : index
    %487 = vector.load %arg8[%c14, %c0_33] : memref<16x1xf32, #tpu.memory_space<vmem>>, vector<2x1xf32>
    tpu.vector_store %arg8[%c14, %c0_33], %486 {strides = array<i32>} : memref<16x1xf32, #tpu.memory_space<vmem>>, vector<2x1xf32>,
    %c0_34 = arith.constant 0 : index
    %c0_35 = arith.constant 0 : index
    %488 = vector.load %arg8[%c0_34, %c0_35] : memref<16x1xf32, #tpu.memory_space<vmem>>, vector<16x1xf32>
    %489 = vector.shape_cast %488 : vector<16x1xf32> to vector<16x1xf32>
    %490 = vector.broadcast %489 : vector<16x1xf32> to vector<16x128xf32>
    %c0_36 = arith.constant 0 : index
    %c0_37 = arith.constant 0 : index
    %491 = vector.load %arg5[%c0_36, %c0_37] : memref<4x16xf32, #tpu.memory_space<vmem>>, vector<4x16xf32>
    %cst_38 = arith.constant dense<0.000000e+00> : vector<4x128xf32>
    %492 = tpu.matmul %491, %490, %cst_38 {dimension_numbers = #tpu.dot_dimension_numbers<[1], [0], [0], [1], [0, 0, 1, 1], [], []>} : vector<4x16xf32>, vector<16x128xf32>, vector<4x128xf32> -> vector<4x128xf32>
    %cst_39 = arith.constant 0.000000e+00 : f32
    %493 = vector.broadcast %cst_39 : f32 to vector<4x128xf32>
    %494 = arith.cmpf oge, %492, %493 : vector<4x128xf32>
    %cst_40 = arith.constant 0.00999999977 : f32
    %495 = vector.broadcast %cst_40 : f32 to vector<4x128xf32>
    %496 = arith.mulf %495, %492 : vector<4x128xf32>
    %497 = arith.select %494, %492, %496 : vector<4x128xi1>, vector<4x128xf32>
    %c0_41 = arith.constant 0 : index
    %c0_42 = arith.constant 0 : index
    %498 = vector.load %arg6[%c0_41, %c0_42] : memref<16x4xf32, #tpu.memory_space<vmem>>, vector<16x4xf32>
    %cst_43 = arith.constant dense<0.000000e+00> : vector<16x128xf32>
    %499 = tpu.matmul %498, %497, %cst_43 {dimension_numbers = #tpu.dot_dimension_numbers<[1], [0], [0], [1], [0, 0, 1, 1], [], []>} : vector<16x4xf32>, vector<4x128xf32>, vector<16x128xf32> -> vector<16x128xf32>
    %500 = arith.negf %499 : vector<16x128xf32>
    %501 = math.exp %500 : vector<16x128xf32>
    %cst_44 = arith.constant 1.000000e+00 : f32
    %502 = vector.broadcast %cst_44 : f32 to vector<16x128xf32>
    %503 = arith.addf %502, %501 : vector<16x128xf32>
    %504 = arith.divf %502, %503 : vector<16x128xf32>
    %505 = vector.extract_strided_slice %504 {offsets = [0, 0], sizes = [16, 1], strides = [1, 1]} : vector<16x128xf32> to vector<16x1xf32>
    %506 = vector.extract_strided_slice %505 {offsets = [0, 0], sizes = [2, 1], strides = [1, 1]} : vector<16x1xf32> to vector<2x1xf32>
    %507 = vector.broadcast %506 : vector<2x1xf32> to vector<2x384xf32>
    %508 = arith.mulf %9, %507 : vector<2x384xf32>
    %c0_45 = arith.constant 0 : index
    %c0_46 = arith.constant 0 : index
    %c0_47 = arith.constant 0 : index
    %509 = vector.load %arg7[%c0_45, %c0_46, %c0_47] : memref<1x16x384xf32, #tpu.memory_space<vmem>>, vector<1x2x384xf32>
    %510 = vector.shape_cast %509 : vector<1x2x384xf32> to vector<2x384xf32>
    %511 = vector.shape_cast %508 : vector<2x384xf32> to vector<1x2x384xf32>
    tpu.vector_store %arg7[%c0_45, %c0_46, %c0_47], %511 {strides = array<i32>} : memref<1x16x384xf32, #tpu.memory_space<vmem>>, vector<1x2x384xf32>,
    %512 = vector.extract_strided_slice %505 {offsets = [2, 0], sizes = [2, 1], strides = [1, 1]} : vector<16x1xf32> to vector<2x1xf32>
    %513 = vector.broadcast %512 : vector<2x1xf32> to vector<2x384xf32>
    %514 = arith.mulf %17, %513 : vector<2x384xf32>
    %c0_48 = arith.constant 0 : index
    %c2_49 = arith.constant 2 : index
    %c0_50 = arith.constant 0 : index
    %515 = vector.load %arg7[%c0_48, %c2_49, %c0_50] : memref<1x16x384xf32, #tpu.memory_space<vmem>>, vector<1x2x384xf32>
    %516 = vector.shape_cast %515 : vector<1x2x384xf32> to vector<2x384xf32>
    %517 = vector.shape_cast %514 : vector<2x384xf32> to vector<1x2x384xf32>
    tpu.vector_store %arg7[%c0_48, %c2_49, %c0_50], %517 {strides = array<i32>} : memref<1x16x384xf32, #tpu.memory_space<vmem>>, vector<1x2x384xf32>,
    %518 = vector.extract_strided_slice %505 {offsets = [4, 0], sizes = [2, 1], strides = [1, 1]} : vector<16x1xf32> to vector<2x1xf32>
    %519 = vector.broadcast %518 : vector<2x1xf32> to vector<2x384xf32>
    %520 = arith.mulf %29, %519 : vector<2x384xf32>
    %c0_51 = arith.constant 0 : index
    %c4_52 = arith.constant 4 : index
    %c0_53 = arith.constant 0 : index
    %521 = vector.load %arg7[%c0_51, %c4_52, %c0_53] : memref<1x16x384xf32, #tpu.memory_space<vmem>>, vector<1x2x384xf32>
    %522 = vector.shape_cast %521 : vector<1x2x384xf32> to vector<2x384xf32>
    %523 = vector.shape_cast %520 : vector<2x384xf32> to vector<1x2x384xf32>
    tpu.vector_store %arg7[%c0_51, %c4_52, %c0_53], %523 {strides = array<i32>} : memref<1x16x384xf32, #tpu.memory_space<vmem>>, vector<1x2x384xf32>,
    %524 = vector.extract_strided_slice %505 {offsets = [6, 0], sizes = [2, 1], strides = [1, 1]} : vector<16x1xf32> to vector<2x1xf32>
    %525 = vector.broadcast %524 : vector<2x1xf32> to vector<2x384xf32>
    %526 = arith.mulf %77, %525 : vector<2x384xf32>
    %c0_54 = arith.constant 0 : index
    %c6_55 = arith.constant 6 : index
    %c0_56 = arith.constant 0 : index
    %527 = vector.load %arg7[%c0_54, %c6_55, %c0_56] : memref<1x16x384xf32, #tpu.memory_space<vmem>>, vector<1x2x384xf32>
    %528 = vector.shape_cast %527 : vector<1x2x384xf32> to vector<2x384xf32>
    %529 = vector.shape_cast %526 : vector<2x384xf32> to vector<1x2x384xf32>
    tpu.vector_store %arg7[%c0_54, %c6_55, %c0_56], %529 {strides = array<i32>} : memref<1x16x384xf32, #tpu.memory_space<vmem>>, vector<1x2x384xf32>,
    %530 = vector.extract_strided_slice %505 {offsets = [8, 0], sizes = [2, 1], strides = [1, 1]} : vector<16x1xf32> to vector<2x1xf32>
    %531 = vector.broadcast %530 : vector<2x1xf32> to vector<2x384xf32>
    %532 = arith.mulf %89, %531 : vector<2x384xf32>
    %c0_57 = arith.constant 0 : index
    %c8_58 = arith.constant 8 : index
    %c0_59 = arith.constant 0 : index
    %533 = vector.load %arg7[%c0_57, %c8_58, %c0_59] : memref<1x16x384xf32, #tpu.memory_space<vmem>>, vector<1x2x384xf32>
    %534 = vector.shape_cast %533 : vector<1x2x384xf32> to vector<2x384xf32>
    %535 = vector.shape_cast %532 : vector<2x384xf32> to vector<1x2x384xf32>
    tpu.vector_store %arg7[%c0_57, %c8_58, %c0_59], %535 {strides = array<i32>} : memref<1x16x384xf32, #tpu.memory_space<vmem>>, vector<1x2x384xf32>,
    %536 = vector.extract_strided_slice %505 {offsets = [10, 0], sizes = [2, 1], strides = [1, 1]} : vector<16x1xf32> to vector<2x1xf32>
    %537 = vector.broadcast %536 : vector<2x1xf32> to vector<2x384xf32>
    %538 = arith.mulf %217, %537 : vector<2x384xf32>
    %c0_60 = arith.constant 0 : index
    %c10_61 = arith.constant 10 : index
    %c0_62 = arith.constant 0 : index
    %539 = vector.load %arg7[%c0_60, %c10_61, %c0_62] : memref<1x16x384xf32, #tpu.memory_space<vmem>>, vector<1x2x384xf32>
    %540 = vector.shape_cast %539 : vector<1x2x384xf32> to vector<2x384xf32>
    %541 = vector.shape_cast %538 : vector<2x384xf32> to vector<1x2x384xf32>
    tpu.vector_store %arg7[%c0_60, %c10_61, %c0_62], %541 {strides = array<i32>} : memref<1x16x384xf32, #tpu.memory_space<vmem>>, vector<1x2x384xf32>,
    %542 = vector.extract_strided_slice %505 {offsets = [12, 0], sizes = [2, 1], strides = [1, 1]} : vector<16x1xf32> to vector<2x1xf32>
    %543 = vector.broadcast %542 : vector<2x1xf32> to vector<2x384xf32>
    %544 = arith.mulf %229, %543 : vector<2x384xf32>
    %c0_63 = arith.constant 0 : index
    %c12_64 = arith.constant 12 : index
    %c0_65 = arith.constant 0 : index
    %545 = vector.load %arg7[%c0_63, %c12_64, %c0_65] : memref<1x16x384xf32, #tpu.memory_space<vmem>>, vector<1x2x384xf32>
    %546 = vector.shape_cast %545 : vector<1x2x384xf32> to vector<2x384xf32>
    %547 = vector.shape_cast %544 : vector<2x384xf32> to vector<1x2x384xf32>
    tpu.vector_store %arg7[%c0_63, %c12_64, %c0_65], %547 {strides = array<i32>} : memref<1x16x384xf32, #tpu.memory_space<vmem>>, vector<1x2x384xf32>,
    %548 = vector.extract_strided_slice %505 {offsets = [14, 0], sizes = [2, 1], strides = [1, 1]} : vector<16x1xf32> to vector<2x1xf32>
    %549 = vector.broadcast %548 : vector<2x1xf32> to vector<2x384xf32>
    %550 = arith.mulf %477, %549 : vector<2x384xf32>
    %c0_66 = arith.constant 0 : index
    %c14_67 = arith.constant 14 : index
    %c0_68 = arith.constant 0 : index
    %551 = vector.load %arg7[%c0_66, %c14_67, %c0_68] : memref<1x16x384xf32, #tpu.memory_space<vmem>>, vector<1x2x384xf32>
    %552 = vector.shape_cast %551 : vector<1x2x384xf32> to vector<2x384xf32>
    %553 = vector.shape_cast %550 : vector<2x384xf32> to vector<1x2x384xf32>
    tpu.vector_store %arg7[%c0_66, %c14_67, %c0_68], %553 {strides = array<i32>} : memref<1x16x384xf32, #tpu.memory_space<vmem>>, vector<1x2x384xf32>,
    return
  }
  func.func @transform_0(%arg0: i32) -> (i32, i32, i32) {
    %c0_i32 = arith.constant 0 : i32
    %c0_i32_0 = arith.constant 0 : i32
    %c0_i32_1 = arith.constant 0 : i32
    return %arg0, %c0_i32, %c0_i32_0 : i32, i32, i32
  }
  func.func @transform_1(%arg0: i32) -> (i32, i32) {
    %c0_i32 = arith.constant 0 : i32
    %c0_i32_0 = arith.constant 0 : i32
    %c0_i32_1 = arith.constant 0 : i32
    return %c0_i32, %c0_i32_0 : i32, i32
  }
  func.func @transform_2(%arg0: i32) -> (i32, i32) {
    %c0_i32 = arith.constant 0 : i32
    %c0_i32_0 = arith.constant 0 : i32
    %c0_i32_1 = arith.constant 0 : i32
    return %c0_i32, %c0_i32_0 : i32, i32
  }
  func.func @transform_3(%arg0: i32) -> (i32, i32) {
    %c0_i32 = arith.constant 0 : i32
    %c0_i32_0 = arith.constant 0 : i32
    %c0_i32_1 = arith.constant 0 : i32
    return %c0_i32, %c0_i32_0 : i32, i32
  }
  func.func @transform_4(%arg0: i32) -> (i32, i32) {
    %c0_i32 = arith.constant 0 : i32
    %c0_i32_0 = arith.constant 0 : i32
    %c0_i32_1 = arith.constant 0 : i32
    return %c0_i32, %c0_i32_0 : i32, i32
  }
  func.func @transform_5(%arg0: i32) -> (i32, i32) {
    %c0_i32 = arith.constant 0 : i32
    %c0_i32_0 = arith.constant 0 : i32
    %c0_i32_1 = arith.constant 0 : i32
    return %c0_i32, %c0_i32_0 : i32, i32
  }
  func.func @transform_6(%arg0: i32) -> (i32, i32, i32) {
    %c0_i32 = arith.constant 0 : i32
    %c0_i32_0 = arith.constant 0 : i32
    %c0_i32_1 = arith.constant 0 : i32
    return %arg0, %c0_i32, %c0_i32_0 : i32, i32, i32
  }
}

</mosaic_0001>

<bundles_post_ra>
// kernel: cem_forward.1
= control target key start
LH: loop header
LB: loop body
LE: loop exit
PB: predicated region body
PF: predicated region fallthrough
CT: control target
= control target key end

     0   :  { %s4107_s21 = smov 0   ;;  %s7173_s0 = inlined_call_operand.vmem [shape: bf16[2,16,552], index: 0, kind: input, shape index: {}]   ;;  %s7174_s1 = inlined_call_operand.vmem [shape: bf16[8,16], index: 1, kind: input, shape index: {}]   ;;  %s7175_s2 = inlined_call_operand.vmem [shape: f32[2,84], index: 2, kind: input, shape index: {}]   ;;  %s7176_s3 = inlined_call_operand.vmem [shape: f32[1,384], index: 3, kind: input, shape index: {}]   ;;  %s7177_s4 = inlined_call_operand.vmem [shape: f32[4,16], index: 4, kind: input, shape index: {}]   ;;  %s7178_s5 = inlined_call_operand.vmem [shape: f32[16,4], index: 5, kind: input, shape index: {}]   ;;  %s7179_s6 = inlined_call_operand.vmem [shape: f32[2,16,384], index: 6, kind: output, shape index: {}]  }
   0x1 LB: > { %s3632_s22 = sadd.s32 4294967295, %s3935_s21   ;;  %p3636_p0 = scmp.ge.s32.totalorder %s3935_s21, 1  ;;  %s3935_s21 = sphi %s4107_s21, %s16_s21  }
   0x2   : > { %p212_p1 = scmp.lt.s32.totalorder %s3935_s21, 3 }
   0x4   : > { %p213_p2 = pnand %p3636_p0, %p212_p1 }
   0x6   : > { %216 = sbr.rel (%p213_p2) target bundleno = 3524 (0xdc4), region = 44 }
   0xb   : > { %p242_p3 = scmp.lt.s32.totalorder %s3632_s22, 1  ;;  %v437_v0 = vlaneseq  ;;  %v7184_v1 = vmov 0   ;;  %v4120_v2 = vld [vmem:[%s7175_s2] sm:$0x3]  ;;  %v3938_v5 = vmov 2   ;;  %v3939_v12 = vmov 1  }
   0xc   : > { %322 = vmatprep.mubr.bf16.mxu0 %v7184_v1  ;;  %363 = vmatprep.mubr.bf16.mxu1 %v7184_v1  ;;  %v417_v4 = vld [vmem:[%s7176_s3] sm:$0x7]  ;;  %s3940_s7 = smov 75   ;;  %vm7330_vm0 = vcmask 130048   ;;  %v3941_v18 = vmov 5   ;;  %v3942_v19 = vmov 6  }
   0xd   : > { %s7783_s22 = smov (!%p242_p3, %s3632_s22), 1  ;;  %3826 = vset.pattern.permute.xlu0 %v7184_v1  ;;  %v438_v3 = vshrl.u32 %v437_v0, 7  ;;  %3828 = vset.pattern.permute.xlu1 %v3938_v5  ;;  %v253_v17 = vld [vmem:[%s7174_s1] sm:$0xf]  ;;  %v3943_v20 = vmov 3   ;;  %v3944_v21 = vmov 7  }
   0xe   : > { %421 = vperm.xlu0 %3826, %v4120_v2   ;;  %s3681_s27 = smul.u32 40, %s7783_s22  ;;  %v3945_v22 = vmov 4   ;;  %v3946_v23 = vmov 8   ;;  %s3947_s10 = smov 50   ;;  %v3948_v24 = vmov 9   ;;  %v3949_v25 = vmov 10  }
   0xf   : > { %v439_v6 = vsub.s32 0, %v438_v3  ;;  %v443_v7 = vsub.s32 1, %v438_v3  ;;  %v447_v8 = vsub.s32 2, %v438_v3  ;;  %v3950_v26 = vmov 11   ;;  %s3951_s11 = smov 104   ;;  %s3952_s12 = smov 127  }
  0x10   : > { %s4133_s30 = scalar_lea.vmem %s7173_s0, %s3681_s27  ;;  %vm458_vm1 = vcmask 613376   ;;  %vm469_vm2 = vcmask 1042008   ;;  %vm471_vm3 = vcmask 1041408   ;;  %vm474_vm4 = vcmask 607232   ;;  %s7268_s13 = smov 103  }
  0x11   : > { %v4135_v9 = vrot.slane %v417_v4, %v439_v6  ;;  %v4137_v10 = vrot.slane %v417_v4, %v443_v7  ;;  %v3912_v11 = vld [vmem:[%s4133_s30 + $0x4] ss:$20 sps:$4 sm:$0xff]   ;;  %v3914_v13 = vld [vmem:[%s4133_s30 + $0xc] ss:$20 sps:$4 sm:$0xff]   ;;  %v3917_v15 = vld [vmem:[%s4133_s30 + $0x8] ss:$20 sps:$4 sm:$0xff]   ;;  %v4147_v16 = vrot.slane %v417_v4, %v447_v8 }
  0x12   : > { %3827 = vset.pattern.permute.xlu0 %v3939_v12  ;;  %304 = vmatprep.subr.bf16.mxu0 %v3912_v11  ;;  %v3916_v14 = vld [vmem:[%s4133_s30] ss:$20 sps:$4 sm:$0xff]   ;;  %vm1622_vm5 = vcmask 1046108   ;;  %vm7203_vm6 = vcmask 1045508   ;;  %s3954_s14 = smov 126   ;;  %vm3141_vm7 = vcmask 1048158  }
  0x13   : > { %7336 = vst [vmem:[#allocation3_spill] sm:$0xff] %v4135_v9  ;;  %7337 = vst [vmem:[#allocation4_spill] sm:$0xff] %v4137_v10  ;;  %452 = vrot.lane.b32.xlu0 %v4135_v9, %s3940_s7  ;;  %454 = vrot.lane.b32.xlu1 %v4137_v10, %s3940_s7  ;;  %s3955_s15 = smov 102   ;;  %vm1627_vm8 = vcmask 611332   ;;  %vm7331_vm9 = vcmask 1047558   ;;  %vm3146_vm10 = vcmask 613382  }
  0x14   : > { %7338 = vst [vmem:[#allocation5_spill] sm:$0xff] %v4147_v16  ;;  %345 = vmatprep.subr.bf16.mxu1 %v3914_v13  ;;  %305 = vmatpush1.bf16.msra.mxu0 %v3916_v14  ;;  %s3956_s16 = smov 80   ;;  %s3957_s17 = smov 79   ;;  %vm783_vm11 = vcmask 609282   ;;  %vm778_vm12 = vcmask 1044058   ;;  %vm780_vm13 = vcmask 1043458  }
  0x15   : > { %346 = vmatpush1.bf16.msra.mxu1 %v3917_v15  ;;  %s3958_s18 = smov 78   ;;  %vm481_vm14 = vcmask 1024   ;;  %vm790_vm15 = vcmask 3074   ;;  %s3962_s19 = smov 125  }
  0x16   : > { %s3964_s20 = smov 124   ;;  %s3969_s23 = smov 101  }
  0x17   : > { %498 = vperm.xlu0 %3827, %v4120_v2   ;;  %456 = vrot.lane.b32.xlu1 %v4147_v16, %s3940_s7  ;;  %s3971_s24 = smov 100   ;;  %s4014_s29 = smov 123  }
  0x18   : > { %3644 = vmatmul.mubr.msk.bf16.vlgmr.msra.gmra.mxu0 %vm7330_vm0, %v253_v17  ;;  %3645 = vmatmul.mubr.msk.bf16.vlgmr.msra.gmra.mxu1 %vm7330_vm0, %v253_v17  ;;  %s4028_s8 = smov 99   ;;  %s4030_s9 = smov 98  }
  0x19   : > { %s4049_s25 = smov 51   ;;  %s4050_s26 = smov 32  }
  0x1a   : > { %s4051_s27 = smov 31   ;;  %s4052_s28 = smov 30  }
  0x1b   : > { %3831 = vset.pattern.permute.xlu0 %v3941_v18  ;;  %511 = vperm.xlu1 %3828, %v4120_v2  }
  0x1c   : > { %610 = vperm.xlu0 %3831, %v4120_v2  }
  0x1f   : > { %3829 = vset.pattern.permute.xlu1 %v3943_v20 }
  0x20   : > { %3832 = vset.pattern.permute.xlu0 %v3942_v19  ;;  %544 = vperm.xlu1 %3829, %v4120_v2  }
  0x21   : > { %643 = vperm.xlu0 %3832, %v4120_v2  }
  0x24   : > { %3830 = vset.pattern.permute.xlu1 %v3945_v22 }
  0x25   : > { %3833 = vset.pattern.permute.xlu0 %v3944_v21  ;;  %577 = vperm.xlu1 %3830, %v4120_v2  }
  0x26   : > { %676 = vperm.xlu0 %3833, %v4120_v2  }
  0x29   : > { %792 = vrot.lane.b32.xlu1 %v4135_v9, %s3947_s10 }
  0x2a   : > { %3834 = vset.pattern.permute.xlu0 %v3946_v23  ;;  %3837 = vset.pattern.permute.xlu1 %v3950_v26 }
  0x2b   : > { %709 = vperm.xlu0 %3834, %v4120_v2  }
  0x2d   : > { %794 = vrot.lane.b32.xlu1 %v4137_v10, %s3947_s10 }
  0x2f   : > { %3835 = vset.pattern.permute.xlu0 %v3948_v24 }
  0x30   : > { %742 = vperm.xlu0 %3835, %v4120_v2  }
  0x31   : > { %796 = vrot.lane.b32.xlu1 %v4147_v16, %s3947_s10 }
  0x34   : > { %3836 = vset.pattern.permute.xlu0 %v3949_v25 }
  0x85   : > { %v455_v27 = vpop.permute.xlu1 %454 }
  0x89   : > { %v422_v28 = vpop.permute.xlu0 %421  ;;  %v4171_v29 = vpop.permute.xlu1 %456 }
  0x8a   : > { %v460_v6 = vsel %vm458_vm1, %v455_v27, %v4171_v29 }
  0x8d   : > { %v4173_v31 = vpop.permute.xlu0 %452 }
  0x8e   : > { %v459_v4 = vsel %vm458_vm1, %v4173_v31, %v455_v27 }
  0x92   : > { %v4175_v33 = vpop.permute.xlu0 %498 }
  0x96   : > { %v512_v30 = vpop.permute.xlu1 %511 }
  0x97   : > { %v611_v35 = vpop.permute.xlu0 %610  ;;  %v4177_v36 = vrot.slane %v512_v30, 6 }
  0x98   : > { %v4210_v59 = vrot.slane %v611_v35, 6 }
  0x9b   : > { %v545_v32 = vpop.permute.xlu1 %544 }
  0x9c   : > { %v644_v50 = vpop.permute.xlu0 %643  ;;  %v4206_v57 = vrot.slane %v545_v32, 6 }
  0x9d   : > { %v4223_v5 = vrot.slane %v644_v50, 6 }
  0xa0   : > { %v578_v34 = vpop.permute.xlu1 %577 }
  0xa1   : > { %v4179_v37 = vrot.slane %v578_v34, 6  ;;  %v677_v60 = vpop.permute.xlu0 %676 }
  0xa2   : > { %v4245_v15 = vrot.slane %v677_v60, 6 }
  0xa6   : > { %v710_v17 = vpop.permute.xlu0 %709 }
  0xa7   : > { %v4261_v22 = vrot.slane %v710_v17, 6 }
  0xd8   : > { %v324_v38 = vpop.f32.mrf.mxu0  ;;  %v365_v39 = vpop.f32.mrf.mxu1 }
  0xd9   : > { %v4181_v40 = vmax.f32 %v324_v38, 0.0  ;;  %v4183_v43 = vmax.f32 %v365_v39, 0.0 }
  0xda   : > { %v326_v41 = vpop.f32.mrf.mxu0  ;;  %v367_v42 = vpop.f32.mrf.mxu1 }
  0xdb   : > { %7339 = vst [vmem:[#allocation6_spill] sm:$0xff] %v4181_v40  ;;  %7340 = vst [vmem:[#allocation7_spill] sm:$0xff] %v4183_v43  ;;  %v4185_v44 = vmax.f32 %v326_v41, 0.0  ;;  %v4187_v45 = vmax.f32 %v367_v42, 0.0  ;;  %v581_v48 = vmul.f32 %v4179_v37, %v4181_v40  ;;  %v515_v49 = vmul.f32 %v4177_v36, %v4181_v40  ;;  %v743_v42 = vpop.permute.xlu0 %742 }
  0xdc   : > { %v328_v46 = vpop.f32.mrf.mxu0  ;;  %v369_v47 = vpop.f32.mrf.mxu1  ;;  %v583_v53 = vmul.f32 %v4179_v37, %v4183_v43  ;;  %v4198_v54 = vmul.f32 %v422_v28, %v4181_v40  ;;  %v517_v58 = vmul.f32 %v4177_v36, %v4183_v43  ;;  %v616_v0 = vmul.f32 %v4210_v59, %v4183_v43 }
  0xdd   : > { %589 = vrot.lane.b32.xlu0 %v581_v48, %s3951_s11  ;;  %523 = vrot.lane.b32.xlu1 %v515_v49, %s3952_s12  ;;  %v4201_v55 = vmul.f32 %v422_v28, %v4185_v44  ;;  %v4204_v56 = vmul.f32 %v422_v28, %v4187_v45  ;;  %v548_v3 = vmul.f32 %v4206_v57, %v4181_v40 }
  0xde   : > { %v329_v51 = vpop.f32.mrf.mxu0  ;;  %v370_v52 = vpop.f32.mrf.mxu1  ;;  %7341 = vst [vmem:[#allocation8_spill] sm:$0xff] %v4198_v54  ;;  %v7182_v61 = vmax.f32 %v4198_v54, 0.0  ;;  %v4229_v7 = vmul.f32 %v422_v28, %v4183_v43  ;;  %v4232_v8 = vadd.f32 %v459_v4, %v4185_v44  ;;  %v649_v14 = vmul.f32 %v4223_v5, %v4183_v43 }
  0xdf   : > { %7342 = vst [vmem:[#allocation9_spill] sm:$0xff] %v4201_v55  ;;  %7343 = vst [vmem:[#allocation10_spill] sm:$0xff] %v4204_v56  ;;  %v7181_v62 = vmax.f32 %v4201_v55, 0.0  ;;  %v7180_v63 = vmax.f32 %v4204_v56, 0.0  ;;  %v4249_v18 = vadd.f32 %v4173_v31, %v4181_v40  ;;  %v4252_v19 = vadd.f32 %v460_v6, %v4183_v43 }
  0xe0   : > { %7344 = vst [vmem:[#allocation11_spill] sm:$0xff] %v4229_v7  ;;  %v483_v11 = vadd.f32 %v4173_v31, %v7182_v61  ;;  %v550_v20 = vmul.f32 %v4206_v57, %v4183_v43  ;;  %v4258_v21 = vadd.f32 %v4171_v29, %v4187_v45  ;;  %v682_v23 = vmul.f32 %v4245_v15, %v4183_v43 }
  0xe1   : > { %593 = vrot.lane.b32.xlu0 %v583_v53, %s3951_s11  ;;  %527 = vrot.lane.b32.xlu1 %v517_v58, %s3952_s12  ;;  %v484_v12 = vadd.f32 %v459_v4, %v7181_v62  ;;  %v486_v13 = vadd.f32 %v4171_v29, %v7180_v63  ;;  %v614_v24 = vmul.f32 %v4210_v59, %v4181_v40  ;;  %v7183_v25 = vmax.f32 %v4229_v7, 0.0 }
  0xe2   : > { %v487_v26 = vsel %vm469_vm2, %v483_v11, -inf  ;;  %v1625_v29 = vsel %vm7203_vm6, %v4232_v8, -inf  ;;  %v1623_v32 = vsel %vm1622_vm5, %v4249_v18, -inf  ;;  %v1626_v34 = vsel %vm7203_vm6, %v4252_v19, -inf }
  0xe3   : > { %v488_v27 = vsel %vm471_vm3, %v484_v12, -inf  ;;  %v490_v28 = vsel %vm474_vm4, %v486_v13, -inf  ;;  %v485_v30 = vadd.f32 %v460_v6, %v7183_v25  ;;  %v1628_v35 = vsel %vm1627_vm8, %v4258_v21, -inf }
  0xe4   : > { %v491_v31 = vmax.f32 %v487_v26, %v488_v27  ;;  %v1629_v38 = vmax.f32 %v1623_v32, %v1625_v29  ;;  %v3142_v39 = vsel %vm3141_vm7, %v4249_v18, -inf  ;;  %v3144_v41 = vsel %vm7331_vm9, %v4232_v8, -inf }
  0xe5   : > { %626 = vrot.lane.b32.xlu0 %v616_v0, %s7268_s13  ;;  %556 = vrot.lane.b32.xlu1 %v548_v3, %s3954_s14  ;;  %v489_v46 = vsel %vm471_vm3, %v485_v30, -inf  ;;  %v1630_v47 = vmax.f32 %v1626_v34, %v1628_v35  ;;  %v3145_v48 = vsel %vm7331_vm9, %v4252_v19, -inf  ;;  %v3147_v49 = vsel %vm3146_vm10, %v4258_v21, -inf }
  0xe6   : > { %v715_v50 = vmul.f32 %v4261_v22, %v4183_v43  ;;  %v492_v51 = vmax.f32 %v489_v46, %v490_v28  ;;  %v3148_v52 = vmax.f32 %v3142_v39, %v3144_v41  ;;  %v3149_v53 = vmax.f32 %v3145_v48, %v3147_v49  ;;  %v4383_v49 = vpop.permute.xlu1 %792 }
  0xe7   : > { %v647_v58 = vmul.f32 %v4223_v5, %v4181_v40  ;;  %v4297_v60 = vmax.f32 %v1629_v38, %v1630_v47  ;;  %v4299_v0 = vrot.slane %v743_v42, 6  ;;  %v680_v11 = vmul.f32 %v4245_v15, %v4181_v40 }
  0xe8   : > { %v4302_v3 = vmax.f32 %v491_v31, %v492_v51  ;;  %v4304_v4 = vmax.f32 %v3148_v52, %v3149_v53  ;;  %v549_v12 = vmul.f32 %v4206_v57, %v4185_v44  ;;  %v713_v13 = vmul.f32 %v4261_v22, %v4181_v40 }
  0xe9   : > { %659 = vrot.lane.b32.xlu0 %v649_v14, %s3955_s15  ;;  %560 = vrot.lane.b32.xlu1 %v550_v20, %s3954_s14  ;;  %7345 = vst [vmem:[#allocation12_spill] sm:$0xff] %v4297_v60  ;;  %v748_v6 = vmul.f32 %v4299_v0, %v4183_v43  ;;  %v551_v14 = vmul.f32 %v4206_v57, %v4187_v45  ;;  %v475_v27 = vsel %vm474_vm4, %v4258_v21, -inf  ;;  %v473_v29 = vsel %vm471_vm3, %v4252_v19, -inf }
  0xea   : > { %7346 = vst [vmem:[#allocation13_spill] sm:$0xff] %v4304_v4  ;;  %v746_v17 = vmul.f32 %v4299_v0, %v4181_v40  ;;  %v516_v20 = vmul.f32 %v4177_v36, %v4185_v44  ;;  %v582_v57 = vmul.f32 %v4179_v37, %v4185_v44  ;;  %v615_v26 = vmul.f32 %v4210_v59, %v4185_v44 }
  0xeb   : > { %v617_v28 = vmul.f32 %v4210_v59, %v4187_v45  ;;  %v477_v31 = vmax.f32 %v473_v29, %v475_v27  ;;  %v781_v32 = vsel %vm780_vm13, %v4232_v8, -inf  ;;  %v784_v34 = vsel %vm783_vm11, %v4258_v21, -inf }
  0xec   : > { %v648_v59 = vmul.f32 %v4223_v5, %v4185_v44  ;;  %v779_v35 = vsel %vm778_vm12, %v4249_v18, -inf  ;;  %v782_v38 = vsel %vm780_vm13, %v4252_v19, -inf  ;;  %v650_v46 = vmul.f32 %v4223_v5, %v4187_v45 }
  0xed   : > { %692 = vrot.lane.b32.xlu0 %v682_v23, %s3956_s16  ;;  %622 = vrot.lane.b32.xlu1 %v614_v24, %s7268_s13  ;;  %v518_v23 = vmul.f32 %v4177_v36, %v4187_v45  ;;  %v584_v24 = vmul.f32 %v4179_v37, %v4187_v45  ;;  %v472_v36 = vsel %vm471_vm3, %v4232_v8, -inf  ;;  %v470_v37 = vsel %vm469_vm2, %v4249_v18, -inf }
  0xee   : > { %v476_v30 = vmax.f32 %v470_v37, %v472_v36  ;;  %v785_v41 = vmax.f32 %v779_v35, %v781_v32  ;;  %v786_v42 = vmax.f32 %v782_v38, %v784_v34  ;;  %v681_v21 = vmul.f32 %v4245_v15, %v4185_v44 }
  0xef   : > { %v683_v18 = vmul.f32 %v4245_v15, %v4187_v45  ;;  %v714_v19 = vmul.f32 %v4261_v22, %v4185_v44  ;;  %v716_v5 = vmul.f32 %v4261_v22, %v4187_v45  ;;  %v747_v47 = vmul.f32 %v4299_v0, %v4185_v44  ;;  %v4385_v22 = vpop.permute.xlu1 %794 }
  0xf0   : > { %v478_v39 = vmax.f32 %v476_v30, %v477_v31  ;;  %v787_v8 = vmax.f32 %v785_v41, %v786_v42  ;;  %v749_v15 = vmul.f32 %v4299_v0, %v4187_v45  ;;  %v3959_v48 = vmov 12  }
  0xf1   : > { %725 = vrot.lane.b32.xlu0 %v715_v50, %s3957_s17  ;;  %655 = vrot.lane.b32.xlu1 %v647_v58, %s3955_s15  ;;  %v3966_v4 = vmov 17   ;;  %vm531_vm2 = vcmask 1039360   ;;  %v3989_v60 = vmov 42   ;;  %vm564_vm3 = vcmask 1031168  }
  0xf2   : > { %vm597_vm4 = vcmask 850944   ;;  %vm7329_vm5 = vcmask 842752   ;;  %vm663_vm7 = vcmask 834560   ;;  %vm696_vm8 = vcmask 654336  }
  0xf3   : > { %v4387_v50 = vpop.permute.xlu1 %796  ;;  %vm729_vm10 = vcmask 646144   ;;  %vm762_vm11 = vcmask 637952   ;;  %vm798_vm12 = vcmask 408576   ;;  %vm809_vm6 = vcmask 1043858  }
  0xf4   : > { %vm7335_vm9 = vcmask 228352  }
  0xf5   : > { %758 = vrot.lane.b32.xlu0 %v748_v6, %s3958_s18  ;;  %688 = vrot.lane.b32.xlu1 %v680_v11, %s3956_s16 }
  0xf9   : > { %558 = vrot.lane.b32.xlu0 %v549_v12, %s3954_s14  ;;  %721 = vrot.lane.b32.xlu1 %v713_v13, %s3957_s17 }
  0xfd   : > { %562 = vrot.lane.b32.xlu0 %v551_v14, %s3954_s14  ;;  %754 = vrot.lane.b32.xlu1 %v746_v17, %s3958_s18 }
 0x101   : > { %525 = vrot.lane.b32.xlu1 %v516_v20, %s3952_s12 }
 0x105   : > { %529 = vrot.lane.b32.xlu1 %v518_v23, %s3952_s12 }
 0x109   : > { %591 = vrot.lane.b32.xlu1 %v582_v57, %s3951_s11 }
 0x10d   : > { %595 = vrot.lane.b32.xlu1 %v584_v24, %s3951_s11 }
 0x111   : > { %624 = vrot.lane.b32.xlu1 %v615_v26, %s7268_s13 }
 0x115   : > { %628 = vrot.lane.b32.xlu1 %v617_v28, %s7268_s13 }
 0x119   : > { %657 = vrot.lane.b32.xlu1 %v648_v59, %s3955_s15 }
 0x11c   : > { %479 = vmax.xlane.f32.xlu0 %v478_v39 }
 0x11d   : > { %661 = vrot.lane.b32.xlu1 %v650_v46, %s3955_s15 }
 0x120   : > { %788 = vmax.xlane.f32.xlu0 %v787_v8 }
 0x121   : > { %690 = vrot.lane.b32.xlu1 %v681_v21, %s3956_s16 }
 0x125   : > { %694 = vrot.lane.b32.xlu1 %v683_v18, %s3956_s16 }
 0x129   : > { %723 = vrot.lane.b32.xlu1 %v714_v19, %s3957_s17 }
 0x12d   : > { %727 = vrot.lane.b32.xlu1 %v716_v5, %s3957_s17 }
 0x131   : > { %756 = vrot.lane.b32.xlu1 %v747_v47, %s3958_s18 }
 0x135   : > { %760 = vrot.lane.b32.xlu1 %v749_v15, %s3958_s18 }
 0x136   : > { %822 = vperm.xlu0 %3836, %v4120_v2  }
 0x139   : > { %835 = vperm.xlu1 %3837, %v4120_v2  }
 0x13a   : > { %3838 = vset.pattern.permute.xlu0 %v3959_v48 }
 0x14f   : > { %v4389_v51 = vpop.permute.xlu1 %523  ;;  %v4407_v14 = vpop.permute.xlu0 %589 }
 0x153   : > { %v4391_v52 = vpop.permute.xlu1 %527  ;;  %v4411_v20 = vpop.permute.xlu0 %593 }
 0x157   : > { %v4393_v53 = vpop.permute.xlu1 %556  ;;  %v4417_v24 = vpop.permute.xlu0 %626 }
 0x15b   : > { %v4395_v58 = vpop.permute.xlu1 %560  ;;  %v4421_v36 = vpop.permute.xlu0 %659 }
 0x15f   : > { %v4397_v0 = vpop.permute.xlu1 %622  ;;  %v4427_v37 = vpop.permute.xlu0 %692 }
 0x163   : > { %v4399_v6 = vpop.permute.xlu1 %655  ;;  %v4431_v30 = vpop.permute.xlu0 %725 }
 0x167   : > { %v4401_v11 = vpop.permute.xlu1 %688  ;;  %v4437_v34 = vpop.permute.xlu0 %758 }
 0x16b   : > { %v4403_v12 = vpop.permute.xlu1 %721  ;;  %v4441_v35 = vpop.permute.xlu0 %558 }
 0x16f   : > { %v4405_v13 = vpop.permute.xlu1 %754  ;;  %v4445_v39 = vpop.permute.xlu0 %562 }
 0x173   : > { %v4409_v17 = vpop.permute.xlu1 %525 }
 0x177   : > { %v4413_v23 = vpop.permute.xlu1 %529 }
 0x17b   : > { %v4415_v57 = vpop.permute.xlu1 %591 }
 0x17f   : > { %v4419_v26 = vpop.permute.xlu1 %595 }
 0x183   : > { %v4423_v27 = vpop.permute.xlu1 %624 }
 0x187   : > { %v4425_v28 = vpop.permute.xlu1 %628 }
 0x18b   : > { %v4429_v29 = vpop.permute.xlu1 %657 }
 0x18f   : > { %v4433_v31 = vpop.permute.xlu1 %661 }
 0x193   : > { %v4435_v32 = vpop.permute.xlu1 %690 }
 0x197   : > { %v4439_v59 = vpop.permute.xlu1 %694 }
 0x19b   : > { %v4443_v38 = vpop.permute.xlu1 %723 }
 0x19f   : > { %v4447_v41 = vpop.permute.xlu1 %727 }
 0x1a3   : > { %v4451_v8 = vpop.permute.xlu1 %756 }
 0x1a5   : > { %v480_v42 = vpop.xlane.xlu0 %479 }
 0x1a6   : > { %482 = vst.msk [vmem:[#allocation2] sm:$0x3] %vm481_vm14, %v480_v42  ;;  %v3960_v42 = vmov 13  }
 0x1a7   : > { %v4453_v21 = vpop.permute.xlu1 %760 }
 0x1a9   : > { %v789_v46 = vpop.xlane.xlu0 %788 }
 0x1aa   : > { %791 = vst.msk [vmem:[#allocation2 + $0x2] sm:$0xc] %vm790_vm15, %v789_v46 }
 0x1b1   : > { %v4464_v46 = vpop.permute.xlu0 %822 }
 0x1b4   : > { %v836_v18 = vpop.permute.xlu1 %835 }
 0x1b5   : > { %v837_v19 = vrot.slane %v836_v18, 4 }
 0x1b7   : > { %v839_v5 = vmul.f32 %v837_v19, %v4181_v40  ;;  %v841_v47 = vmul.f32 %v837_v19, %v4183_v43  ;;  %v840_v15 = vmul.f32 %v837_v19, %v4185_v44  ;;  %v842_v48 = vmul.f32 %v837_v19, %v4187_v45 }
 0x1b9   : > { %847 = vrot.lane.b32.xlu1 %v839_v5, %s3952_s12  ;;  %851 = vrot.lane.b32.xlu0 %v841_v47, %s3952_s12 }
 0x1bd   : > { %849 = vrot.lane.b32.xlu1 %v840_v15, %s3952_s12  ;;  %867 = vperm.xlu0 %3838, %v4120_v2  }
 0x1c1   : > { %853 = vrot.lane.b32.xlu1 %v842_v48, %s3952_s12  ;;  %3839 = vset.pattern.permute.xlu0 %v3960_v42  ;;  %v3961_v48 = vmov 14  }
 0x22b   : > { %v4466_v18 = vpop.permute.xlu0 %851 }
 0x238   : > { %v868_v63 = vpop.permute.xlu0 %867 }
 0x239   : > { %v869_v5 = vrot.slane %v868_v63, 4 }
 0x23b   : > { %v873_v47 = vmul.f32 %v869_v5, %v4183_v43  ;;  %v871_v62 = vmul.f32 %v869_v5, %v4181_v40  ;;  %v872_v19 = vmul.f32 %v869_v5, %v4185_v44  ;;  %v874_v15 = vmul.f32 %v869_v5, %v4187_v45 }
 0x23d   : > { %883 = vrot.lane.b32.xlu0 %v873_v47, %s3954_s14  ;;  %879 = vrot.lane.b32.xlu1 %v871_v62, %s3954_s14 }
 0x241   : > { %899 = vperm.xlu0 %3839, %v4120_v2   ;;  %881 = vrot.lane.b32.xlu1 %v872_v19, %s3954_s14 }
 0x245   : > { %885 = vrot.lane.b32.xlu1 %v874_v15, %s3954_s14  ;;  %3840 = vset.pattern.permute.xlu0 %v3961_v48  ;;  %v3963_v15 = vmov 15  }
 0x2af   : > { %v4477_v63 = vpop.permute.xlu0 %883 }
 0x2bc   : > { %v900_v42 = vpop.permute.xlu0 %899 }
 0x2bd   : > { %v901_v61 = vrot.slane %v900_v42, 4 }
 0x2bf   : > { %v905_v47 = vmul.f32 %v901_v61, %v4183_v43  ;;  %v903_v62 = vmul.f32 %v901_v61, %v4181_v40  ;;  %v904_v19 = vmul.f32 %v901_v61, %v4185_v44  ;;  %v906_v5 = vmul.f32 %v901_v61, %v4187_v45  ;;  %v4495_v61 = vpop.permute.xlu1 %847 }
 0x2c1   : > { %915 = vrot.lane.b32.xlu0 %v905_v47, %s3962_s19  ;;  %911 = vrot.lane.b32.xlu1 %v903_v62, %s3962_s19 }
 0x2c5   : > { %932 = vperm.xlu0 %3840, %v4120_v2   ;;  %913 = vrot.lane.b32.xlu1 %v904_v19, %s3962_s19 }
 0x2c9   : > { %917 = vrot.lane.b32.xlu1 %v906_v5, %s3962_s19  ;;  %3841 = vset.pattern.permute.xlu0 %v3963_v15  ;;  %v4501_v5 = vpop.permute.xlu1 %849  ;;  %v3965_v15 = vmov 16  }
 0x2ed   : > { %494 = vmax.xlane.f32.xlu1 %v4302_v3 }
 0x333   : > { %v4489_v48 = vpop.permute.xlu0 %915 }
 0x334   : > { %7347 = vst [vmem:[#allocation14_spill] sm:$0xff] %v4489_v48 }
 0x340   : > { %v933_v42 = vpop.permute.xlu0 %932 }
 0x341   : > { %v934_v47 = vrot.slane %v933_v42, 4  ;;  %v4504_v42 = vpop.permute.xlu1 %853 }
 0x343   : > { %v938_v62 = vmul.f32 %v934_v47, %v4183_v43  ;;  %v936_v25 = vmul.f32 %v934_v47, %v4181_v40  ;;  %v937_v19 = vmul.f32 %v934_v47, %v4185_v44  ;;  %v939_v3 = vmul.f32 %v934_v47, %v4187_v45 }
 0x345   : > { %948 = vrot.lane.b32.xlu0 %v938_v62, %s3964_s20  ;;  %944 = vrot.lane.b32.xlu1 %v936_v25, %s3964_s20  ;;  %v4506_v62 = vpop.permute.xlu1 %879 }
 0x349   : > { %965 = vperm.xlu0 %3841, %v4120_v2   ;;  %946 = vrot.lane.b32.xlu1 %v937_v19, %s3964_s20  ;;  %v4508_v25 = vpop.permute.xlu1 %881 }
 0x34d   : > { %950 = vrot.lane.b32.xlu1 %v939_v3, %s3964_s20  ;;  %3842 = vset.pattern.permute.xlu0 %v3965_v15  ;;  %v4510_v1 = vpop.permute.xlu1 %885 }
 0x351   : > { %v4512_v56 = vpop.permute.xlu1 %911 }
 0x352   : > { %7348 = vst [vmem:[#allocation15_spill] sm:$0xff] %v4512_v56 }
 0x355   : > { %v4514_v55 = vpop.permute.xlu1 %913 }
 0x356   : > { %7349 = vst [vmem:[#allocation16_spill] sm:$0xff] %v4514_v55 }
 0x359   : > { %v4516_v19 = vpop.permute.xlu1 %917 }
 0x35a   : > { %7350 = vst [vmem:[#allocation17_spill] sm:$0xff] %v4516_v19 }
 0x376   : > { %v495_v47 = vpop.xlane.xlu1 %494 }
 0x377   : > { %496 = vst.msk [vmem:[#allocation2 + $0x2] sm:$0x3] %vm481_vm14, %v495_v47  ;;  %vm813_vm14 = vcmask 404482  }
 0x3b7   : > { %v4519_v3 = vpop.permute.xlu0 %948 }
 0x3b8   : > { %7351 = vst [vmem:[#allocation18_spill] sm:$0xff] %v4519_v3 }
 0x3c4   : > { %v966_v15 = vpop.permute.xlu0 %965 }
 0x3c5   : > { %v967_v54 = vrot.slane %v966_v15, 4 }
 0x3c7   : > { %v971_v7 = vmul.f32 %v967_v54, %v4183_v43  ;;  %v969_v16 = vmul.f32 %v967_v54, %v4181_v40  ;;  %v970_v9 = vmul.f32 %v967_v54, %v4185_v44  ;;  %v972_v47 = vmul.f32 %v967_v54, %v4187_v45 }
 0x3c9   : > { %981 = vrot.lane.b32.xlu0 %v971_v7, %s3951_s11  ;;  %977 = vrot.lane.b32.xlu1 %v969_v16, %s3951_s11 }
 0x3cd   : > { %997 = vperm.xlu0 %3842, %v4120_v2   ;;  %979 = vrot.lane.b32.xlu1 %v970_v9, %s3951_s11 }
 0x3d1   : > { %983 = vrot.lane.b32.xlu1 %v972_v47, %s3951_s11  ;;  %3843 = vset.pattern.permute.xlu0 %v3966_v4  ;;  %v3967_v4 = vmov 18  }
 0x43b   : > { %v4530_v15 = vpop.permute.xlu0 %981 }
 0x43c   : > { %7352 = vst [vmem:[#allocation19_spill] sm:$0xff] %v4530_v15 }
 0x448   : > { %v998_v3 = vpop.permute.xlu0 %997 }
 0x449   : > { %v999_v19 = vrot.slane %v998_v3, 4 }
 0x44b   : > { %v1003_v7 = vmul.f32 %v999_v19, %v4183_v43  ;;  %v1001_v16 = vmul.f32 %v999_v19, %v4181_v40  ;;  %v1002_v9 = vmul.f32 %v999_v19, %v4185_v44  ;;  %v1004_v54 = vmul.f32 %v999_v19, %v4187_v45 }
 0x44d   : > { %1013 = vrot.lane.b32.xlu0 %v1003_v7, %s7268_s13  ;;  %1009 = vrot.lane.b32.xlu1 %v1001_v16, %s7268_s13 }
 0x451   : > { %1029 = vperm.xlu0 %3843, %v4120_v2   ;;  %1011 = vrot.lane.b32.xlu1 %v1002_v9, %s7268_s13 }
 0x455   : > { %1015 = vrot.lane.b32.xlu1 %v1004_v54, %s7268_s13  ;;  %3844 = vset.pattern.permute.xlu0 %v3967_v4  ;;  %v3968_v54 = vmov 19  }
 0x4bf   : > { %v4541_v3 = vpop.permute.xlu0 %1013 }
 0x4c0   : > { %7353 = vst [vmem:[#allocation20_spill] sm:$0xff] %v4541_v3 }
 0x4cc   : > { %v1030_v47 = vpop.permute.xlu0 %1029 }
 0x4cd   : > { %v1031_v15 = vrot.slane %v1030_v47, 4 }
 0x4cf   : > { %v1035_v7 = vmul.f32 %v1031_v15, %v4183_v43  ;;  %v1033_v16 = vmul.f32 %v1031_v15, %v4181_v40  ;;  %v1034_v9 = vmul.f32 %v1031_v15, %v4185_v44  ;;  %v1036_v19 = vmul.f32 %v1031_v15, %v4187_v45 }
 0x4d1   : > { %1045 = vrot.lane.b32.xlu0 %v1035_v7, %s3955_s15  ;;  %1041 = vrot.lane.b32.xlu1 %v1033_v16, %s3955_s15 }
 0x4d5   : > { %1061 = vperm.xlu0 %3844, %v4120_v2   ;;  %1043 = vrot.lane.b32.xlu1 %v1034_v9, %s3955_s15 }
 0x4d9   : > { %1047 = vrot.lane.b32.xlu1 %v1036_v19, %s3955_s15  ;;  %3845 = vset.pattern.permute.xlu0 %v3968_v54  ;;  %v3970_v19 = vmov 20  }
 0x543   : > { %v4552_v4 = vpop.permute.xlu0 %1045 }
 0x544   : > { %7354 = vst [vmem:[#allocation21_spill] sm:$0xff] %v4552_v4 }
 0x550   : > { %v1062_v47 = vpop.permute.xlu0 %1061 }
 0x551   : > { %v1063_v3 = vrot.slane %v1062_v47, 4 }
 0x553   : > { %v1067_v7 = vmul.f32 %v1063_v3, %v4183_v43  ;;  %v1065_v16 = vmul.f32 %v1063_v3, %v4181_v40  ;;  %v1066_v9 = vmul.f32 %v1063_v3, %v4185_v44  ;;  %v1068_v15 = vmul.f32 %v1063_v3, %v4187_v45 }
 0x555   : > { %1077 = vrot.lane.b32.xlu0 %v1067_v7, %s3969_s23  ;;  %1073 = vrot.lane.b32.xlu1 %v1065_v16, %s3969_s23 }
 0x559   : > { %1094 = vperm.xlu0 %3845, %v4120_v2   ;;  %1075 = vrot.lane.b32.xlu1 %v1066_v9, %s3969_s23 }
 0x55d   : > { %1079 = vrot.lane.b32.xlu1 %v1068_v15, %s3969_s23  ;;  %3846 = vset.pattern.permute.xlu0 %v3970_v19  ;;  %v3972_v15 = vmov 36   ;;  %v3973_v19 = vmov 37  }
 0x55e   : > { %3847 = vset.pattern.permute.xlu1 %v3972_v15  ;;  %v3980_v15 = vmov 58  }
 0x5c7   : > { %v4563_v54 = vpop.permute.xlu0 %1077 }
 0x5c8   : > { %7355 = vst [vmem:[#allocation22_spill] sm:$0xff] %v4563_v54 }
 0x5d4   : > { %v1095_v47 = vpop.permute.xlu0 %1094 }
 0x5d5   : > { %v1096_v4 = vrot.slane %v1095_v47, 4  ;;  %v3974_v47 = vmov 40  }
 0x5d7   : > { %v1100_v7 = vmul.f32 %v1096_v4, %v4183_v43  ;;  %v1098_v16 = vmul.f32 %v1096_v4, %v4181_v40  ;;  %v1099_v9 = vmul.f32 %v1096_v4, %v4185_v44  ;;  %v1101_v3 = vmul.f32 %v1096_v4, %v4187_v45 }
 0x5d8   : > { %v3977_v4 = vmov 49  }
 0x5d9   : > { %1110 = vrot.lane.b32.xlu0 %v1100_v7, %s3971_s24  ;;  %1106 = vrot.lane.b32.xlu1 %v1098_v16, %s3971_s24  ;;  %v3975_v7 = vmov 43   ;;  %v3976_v16 = vmov 46  }
 0x5dd   : > { %1127 = vperm.xlu0 %3846, %v4120_v2   ;;  %1108 = vrot.lane.b32.xlu1 %v1099_v9, %s3971_s24  ;;  %v3978_v9 = vmov 52  }
 0x5e1   : > { %3848 = vset.pattern.permute.xlu0 %v3973_v19  ;;  %1112 = vrot.lane.b32.xlu1 %v1101_v3, %s3971_s24  ;;  %v3979_v3 = vmov 55   ;;  %v3981_v19 = vmov 61  }
 0x5e2   : > { %1707 = vperm.xlu0 %3848, %v4120_v2  }
 0x5e6   : > { %3851 = vset.pattern.permute.xlu0 %v3974_v47  ;;  %v3982_v47 = vmov 64  }
 0x5e7   : > { %1797 = vperm.xlu0 %3851, %v4120_v2  }
 0x5eb   : > { %3854 = vset.pattern.permute.xlu0 %v3975_v7  ;;  %v3983_v7 = vmov 66  }
 0x5ec   : > { %1889 = vperm.xlu0 %3854, %v4120_v2  }
 0x5f0   : > { %3857 = vset.pattern.permute.xlu0 %v3976_v16  ;;  %v3984_v16 = vmov 69  }
 0x5f1   : > { %1979 = vperm.xlu0 %3857, %v4120_v2  }
 0x5f5   : > { %3860 = vset.pattern.permute.xlu0 %v3977_v4 }
 0x5f6   : > { %2071 = vperm.xlu0 %3860, %v4120_v2  }
 0x5fa   : > { %3863 = vset.pattern.permute.xlu0 %v3978_v9 }
 0x5fb   : > { %2161 = vperm.xlu0 %3863, %v4120_v2  }
 0x5ff   : > { %3866 = vset.pattern.permute.xlu0 %v3979_v3 }
 0x600   : > { %2251 = vperm.xlu0 %3866, %v4120_v2  }
 0x604   : > { %3869 = vset.pattern.permute.xlu0 %v3980_v15 }
 0x605   : > { %2342 = vperm.xlu0 %3869, %v4120_v2  }
 0x609   : > { %3872 = vset.pattern.permute.xlu0 %v3981_v19  ;;  %v3985_v19 = vmov 70  }
 0x60a   : > { %2432 = vperm.xlu0 %3872, %v4120_v2  }
 0x60e   : > { %3875 = vset.pattern.permute.xlu0 %v3982_v47  ;;  %v3986_v47 = vmov 38  }
 0x60f   : > { %2523 = vperm.xlu0 %3875, %v4120_v2  }
 0x613   : > { %3878 = vset.pattern.permute.xlu0 %v3983_v7  ;;  %v3987_v7 = vmov 39  }
 0x614   : > { %2583 = vperm.xlu0 %3878, %v4120_v2  }
 0x618   : > { %3881 = vset.pattern.permute.xlu0 %v3984_v16  ;;  %v3988_v16 = vmov 41  }
 0x619   : > { %2674 = vperm.xlu0 %3881, %v4120_v2  }
 0x61d   : > { %3883 = vset.pattern.permute.xlu0 %v3985_v19 }
 0x64b   : > { %v4586_v4 = vpop.permute.xlu0 %1110 }
 0x64c   : > { %7356 = vst [vmem:[#allocation23_spill] sm:$0xff] %v4586_v4 }
 0x658   : > { %v1128_v9 = vpop.permute.xlu0 %1127 }
 0x659   : > { %v4588_v3 = vrot.slane %v1128_v9, 4  ;;  %v500_v9 = vrot.slane %v4175_v33, 6 }
 0x65b   : > { %v1131_v15 = vmul.f32 %v4588_v3, %v4181_v40  ;;  %v504_v19 = vmul.f32 %v500_v9, %v4183_v43  ;;  %v502_v33 = vmul.f32 %v500_v9, %v4181_v40  ;;  %v503_v4 = vmul.f32 %v500_v9, %v4185_v44 }
 0x65d   : > { %1139 = vrot.lane.b32.xlu1 %v1131_v15, %s3956_s16  ;;  %v534_v15 = vsel %vm531_vm2, %v4391_v52, %v4413_v23 }
 0x65e   : > { %v541_v54 = vadd.f32 %v534_v15, %v504_v19  ;;  %v599_v15 = vsel %vm597_vm4, %v4415_v57, %v4411_v20 }
 0x661   : > { %1677 = vperm.xlu1 %3847, %v4120_v2  }
 0x665   : > { %3849 = vset.pattern.permute.xlu1 %v3986_v47  ;;  %v505_v47 = vmul.f32 %v500_v9, %v4187_v45  ;;  %v598_v9 = vsel %vm597_vm4, %v4407_v14, %v4415_v57  ;;  %v632_v14 = vsel %vm7329_vm5, %v4423_v27, %v4417_v24 }
 0x666   : > { %1737 = vperm.xlu1 %3849, %v4120_v2  }
 0x667   : > { %v542_v48 = vadd.f32 %v4413_v23, %v505_v47 }
 0x669   : > { %v575_v23 = vadd.f32 %v4445_v39, %v542_v48 }
 0x66a   : > { %3850 = vset.pattern.permute.xlu1 %v3987_v7  ;;  %v532_v7 = vsel %vm531_vm2, %v4389_v51, %v4409_v17  ;;  %v567_v51 = vsel %vm564_vm3, %v4395_v58, %v4445_v39  ;;  %v3990_v39 = vmov 44  }
 0x66b   : > { %1767 = vperm.xlu1 %3850, %v4120_v2   ;;  %v539_v56 = vadd.f32 %v532_v7, %v502_v33  ;;  %v608_v47 = vadd.f32 %v4419_v26, %v575_v23 }
 0x66f   : > { %3852 = vset.pattern.permute.xlu1 %v3988_v16  ;;  %v533_v16 = vsel %vm531_vm2, %v4409_v17, %v4391_v52  ;;  %v600_v52 = vsel %vm597_vm4, %v4411_v20, %v4419_v26  ;;  %v565_v17 = vsel %vm564_vm3, %v4393_v53, %v4441_v35  ;;  %v633_v53 = vsel %vm7329_vm5, %v4417_v24, %v4425_v28 }
 0x670   : > { %1828 = vperm.xlu1 %3852, %v4120_v2   ;;  %v540_v55 = vadd.f32 %v533_v16, %v503_v4  ;;  %v566_v4 = vsel %vm564_vm3, %v4441_v35, %v4395_v58  ;;  %v572_v48 = vadd.f32 %v565_v17, %v539_v56  ;;  %v631_v58 = vsel %vm7329_vm5, %v4397_v0, %v4423_v27 }
 0x671   : > { %v666_v20 = vsel %vm663_vm7, %v4421_v36, %v4433_v31  ;;  %v664_v26 = vsel %vm663_vm7, %v4399_v6, %v4429_v29  ;;  %v665_v0 = vsel %vm663_vm7, %v4429_v29, %v4421_v36  ;;  %v699_v24 = vsel %vm696_vm8, %v4427_v37, %v4439_v59 }
 0x672   : > { %v605_v57 = vadd.f32 %v598_v9, %v572_v48  ;;  %v697_v6 = vsel %vm696_vm8, %v4401_v11, %v4435_v32  ;;  %v698_v36 = vsel %vm696_vm8, %v4435_v32, %v4427_v37  ;;  %v731_v11 = vsel %vm729_vm10, %v4443_v38, %v4431_v30 }
 0x673   : > { %v765_v37 = vsel %vm762_vm11, %v4437_v34, %v4453_v21 }
 0x674   : > { %3853 = vset.pattern.permute.xlu1 %v3989_v60  ;;  %v574_v60 = vadd.f32 %v567_v51, %v541_v54  ;;  %v573_v54 = vadd.f32 %v566_v4, %v540_v55  ;;  %v641_v55 = vadd.f32 %v4425_v28, %v608_v47  ;;  %v638_v27 = vadd.f32 %v631_v58, %v605_v57 }
 0x675   : > { %1859 = vperm.xlu1 %3853, %v4120_v2   ;;  %v4623_v2 = vpop.permute.xlu1 %944  ;;  %v732_v28 = vsel %vm729_vm10, %v4431_v30, %v4447_v41 }
 0x676   : > { %v607_v19 = vadd.f32 %v600_v52, %v574_v60  ;;  %v606_v35 = vadd.f32 %v599_v15, %v573_v54  ;;  %v674_v33 = vadd.f32 %v4433_v31, %v641_v55  ;;  %v671_v29 = vadd.f32 %v664_v26, %v638_v27 }
 0x677   : > { %v730_v60 = vsel %vm729_vm10, %v4403_v12, %v4443_v38  ;;  %v764_v12 = vsel %vm762_vm11, %v4451_v8, %v4437_v34 }
 0x678   : > { %v640_v56 = vadd.f32 %v633_v53, %v607_v19  ;;  %v639_v7 = vadd.f32 %v632_v14, %v606_v35  ;;  %v707_v31 = vadd.f32 %v4439_v59, %v674_v33  ;;  %v704_v32 = vadd.f32 %v697_v6, %v671_v29  ;;  %v3918_v6 = vld [vmem:[%s4133_s30 + $0x10] ss:$20 sps:$4 sm:$0xff]   ;;  %v3928_v29 = vld [vmem:[%s7174_s1] sm:$0xf]  ;;  %s4017_s30 = smov 122  }
 0x679   : > { %3855 = vset.pattern.permute.xlu1 %v3990_v39  ;;  %v4658_v51 = vpop.permute.xlu1 %946  ;;  %v763_v59 = vsel %vm762_vm11, %v4405_v13, %v4451_v8  ;;  %v799_v14 = vsel %vm798_vm12, %v4383_v49, %v4385_v22  ;;  %v7208_v33 = vmov 0.0  }
 0x67a   : > { %v673_v16 = vadd.f32 %v666_v20, %v640_v56  ;;  %v672_v52 = vadd.f32 %v665_v0, %v639_v7  ;;  %v740_v9 = vadd.f32 %v4447_v41, %v707_v31  ;;  %v737_v15 = vadd.f32 %v730_v60, %v704_v32  ;;  %3663 = vmatprep.subr.bf16.mxu0 %v7208_v33 }
 0x67b   : > { %3669 = vmatprep.subr.mxu1 %v7208_v33  ;;  %3664 = vmatpush3.bf16.msra.mxu0 %v3918_v6  ;;  %v3994_v31 = vmov 47   ;;  %v3996_v32 = vmov 50  }
 0x67c   : > { %v706_v17 = vadd.f32 %v699_v24, %v673_v16  ;;  %v705_v23 = vadd.f32 %v698_v36, %v672_v52  ;;  %v4689_v38 = vadd.f32 %v4453_v21, %v740_v9  ;;  %v4693_v48 = vadd.f32 %v763_v59, %v737_v15 }
 0x67d   : > { %v4691_v39 = vpop.permute.xlu1 %950  ;;  %v800_v21 = vsel %vm798_vm12, %v4385_v22, %v4387_v50  ;;  %v3998_v59 = vmov 53   ;;  %v3999_v15 = vmov 54  }
 0x67e   : > { %v739_v4 = vadd.f32 %v732_v28, %v706_v17  ;;  %v738_v53 = vadd.f32 %v731_v11, %v705_v23  ;;  %7358 = vst [vmem:[#allocation25_spill] sm:$0xff] %v4689_v38  ;;  %7359 = vst [vmem:[#allocation26_spill] sm:$0xff] %v4691_v39  ;;  %v7204_v13 = vmax.f32 %v4689_v38, 0.0  ;;  %v7207_v34 = vmax.f32 %v4693_v48, 0.0  ;;  %v4741_v28 = vld [vmem:[%s7175_s2] sm:$0x3] }
 0x67f   : > { %7360 = vst [vmem:[#allocation27_spill] sm:$0xff] %v4693_v48  ;;  %v3993_v17 = vmov 45  }
 0x680   : > { %v4686_v30 = vadd.f32 %v765_v37, %v739_v4  ;;  %v4695_v41 = vadd.f32 %v764_v12, %v738_v53  ;;  %v808_v58 = vadd.f32 %v4387_v50, %v7204_v13  ;;  %v805_v20 = vadd.f32 %v4383_v49, %v7207_v34 }
 0x681   : > { %v4699_v19 = vpop.permute.xlu1 %977  ;;  %v3995_v37 = vmov 48   ;;  %v3997_v4 = vmov 51  }
 0x682   : > { %7357 = vst [vmem:[#allocation24_spill] sm:$0xff] %v4686_v30  ;;  %7361 = vst [vmem:[#allocation28_spill] sm:$0xff] %v4695_v41  ;;  %v7206_v54 = vmax.f32 %v4686_v30, 0.0  ;;  %v7205_v8 = vmax.f32 %v4695_v41, 0.0  ;;  %v814_v55 = vsel %vm813_vm14, %v808_v58, -inf  ;;  %v810_v50 = vsel %vm809_vm6, %v805_v20, -inf }
 0x683   : > { %7362 = vst [vmem:[#allocation29_spill] sm:$0xff] %v4699_v19  ;;  %vm3992_vm6 = vmmov 0   ;;  %v4001_v58 = vmov 57   ;;  %v4002_v20 = vmov 59   ;;  %v4032_v30 = vmov 27  }
 0x684   : > { %v807_v47 = vadd.f32 %v800_v21, %v7206_v54  ;;  %v806_v57 = vadd.f32 %v799_v14, %v7205_v8  ;;  %3665 = vmatprep.mubr.msk.bf16.mxu0 %vm3992_vm6, %v7208_v33  ;;  %3673 = vmatprep.mubr.msk.f32.mxu1 %vm3992_vm6, %v7208_v33  ;;  %v4000_v21 = vmov 56   ;;  %vm1081_vm14 = vcmask 826368  }
 0x685   : > { %v4719_v35 = vpop.permute.xlu1 %979  ;;  %3666 = vmatmul.mubr.msk.bf16.vlgmr.msra.gmra.mxu0 %vm7330_vm0, %v3928_v29  ;;  %v4005_v29 = vmov 63   ;;  %vm2029_vm6 = vcmask 809984   ;;  %vm7333_vm0 = vcmask 236544  }
 0x686   : > { %7363 = vst [vmem:[#allocation30_spill] sm:$0xff] %v4719_v35  ;;  %v812_v56 = vsel %vm780_vm13, %v807_v47, -inf  ;;  %v811_v26 = vsel %vm780_vm13, %v806_v57, -inf  ;;  %v4045_v35 = vmov 33   ;;  %vm919_vm13 = vcmask 1022976  }
 0x687   : > { %v816_v0 = vmax.f32 %v812_v56, %v814_v55  ;;  %v815_v24 = vmax.f32 %v810_v50, %v811_v26  ;;  %v1708_v50 = vpop.permute.xlu0 %1707  ;;  %v4003_v26 = vmov 60  }
 0x689   : > { %v4723_v22 = vpop.permute.xlu1 %983  ;;  %v817_v27 = vmax.f32 %v815_v24, %v816_v0  ;;  %v4782_v0 = vrot.slane %v1708_v50, 2  ;;  %v4004_v24 = vmov 62   ;;  %v4011_v50 = vmov 68  }
 0x68a   : > { %7364 = vst [vmem:[#allocation31_spill] sm:$0xff] %v4723_v22  ;;  %v4039_v22 = vmov 31  }
 0x68d   : > { %v4725_v7 = vpop.permute.xlu1 %1009 }
 0x68e   : > { %7365 = vst [vmem:[#allocation32_spill] sm:$0xff] %v4725_v7  ;;  %v4035_v7 = vmov 29  }
 0x691   : > { %v4727_v49 = vpop.permute.xlu1 %1011 }
 0x692   : > { %7366 = vst [vmem:[#allocation33_spill] sm:$0xff] %v4727_v49  ;;  %v4037_v49 = vmov 79  }
 0x695   : > { %v4729_v16 = vpop.permute.xlu1 %1015 }
 0x696   : > { %7367 = vst [vmem:[#allocation34_spill] sm:$0xff] %v4729_v16 }
 0x699   : > { %818 = vmax.xlane.f32.xlu1 %v817_v27  ;;  %v4734_v36 = vpop.permute.xlu1 %1041  ;;  %v1712_v27 = vmul.f32 %v4782_v0, %v4185_v44 }
 0x69a   : > { %7368 = vst [vmem:[#allocation35_spill] sm:$0xff] %v4734_v36 }
 0x69d   : > { %v4748_v52 = vpop.permute.xlu1 %1043 }
 0x69e   : > { %7369 = vst [vmem:[#allocation36_spill] sm:$0xff] %v4748_v52 }
 0x6a1   : > { %v4751_v60 = vpop.permute.xlu1 %1047 }
 0x6a2   : > { %7370 = vst [vmem:[#allocation37_spill] sm:$0xff] %v4751_v60 }
 0x6a5   : > { %v4754_v11 = vpop.permute.xlu1 %1073 }
 0x6a6   : > { %7371 = vst [vmem:[#allocation38_spill] sm:$0xff] %v4754_v11 }
 0x6a9   : > { %v4757_v23 = vpop.permute.xlu1 %1075 }
 0x6aa   : > { %1919 = vperm.xlu1 %3855, %v4741_v28   ;;  %7372 = vst [vmem:[#allocation39_spill] sm:$0xff] %v4757_v23 }
 0x6ad   : > { %v4761_v9 = vpop.permute.xlu1 %1079 }
 0x6ae   : > { %3856 = vset.pattern.permute.xlu1 %v3993_v17  ;;  %7373 = vst [vmem:[#allocation40_spill] sm:$0xff] %v4761_v9  ;;  %v4006_v17 = vmov 22  }
 0x6af   : > { %1949 = vperm.xlu1 %3856, %v4741_v28  }
 0x6b1   : > { %v4763_v12 = vpop.permute.xlu1 %1106 }
 0x6b2   : > { %7374 = vst [vmem:[#allocation41_spill] sm:$0xff] %v4763_v12  ;;  %v4034_v12 = vmov 77  }
 0x6b3   : > { %3858 = vset.pattern.permute.xlu1 %v3994_v31 }
 0x6b4   : > { %2009 = vperm.xlu1 %3858, %v4741_v28  }
 0x6b5   : > { %v4767_v53 = vpop.permute.xlu1 %1108 }
 0x6b6   : > { %7375 = vst [vmem:[#allocation42_spill] sm:$0xff] %v4767_v53 }
 0x6b8   : > { %3859 = vset.pattern.permute.xlu1 %v3995_v37  ;;  %v4007_v37 = vmov 65  }
 0x6b9   : > { %2040 = vperm.xlu1 %3859, %v4741_v28   ;;  %v4770_v47 = vpop.permute.xlu1 %1112 }
 0x6ba   : > { %7376 = vst [vmem:[#allocation43_spill] sm:$0xff] %v4770_v47 }
 0x6bd   : > { %3861 = vset.pattern.permute.xlu1 %v3996_v32 }
 0x6be   : > { %2101 = vperm.xlu1 %3861, %v4741_v28  }
 0x6c2   : > { %3862 = vset.pattern.permute.xlu1 %v3997_v4  ;;  %v4008_v4 = vmov 72  }
 0x6c3   : > { %2131 = vperm.xlu1 %3862, %v4741_v28  }
 0x6c7   : > { %3864 = vset.pattern.permute.xlu1 %v3998_v59 }
 0x6c8   : > { %2191 = vperm.xlu1 %3864, %v4741_v28  }
 0x6cc   : > { %3865 = vset.pattern.permute.xlu1 %v3999_v15 }
 0x6cd   : > { %2221 = vperm.xlu1 %3865, %v4741_v28  }
 0x6cf   : > { %v4773_v14 = vpop.permute.xlu1 %1139 }
 0x6d0   : > { %7377 = vst [vmem:[#allocation44_spill] sm:$0xff] %v4773_v14 }
 0x6d1   : > { %3867 = vset.pattern.permute.xlu1 %v4000_v21  ;;  %v4009_v21 = vmov 35  }
 0x6d2   : > { %2282 = vperm.xlu1 %3867, %v4741_v28  }
 0x6d6   : > { %3868 = vset.pattern.permute.xlu1 %v4001_v58 }
 0x6d7   : > { %2312 = vperm.xlu1 %3868, %v4741_v28  }
 0x6db   : > { %3870 = vset.pattern.permute.xlu1 %v4002_v20  ;;  %v4010_v20 = vmov 67  }
 0x6dc   : > { %2372 = vperm.xlu1 %3870, %v4741_v28   ;;  %v1678_v57 = vpop.permute.xlu1 %1677 }
 0x6dd   : > { %v4776_v56 = vrot.slane %v1678_v57, 2 }
 0x6df   : > { %v1683_v55 = vmul.f32 %v4776_v56, %v4183_v43 }
 0x6e0   : > { %3871 = vset.pattern.permute.xlu1 %v4003_v26  ;;  %v4012_v26 = vmov 24  }
 0x6e1   : > { %2402 = vperm.xlu1 %3871, %v4741_v28   ;;  %1693 = vrot.lane.b32.xlu0 %v1683_v55, %s3952_s12  ;;  %v1738_v6 = vpop.permute.xlu1 %1737  ;;  %v1798_v55 = vpop.permute.xlu0 %1797 }
 0x6e2   : > { %v4789_v31 = vrot.slane %v1738_v6, 2 }
 0x6e4   : > { %v1741_v32 = vmul.f32 %v4789_v31, %v4181_v40  ;;  %v1743_v59 = vmul.f32 %v4789_v31, %v4183_v43 }
 0x6e5   : > { %3873 = vset.pattern.permute.xlu1 %v4004_v24  ;;  %2705 = vperm.xlu0 %3883, %v4741_v28   ;;  %v4808_v24 = vrot.slane %v1798_v55, 2  ;;  %v1711_v55 = vmul.f32 %v4782_v0, %v4181_v40 }
 0x6e6   : > { %2463 = vperm.xlu1 %3873, %v4741_v28   ;;  %v1768_v15 = vpop.permute.xlu1 %1767 }
 0x6e7   : > { %v4801_v58 = vrot.slane %v1768_v15, 2  ;;  %v1801_v6 = vmul.f32 %v4808_v24, %v4181_v40  ;;  %v1684_v15 = vmul.f32 %v4776_v56, %v4187_v45 }
 0x6e9   : > { %1721 = vrot.lane.b32.xlu0 %v1712_v27, %s3954_s14  ;;  %v1772_v57 = vmul.f32 %v4801_v58, %v4185_v44  ;;  %v1681_v27 = vmul.f32 %v4776_v56, %v4181_v40 }
 0x6ea   : > { %3874 = vset.pattern.permute.xlu1 %v4005_v29  ;;  %3884 = vset.pattern.permute.xlu0 %v4006_v17  ;;  %v4013_v29 = vmov 21   ;;  %v1682_v17 = vmul.f32 %v4776_v56, %v4185_v44  ;;  %v1713_v56 = vmul.f32 %v4782_v0, %v4183_v43 }
 0x6eb   : > { %2493 = vperm.xlu1 %3874, %v4741_v28  }
 0x6ed   : > { %1191 = vperm.xlu0 %3884, %v4741_v28  }
 0x6ef   : > { %3876 = vset.pattern.permute.xlu1 %v4007_v37  ;;  %v4015_v37 = vmov 74  }
 0x6f0   : > { %2553 = vperm.xlu1 %3876, %v4741_v28  }
 0x6f1   : > { %1749 = vrot.lane.b32.xlu0 %v1741_v32, %s3962_s19  ;;  %v1803_v32 = vmul.f32 %v4808_v24, %v4183_v43 }
 0x6f2   : > { %3887 = vset.pattern.permute.xlu0 %v4008_v4  ;;  %v1829_v4 = vpop.permute.xlu1 %1828 }
 0x6f4   : > { %3877 = vset.pattern.permute.xlu1 %v4009_v21 }
 0x6f5   : > { %1666 = vperm.xlu1 %3877, %v4741_v28   ;;  %1753 = vrot.lane.b32.xlu0 %v1743_v59, %s3962_s19  ;;  %v4824_v59 = vrot.slane %v1829_v4, 2  ;;  %v4020_v4 = vmov 23  }
 0x6f7   : > { %v1833_v21 = vmul.f32 %v4824_v59, %v4185_v44  ;;  %v1832_v54 = vmul.f32 %v4824_v59, %v4181_v40 }
 0x6f9   : > { %3879 = vset.pattern.permute.xlu1 %v4010_v20  ;;  %2767 = vperm.xlu0 %3887, %v4741_v28   ;;  %v1860_v20 = vpop.permute.xlu1 %1859 }
 0x6fa   : > { %2613 = vperm.xlu1 %3879, %v4741_v28  }
 0x6fd   : > { %1781 = vrot.lane.b32.xlu0 %v1772_v57, %s3964_s20  ;;  %v4016_v57 = vmov 71  }
 0x6fe   : > { %3880 = vset.pattern.permute.xlu1 %v4011_v50  ;;  %3888 = vset.pattern.permute.xlu0 %v4012_v26  ;;  %v4018_v50 = vmov 26   ;;  %v4836_v26 = vrot.slane %v1860_v20, 2 }
 0x6ff   : > { %2643 = vperm.xlu1 %3880, %v4741_v28  }
 0x701   : > { %1256 = vperm.xlu0 %3888, %v4741_v28  }
 0x703   : > { %1689 = vrot.lane.b32.xlu1 %v1681_v27, %s3952_s12  ;;  %v1863_v27 = vmul.f32 %v4836_v26, %v4181_v40 }
 0x704   : > { %3882 = vset.pattern.permute.xlu1 %v4013_v29  ;;  %v1865_v29 = vmul.f32 %v4836_v26, %v4183_v43 }
 0x705   : > { %1809 = vrot.lane.b32.xlu0 %v1801_v6, %s4014_s29  ;;  %v4019_v6 = vmov 76  }
 0x706   : > { %3891 = vset.pattern.permute.xlu0 %v4015_v37  ;;  %v1714_v37 = vmul.f32 %v4782_v0, %v4187_v45 }
 0x707   : > { %1691 = vrot.lane.b32.xlu1 %v1682_v17, %s3952_s12  ;;  %v1890_v17 = vpop.permute.xlu0 %1889 }
 0x709   : > { %1813 = vrot.lane.b32.xlu0 %v1803_v32, %s4014_s29  ;;  %v4852_v32 = vrot.slane %v1890_v17, 2  ;;  %v1771_v17 = vmul.f32 %v4801_v58, %v4181_v40 }
 0x70b   : > { %1159 = vperm.xlu1 %3882, %v4741_v28   ;;  %v1894_v20 = vmul.f32 %v4852_v32, %v4185_v44  ;;  %v1896_v36 = vmul.f32 %v4852_v32, %v4187_v45 }
 0x70d   : > { %2829 = vperm.xlu0 %3891, %v4741_v28  }
 0x70f   : > { %1695 = vrot.lane.b32.xlu1 %v1684_v15, %s3952_s12  ;;  %v1742_v15 = vmul.f32 %v4789_v31, %v4185_v44  ;;  %s4038_s12 = smov 76  }
 0x710   : > { %3885 = vset.pattern.permute.xlu1 %v4016_v57  ;;  %v4021_v57 = vmov 28  }
 0x711   : > { %1842 = vrot.lane.b32.xlu0 %v1833_v21, %s4017_s30 }
 0x712   : > { %3892 = vset.pattern.permute.xlu0 %v4018_v50  ;;  %v1980_v50 = vpop.permute.xlu0 %1979 }
 0x713   : > { %1719 = vrot.lane.b32.xlu1 %v1711_v55, %s3954_s14 }
 0x715   : > { %1322 = vperm.xlu0 %3892, %v4741_v28  }
 0x717   : > { %1723 = vrot.lane.b32.xlu1 %v1713_v56, %s3954_s14  ;;  %v1744_v56 = vmul.f32 %v4789_v31, %v4187_v45 }
 0x719   : > { %1871 = vrot.lane.b32.xlu0 %v1863_v27, %s3951_s11 }
 0x71a   : > { %3895 = vset.pattern.permute.xlu0 %v4019_v6 }
 0x71b   : > { %2736 = vperm.xlu1 %3885, %v4741_v28  }
 0x71d   : > { %1875 = vrot.lane.b32.xlu0 %v1865_v29, %s3951_s11  ;;  %v4022_v29 = vmov 73  }
 0x71f   : > { %1725 = vrot.lane.b32.xlu1 %v1714_v37, %s3954_s14  ;;  %v4875_v37 = vpop.permute.xlu0 %2071  ;;  %s4040_s14 = smov 74  }
 0x720   : > { %3886 = vset.pattern.permute.xlu1 %v4020_v4  ;;  %v4023_v4 = vmov 78  }
 0x721   : > { %2891 = vperm.xlu0 %3895, %v4741_v28  }
 0x722   : > { %v819_v21 = vpop.xlane.xlu1 %818 }
 0x723   : > { %820 = vst.msk [vmem:[#allocation2 + $0x4] sm:$0xc] %vm790_vm15, %v819_v21  ;;  %1751 = vrot.lane.b32.xlu1 %v1742_v15, %s3962_s19  ;;  %v1773_v21 = vmul.f32 %v4801_v58, %v4183_v43  ;;  %vm952_vm15 = vcmask 1014784  }
 0x725   : > { %1903 = vrot.lane.b32.xlu0 %v1894_v20, %s7268_s13 }
 0x726   : > { %v1920_v0 = vpop.permute.xlu1 %1919  ;;  %3896 = vset.pattern.permute.xlu0 %v4021_v57 }
 0x727   : > { %v4863_v55 = vrot.slane %v1920_v0, 2  ;;  %1223 = vperm.xlu1 %3886, %v4741_v28   ;;  %v4886_v0 = vpop.permute.xlu0 %2161 }
 0x728   : > { %v5028_v16 = vrot.slane %v4886_v0, 2 }
 0x729   : > { %1388 = vperm.xlu0 %3896, %v4741_v28   ;;  %v1923_v6 = vmul.f32 %v4863_v55, %v4181_v40  ;;  %v1925_v15 = vmul.f32 %v4863_v55, %v4183_v43 }
 0x72a   : > { %v1950_v27 = vpop.permute.xlu1 %1949 }
 0x72b   : > { %1755 = vrot.lane.b32.xlu1 %v1744_v56, %s3962_s19  ;;  %v4883_v20 = vrot.slane %v1950_v27, 2  ;;  %v1774_v27 = vmul.f32 %v4801_v58, %v4187_v45  ;;  %s4043_s19 = smov 55  }
 0x72c   : > { %3889 = vset.pattern.permute.xlu1 %v4022_v29  ;;  %v4897_v29 = vpop.permute.xlu0 %2251 }
 0x72d   : > { %1931 = vrot.lane.b32.xlu0 %v1923_v6, %s3955_s15  ;;  %v1954_v56 = vmul.f32 %v4883_v20, %v4185_v44 }
 0x72e   : > { %3899 = vset.pattern.permute.xlu0 %v4023_v4  ;;  %v4899_v4 = vrot.slane %v1980_v50, 2  ;;  %v4026_v50 = vmov 80  }
 0x72f   : > { %1779 = vrot.lane.b32.xlu1 %v1771_v17, %s3964_s20  ;;  %v2010_v31 = vpop.permute.xlu1 %2009  ;;  %v4024_v17 = vmov 30  }
 0x730   : > { %v1983_v58 = vmul.f32 %v4899_v4, %v4181_v40  ;;  %v4910_v13 = vpop.permute.xlu0 %2342  ;;  %v4923_v8 = vrot.slane %v2010_v31, 2 }
 0x731   : > { %1935 = vrot.lane.b32.xlu0 %v1925_v15, %s3955_s15  ;;  %v4025_v15 = vmov 25  }
 0x733   : > { %1783 = vrot.lane.b32.xlu1 %v1773_v21, %s3964_s20  ;;  %v1802_v21 = vmul.f32 %v4808_v24, %v4185_v44 }
 0x734   : > { %v2041_v57 = vpop.permute.xlu1 %2040 }
 0x735   : > { %2953 = vperm.xlu0 %3899, %v4741_v28   ;;  %v4941_v34 = vrot.slane %v2041_v57, 2  ;;  %v1835_v57 = vmul.f32 %v4824_v59, %v4187_v45 }
 0x737   : > { %2798 = vperm.xlu1 %3889, %v4741_v28   ;;  %v2046_v38 = vmul.f32 %v4941_v34, %v4183_v43 }
 0x739   : > { %1963 = vrot.lane.b32.xlu0 %v1954_v56, %s3969_s23  ;;  %v4893_v6 = vpop.permute.xlu1 %2101 }
 0x73a   : > { %3900 = vset.pattern.permute.xlu0 %v4024_v17  ;;  %v1985_v17 = vmul.f32 %v4899_v4, %v4183_v43  ;;  %v4985_v14 = vrot.slane %v4893_v6, 2 }
 0x73b   : > { %1785 = vrot.lane.b32.xlu1 %v1774_v27, %s3964_s20  ;;  %s4044_s20 = smov 54  }
 0x73c   : > { %3890 = vset.pattern.permute.xlu1 %v4025_v15  ;;  %v1804_v15 = vmul.f32 %v4808_v24, %v4187_v45  ;;  %v2014_v24 = vmul.f32 %v4923_v8, %v4185_v44 }
 0x73d   : > { %1454 = vperm.xlu0 %3900, %v4741_v28  }
 0x73e   : > { %v4905_v56 = vpop.permute.xlu1 %2131 }
 0x73f   : > { %1811 = vrot.lane.b32.xlu1 %v1802_v21, %s4014_s29  ;;  %v4921_v21 = vpop.permute.xlu0 %2432 }
 0x741   : > { %1991 = vrot.lane.b32.xlu0 %v1983_v58, %s3971_s24 }
 0x742   : > { %3903 = vset.pattern.permute.xlu0 %v4026_v50  ;;  %v4027_v50 = vmov 75  }
 0x743   : > { %1289 = vperm.xlu1 %3890, %v4741_v28   ;;  %v4914_v27 = vpop.permute.xlu1 %2191 }
 0x745   : > { %1995 = vrot.lane.b32.xlu0 %v1985_v17, %s3971_s24  ;;  %v4934_v17 = vpop.permute.xlu0 %2523  ;;  %v5014_v23 = vpop.f32.mrf.mxu0 }
 0x747   : > { %1815 = vrot.lane.b32.xlu1 %v1804_v15, %s4014_s29  ;;  %v1834_v15 = vmul.f32 %v4824_v59, %v4183_v43  ;;  %v4966_v59 = vrot.slane %v4875_v37, 2  ;;  %v1866_v37 = vmul.f32 %v4836_v26, %v4187_v45  ;;  %s4053_s29 = smov 29  }
 0x748   : > { %v4926_v58 = vpop.permute.xlu1 %2221  ;;  %3893 = vset.pattern.permute.xlu1 %v4027_v50  ;;  %v4029_v50 = vmov 32  }
 0x749   : > { %3015 = vperm.xlu0 %3903, %v4741_v28  }
 0x74b   : > { %1840 = vrot.lane.b32.xlu1 %v1832_v54, %s4017_s30  ;;  %v4945_v54 = vpop.permute.xlu0 %2583 }
 0x74d   : > { %2023 = vrot.lane.b32.xlu0 %v2014_v24, %s4028_s8  ;;  %v4937_v31 = vpop.permute.xlu1 %2282  ;;  %v2044_v24 = vmul.f32 %v4941_v34, %v4181_v40 }
 0x74e   : > { %3904 = vset.pattern.permute.xlu0 %v4029_v50  ;;  %v4031_v50 = vmov 82  }
 0x74f   : > { %1844 = vrot.lane.b32.xlu1 %v1834_v15, %s4017_s30  ;;  %v4960_v41 = vpop.permute.xlu0 %2674 }
 0x751   : > { %1520 = vperm.xlu0 %3904, %v4741_v28  }
 0x752   : > { %v4947_v33 = vpop.permute.xlu1 %2312 }
 0x753   : > { %2860 = vperm.xlu1 %3893, %v4741_v28  }
 0x755   : > { %2052 = vrot.lane.b32.xlu0 %v2044_v24, %s4030_s9  ;;  %v1864_v24 = vmul.f32 %v4836_v26, %v4185_v44  ;;  %v2105_v26 = vmul.f32 %v4985_v14, %v4181_v40 }
 0x756   : > { %3907 = vset.pattern.permute.xlu0 %v4031_v50 }
 0x757   : > { %1846 = vrot.lane.b32.xlu1 %v1835_v57, %s4017_s30  ;;  %v4956_v15 = vpop.permute.xlu1 %2372  ;;  %v4969_v57 = vpop.permute.xlu0 %1693  ;;  %s4054_s30 = smov 28  }
 0x758   : > { %3894 = vset.pattern.permute.xlu1 %v4032_v30  ;;  %7378 = vst [vmem:[#allocation45_spill] sm:$0xff] %v4969_v57  ;;  %v2076_v30 = vmul.f32 %v4966_v59, %v4185_v44  ;;  %v5181_v19 = vrot.slane %v4956_v15, 2 }
 0x759   : > { %2056 = vrot.lane.b32.xlu0 %v2046_v38, %s4030_s9 }
 0x75a   : > { %v2376_v15 = vmul.f32 %v5181_v19, %v4181_v40 }
 0x75b   : > { %1873 = vrot.lane.b32.xlu1 %v1864_v24, %s3951_s11  ;;  %v4033_v24 = vmov 34  }
 0x75c   : > { %v4971_v50 = vpop.permute.xlu1 %2402 }
 0x75d   : > { %3077 = vperm.xlu0 %3907, %v4741_v28  }
 0x75f   : > { %1355 = vperm.xlu1 %3894, %v4741_v28  }
 0x760   : > { %v4977_v38 = vpop.permute.xlu0 %2705 }
 0x761   : > { %2085 = vrot.lane.b32.xlu0 %v2076_v30, %s3956_s16  ;;  %v4980_v48 = vpop.permute.xlu1 %2463  ;;  %v1893_v30 = vmul.f32 %v4852_v32, %v4181_v40 }
 0x762   : > { %3908 = vset.pattern.permute.xlu0 %v4033_v24  ;;  %v5005_v24 = vrot.slane %v4905_v56, 2 }
 0x763   : > { %1877 = vrot.lane.b32.xlu1 %v1866_v37, %s3951_s11  ;;  %v1895_v37 = vmul.f32 %v4852_v32, %v4183_v43  ;;  %s4036_s11 = smov 77  }
 0x764   : > { %v4988_v47 = vpop.permute.xlu0 %1721  ;;  %3897 = vset.pattern.permute.xlu1 %v4034_v12  ;;  %v7380_v12 = vmov 0   ;;  %v2135_v56 = vmul.f32 %v5005_v24, %v4181_v40 }
 0x765   : > { %7379 = vst [vmem:[#allocation46_spill] sm:$0xff] %v4988_v47  ;;  %1586 = vperm.xlu0 %3908, %v4741_v28  }
 0x766   : > { %v4993_v53 = vpop.permute.xlu1 %2493 }
 0x767   : > { %1901 = vrot.lane.b32.xlu1 %v1893_v30, %s7268_s13  ;;  %v2107_v30 = vmul.f32 %v4985_v14, %v4183_v43 }
 0x768   : > { %v4998_v6 = vpop.permute.xlu0 %1191 }
 0x769   : > { %2113 = vrot.lane.b32.xlu0 %v2105_v26, %s3957_s17  ;;  %v3667_v26 = vpop.f32.mrf.mxu0 }
 0x76a   : > { %3911 = vset.pattern.permute.xlu0 %v7380_v12 }
 0x76b   : > { %1905 = vrot.lane.b32.xlu1 %v1895_v37, %s7268_s13  ;;  %v5008_v9 = vpop.permute.xlu1 %2553  ;;  %v409_v52 = vpop.f32.mrf.mxu0 }
 0x76c   : > { %v5012_v11 = vpop.permute.xlu0 %1749  ;;  %v1924_v52 = vmul.f32 %v4863_v55, %v4185_v44 }
 0x76d   : > { %7381 = vst [vmem:[#allocation47_spill] sm:$0xff] %v5012_v11  ;;  %2117 = vrot.lane.b32.xlu0 %v2107_v30, %s3957_s17  ;;  %v2137_v30 = vmul.f32 %v5005_v24, %v4183_v43  ;;  %v3668_v26 = vpop.f32.mrf.mxu0 }
 0x76f   : > { %2922 = vperm.xlu1 %3897, %v4741_v28  }
 0x770   : > { %v5020_v60 = vpop.permute.xlu0 %1753  ;;  %v5022_v37 = vpop.permute.xlu1 %1666 }
 0x771   : > { %7382 = vst [vmem:[#allocation48_spill] sm:$0xff] %v5020_v60  ;;  %2143 = vrot.lane.b32.xlu0 %v2135_v56, %s3958_s18 }
 0x773   : > { %1907 = vrot.lane.b32.xlu1 %v1896_v36, %s7268_s13  ;;  %v2165_v36 = vmul.f32 %v5028_v16, %v4181_v40  ;;  %s4061_s13 = smov 4  }
 0x774   : > { %v5033_v11 = vpop.permute.xlu0 %2767  ;;  %3898 = vset.pattern.permute.xlu1 %v4035_v7  ;;  %v5049_v7 = vrot.slane %v4914_v27, 2 }
 0x775   : > { %2147 = vrot.lane.b32.xlu0 %v2137_v30, %s3958_s18  ;;  %v5036_v56 = vpop.permute.xlu1 %2613  ;;  %v2167_v30 = vmul.f32 %v5028_v16, %v4183_v43 }
 0x776   : > { %v2195_v27 = vmul.f32 %v5049_v7, %v4181_v40 }
 0x777   : > { %1933 = vrot.lane.b32.xlu1 %v1924_v52, %s3955_s15  ;;  %v1926_v52 = vmul.f32 %v4863_v55, %v4187_v45  ;;  %v5072_v55 = vrot.slane %v4926_v58, 2 }
 0x778   : > { %v5043_v32 = vpop.permute.xlu0 %1781 }
 0x779   : > { %7383 = vst [vmem:[#allocation49_spill] sm:$0xff] %v5043_v32  ;;  %2173 = vrot.lane.b32.xlu0 %v2165_v36, %s4036_s11  ;;  %v2225_v58 = vmul.f32 %v5072_v55, %v4181_v40 }
 0x77a   : > { %v5046_v0 = vpop.permute.xlu1 %2643 }
 0x77b   : > { %1421 = vperm.xlu1 %3898, %v4741_v28  }
 0x77c   : > { %v5054_v26 = vpop.permute.xlu0 %1256 }
 0x77d   : > { %2177 = vrot.lane.b32.xlu0 %v2167_v30, %s4036_s11  ;;  %v1953_v30 = vmul.f32 %v4883_v20, %v4181_v40 }
 0x77e   : > { %v5059_v32 = vpop.permute.xlu1 %1689 }
 0x77f   : > { %7384 = vst [vmem:[#allocation50_spill] sm:$0xff] %v5059_v32  ;;  %1937 = vrot.lane.b32.xlu1 %v1926_v52, %s3955_s15  ;;  %v2197_v52 = vmul.f32 %v5049_v7, %v4183_v43  ;;  %s4041_s15 = smov 56  }
 0x780   : > { %v5064_v36 = vpop.permute.xlu0 %1809  ;;  %3901 = vset.pattern.permute.xlu1 %v4037_v49  ;;  %v1955_v49 = vmul.f32 %v4883_v20, %v4183_v43 }
 0x781   : > { %7385 = vst [vmem:[#allocation51_spill] sm:$0xff] %v5064_v36  ;;  %2203 = vrot.lane.b32.xlu0 %v2195_v27, %s4038_s12 }
 0x782   : > { %v5069_v60 = vpop.permute.xlu1 %1691 }
 0x783   : > { %7386 = vst [vmem:[#allocation52_spill] sm:$0xff] %v5069_v60  ;;  %1961 = vrot.lane.b32.xlu1 %v1953_v30, %s3969_s23 }
 0x784   : > { %v5077_v47 = vpop.permute.xlu0 %1813 }
 0x785   : > { %7387 = vst [vmem:[#allocation53_spill] sm:$0xff] %v5077_v47  ;;  %2207 = vrot.lane.b32.xlu0 %v2197_v52, %s4038_s12  ;;  %v5093_v47 = vrot.slane %v4897_v29, 2  ;;  %v2227_v52 = vmul.f32 %v5072_v55, %v4183_v43 }
 0x786   : > { %v5082_v27 = vpop.permute.xlu1 %1159 }
 0x787   : > { %1965 = vrot.lane.b32.xlu1 %v1955_v49, %s3969_s23  ;;  %v1956_v49 = vmul.f32 %v4883_v20, %v4187_v45  ;;  %v2255_v29 = vmul.f32 %v5093_v47, %v4181_v40  ;;  %v5116_v20 = vrot.slane %v4937_v31, 2  ;;  %v1986_v31 = vmul.f32 %v4899_v4, %v4187_v45 }
 0x788   : > { %v5087_v36 = vpop.permute.xlu0 %2829 }
 0x789   : > { %2233 = vrot.lane.b32.xlu0 %v2225_v58, %s3940_s7 }
 0x78a   : > { %v5090_v30 = vpop.permute.xlu1 %1695 }
 0x78b   : > { %7388 = vst [vmem:[#allocation54_spill] sm:$0xff] %v5090_v30  ;;  %2984 = vperm.xlu1 %3901, %v4741_v28   ;;  %v4042_v30 = vmov 81  }
 0x78c   : > { %v5098_v32 = vpop.permute.xlu0 %1842 }
 0x78d   : > { %7389 = vst [vmem:[#allocation55_spill] sm:$0xff] %v5098_v32  ;;  %2237 = vrot.lane.b32.xlu0 %v2227_v52, %s3940_s7  ;;  %v1984_v52 = vmul.f32 %v4899_v4, %v4185_v44 }
 0x78e   : > { %v5103_v60 = vpop.permute.xlu1 %1719 }
 0x78f   : > { %7390 = vst [vmem:[#allocation56_spill] sm:$0xff] %v5103_v60  ;;  %1967 = vrot.lane.b32.xlu1 %v1956_v49, %s3969_s23  ;;  %v2257_v49 = vmul.f32 %v5093_v47, %v4183_v43  ;;  %s4046_s23 = smov 53  }
 0x790   : > { %v5108_v58 = vpop.permute.xlu0 %1322  ;;  %3902 = vset.pattern.permute.xlu1 %v4039_v22 }
 0x791   : > { %2263 = vrot.lane.b32.xlu0 %v2255_v29, %s4040_s14  ;;  %v2286_v29 = vmul.f32 %v5116_v20, %v4181_v40 }
 0x792   : > { %v5113_v32 = vpop.permute.xlu1 %1723 }
 0x793   : > { %7391 = vst [vmem:[#allocation57_spill] sm:$0xff] %v5113_v32  ;;  %1993 = vrot.lane.b32.xlu1 %v1984_v52, %s3971_s24 }
 0x794   : > { %v5121_v60 = vpop.permute.xlu0 %1871 }
 0x795   : > { %7392 = vst [vmem:[#allocation58_spill] sm:$0xff] %v5121_v60  ;;  %2267 = vrot.lane.b32.xlu0 %v2257_v49, %s4040_s14  ;;  %v5137_v60 = vrot.slane %v4947_v33, 2  ;;  %v2288_v49 = vmul.f32 %v5116_v20, %v4183_v43 }
 0x796   : > { %v5124_v22 = vpop.permute.xlu1 %2736 }
 0x797   : > { %1487 = vperm.xlu1 %3902, %v4741_v28   ;;  %v2316_v33 = vmul.f32 %v5137_v60, %v4181_v40 }
 0x798   : > { %v5129_v32 = vpop.permute.xlu0 %1875 }
 0x799   : > { %7393 = vst [vmem:[#allocation59_spill] sm:$0xff] %v5129_v32  ;;  %2294 = vrot.lane.b32.xlu0 %v2286_v29, %s4041_s15  ;;  %v2013_v29 = vmul.f32 %v4923_v8, %v4181_v40 }
 0x79a   : > { %v5134_v52 = vpop.permute.xlu1 %1725 }
 0x79b   : > { %7394 = vst [vmem:[#allocation60_spill] sm:$0xff] %v5134_v52  ;;  %1997 = vrot.lane.b32.xlu1 %v1986_v31, %s3971_s24  ;;  %s4048_s24 = smov 52  }
 0x79c   : > { %v5142_v57 = vpop.permute.xlu0 %2891  ;;  %3905 = vset.pattern.permute.xlu1 %v4042_v30  ;;  %v2015_v30 = vmul.f32 %v4923_v8, %v4183_v43 }
 0x79d   : > { %2298 = vrot.lane.b32.xlu0 %v2288_v49, %s4041_s15  ;;  %v5160_v49 = vrot.slane %v4910_v13, 2  ;;  %v2016_v13 = vmul.f32 %v4923_v8, %v4187_v45 }
 0x79e   : > { %v5147_v4 = vpop.permute.xlu1 %1751 }
 0x79f   : > { %7395 = vst [vmem:[#allocation61_spill] sm:$0xff] %v5147_v4  ;;  %2021 = vrot.lane.b32.xlu1 %v2013_v29, %s4028_s8  ;;  %v2318_v29 = vmul.f32 %v5137_v60, %v4183_v43 }
 0x7a0   : > { %v5152_v31 = vpop.permute.xlu0 %1903 }
 0x7a1   : > { %7396 = vst [vmem:[#allocation62_spill] sm:$0xff] %v5152_v31  ;;  %2324 = vrot.lane.b32.xlu0 %v2316_v33, %s4043_s19  ;;  %v2346_v33 = vmul.f32 %v5160_v49, %v4181_v40 }
 0x7a2   : > { %v5157_v32 = vpop.permute.xlu1 %1223 }
 0x7a3   : > { %2025 = vrot.lane.b32.xlu1 %v2015_v30, %s4028_s8 }
 0x7a4   : > { %v5165_v4 = vpop.permute.xlu0 %1388 }
 0x7a5   : > { %2328 = vrot.lane.b32.xlu0 %v2318_v29, %s4043_s19  ;;  %v2348_v29 = vmul.f32 %v5160_v49, %v4183_v43 }
 0x7a6   : > { %v5168_v31 = vpop.permute.xlu1 %1755 }
 0x7a7   : > { %7397 = vst [vmem:[#allocation63_spill] sm:$0xff] %v5168_v31  ;;  %3046 = vperm.xlu1 %3905, %v4741_v28  }
 0x7a8   : > { %v5173_v52 = vpop.permute.xlu0 %1931 }
 0x7a9   : > { %7398 = vst [vmem:[#allocation64_spill] sm:$0xff] %v5173_v52  ;;  %2354 = vrot.lane.b32.xlu0 %v2346_v33, %s4044_s20  ;;  %v2045_v33 = vmul.f32 %v4941_v34, %v4185_v44 }
 0x7aa   : > { %v5178_v30 = vpop.permute.xlu1 %1779 }
 0x7ab   : > { %7399 = vst [vmem:[#allocation65_spill] sm:$0xff] %v5178_v30  ;;  %2027 = vrot.lane.b32.xlu1 %v2016_v13, %s4028_s8  ;;  %s4056_s8 = smov 26  }
 0x7ac   : > { %v5186_v31 = vpop.permute.xlu0 %1935  ;;  %3906 = vset.pattern.permute.xlu1 %v4045_v35  ;;  %v5202_v35 = vrot.slane %v4971_v50, 2 }
 0x7ad   : > { %7400 = vst [vmem:[#allocation66_spill] sm:$0xff] %v5186_v31  ;;  %2358 = vrot.lane.b32.xlu0 %v2348_v29, %s4044_s20  ;;  %v2378_v29 = vmul.f32 %v5181_v19, %v4183_v43 }
 0x7ae   : > { %v5191_v8 = vpop.permute.xlu1 %1783  ;;  %v2406_v50 = vmul.f32 %v5202_v35, %v4181_v40 }
 0x7af   : > { %7401 = vst [vmem:[#allocation67_spill] sm:$0xff] %v5191_v8  ;;  %2054 = vrot.lane.b32.xlu1 %v2045_v33, %s4030_s9  ;;  %v2047_v33 = vmul.f32 %v4941_v34, %v4187_v45  ;;  %v4047_v8 = vmov 83   ;;  %v5225_v34 = vrot.slane %v4921_v21, 2 }
 0x7b0   : > { %v5196_v13 = vpop.permute.xlu0 %2953 }
 0x7b1   : > { %2384 = vrot.lane.b32.xlu0 %v2376_v15, %s4046_s23  ;;  %v2436_v21 = vmul.f32 %v5225_v34, %v4181_v40 }
 0x7b2   : > { %v5199_v52 = vpop.permute.xlu1 %2798 }
 0x7b3   : > { %1553 = vperm.xlu1 %3906, %v4741_v28  }
 0x7b4   : > { %v5207_v31 = vpop.permute.xlu0 %1963 }
 0x7b5   : > { %7402 = vst [vmem:[#allocation68_spill] sm:$0xff] %v5207_v31  ;;  %2388 = vrot.lane.b32.xlu0 %v2378_v29, %s4046_s23  ;;  %v2075_v29 = vmul.f32 %v4966_v59, %v4181_v40 }
 0x7b6   : > { %v5212_v30 = vpop.permute.xlu1 %1785 }
 0x7b7   : > { %7403 = vst [vmem:[#allocation69_spill] sm:$0xff] %v5212_v30  ;;  %2058 = vrot.lane.b32.xlu1 %v2047_v33, %s4030_s9  ;;  %v2408_v33 = vmul.f32 %v5202_v35, %v4183_v43  ;;  %s4057_s9 = smov 8  }
 0x7b8   : > { %v5217_v15 = vpop.permute.xlu0 %1454  ;;  %3909 = vset.pattern.permute.xlu1 %v4047_v8  ;;  %v2077_v8 = vmul.f32 %v4966_v59, %v4183_v43 }
 0x7b9   : > { %2414 = vrot.lane.b32.xlu0 %v2406_v50, %s4048_s24 }
 0x7ba   : > { %v5222_v31 = vpop.permute.xlu1 %1811 }
 0x7bb   : > { %7404 = vst [vmem:[#allocation70_spill] sm:$0xff] %v5222_v31  ;;  %2083 = vrot.lane.b32.xlu1 %v2075_v29, %s3956_s16 }
 0x7bc   : > { %v5230_v30 = vpop.permute.xlu0 %1991 }
 0x7bd   : > { %7405 = vst [vmem:[#allocation71_spill] sm:$0xff] %v5230_v30  ;;  %2418 = vrot.lane.b32.xlu0 %v2408_v33, %s4048_s24  ;;  %v5246_v30 = vrot.slane %v4980_v48, 2  ;;  %v2438_v33 = vmul.f32 %v5225_v34, %v4183_v43 }
 0x7be   : > { %v5235_v50 = vpop.permute.xlu1 %1289 }
 0x7bf   : > { %2087 = vrot.lane.b32.xlu1 %v2077_v8, %s3956_s16  ;;  %v2078_v8 = vmul.f32 %v4966_v59, %v4187_v45  ;;  %v2467_v48 = vmul.f32 %v5246_v30, %v4181_v40  ;;  %v5270_v59 = vrot.slane %v4993_v53, 2 }
 0x7c0   : > { %v5240_v31 = vpop.permute.xlu0 %1995 }
 0x7c1   : > { %7406 = vst [vmem:[#allocation72_spill] sm:$0xff] %v5240_v31  ;;  %2444 = vrot.lane.b32.xlu0 %v2436_v21, %s4049_s25  ;;  %v2497_v53 = vmul.f32 %v5270_v59, %v4181_v40 }
 0x7c2   : > { %v5243_v29 = vpop.permute.xlu1 %1815 }
 0x7c3   : > { %7407 = vst [vmem:[#allocation73_spill] sm:$0xff] %v5243_v29  ;;  %3108 = vperm.xlu1 %3909, %v4741_v28   ;;  %v2106_v28 = vmul.f32 %v4985_v14, %v4185_v44 }
 0x7c4   : > { %v5251_v39 = vpop.permute.xlu0 %3015 }
 0x7c5   : > { %2448 = vrot.lane.b32.xlu0 %v2438_v33, %s4049_s25 }
 0x7c6   : > { %v5256_v31 = vpop.permute.xlu1 %1840 }
 0x7c7   : > { %7408 = vst [vmem:[#allocation74_spill] sm:$0xff] %v5256_v31  ;;  %2089 = vrot.lane.b32.xlu1 %v2078_v8, %s3956_s16  ;;  %v2469_v8 = vmul.f32 %v5246_v30, %v4183_v43 }
 0x7c8   : > { %v5261_v21 = vpop.permute.xlu0 %2023  ;;  %3910 = vset.pattern.permute.xlu1 %v7380_v12  ;;  %v2108_v12 = vmul.f32 %v4985_v14, %v4187_v45  ;;  %v2499_v14 = vmul.f32 %v5270_v59, %v4183_v43 }
 0x7c9   : > { %7409 = vst [vmem:[#allocation75_spill] sm:$0xff] %v5261_v21  ;;  %2475 = vrot.lane.b32.xlu0 %v2467_v48, %s3947_s10 }
 0x7ca   : > { %v5267_v33 = vpop.permute.xlu1 %1844 }
 0x7cb   : > { %7410 = vst [vmem:[#allocation76_spill] sm:$0xff] %v5267_v33  ;;  %2115 = vrot.lane.b32.xlu1 %v2106_v28, %s3957_s17  ;;  %v2136_v28 = vmul.f32 %v5005_v24, %v4185_v44 }
 0x7cc   : > { %v5275_v31 = vpop.permute.xlu0 %1520 }
 0x7cd   : > { %2479 = vrot.lane.b32.xlu0 %v2469_v8, %s3947_s10  ;;  %v5293_v8 = vrot.slane %v4934_v17, 2 }
 0x7ce   : > { %v5280_v48 = vpop.permute.xlu1 %2860 }
 0x7cf   : > { %2119 = vrot.lane.b32.xlu1 %v2108_v12, %s3957_s17  ;;  %v2527_v17 = vmul.f32 %v5293_v8, %v4181_v40 }
 0x7d0   : > { %v5285_v21 = vpop.permute.xlu0 %2052 }
 0x7d1   : > { %7411 = vst [vmem:[#allocation77_spill] sm:$0xff] %v5285_v21  ;;  %2505 = vrot.lane.b32.xlu0 %v2497_v53, %s4050_s26  ;;  %v2138_v53 = vmul.f32 %v5005_v24, %v4187_v45  ;;  %v2529_v24 = vmul.f32 %v5293_v8, %v4183_v43 }
 0x7d2   : > { %v5290_v33 = vpop.permute.xlu1 %1846 }
 0x7d3   : > { %7412 = vst [vmem:[#allocation78_spill] sm:$0xff] %v5290_v33  ;;  %2145 = vrot.lane.b32.xlu1 %v2136_v28, %s3958_s18  ;;  %v2166_v28 = vmul.f32 %v5028_v16, %v4185_v44 }
 0x7d4   : > { %v5298_v12 = vpop.permute.xlu0 %2056 }
 0x7d5   : > { %7413 = vst [vmem:[#allocation79_spill] sm:$0xff] %v5298_v12  ;;  %2509 = vrot.lane.b32.xlu0 %v2499_v14, %s4050_s26  ;;  %v5316_v14 = vrot.slane %v5008_v9, 2 }
 0x7d6   : > { %v5303_v21 = vpop.permute.xlu1 %1873 }
 0x7d7   : > { %7414 = vst [vmem:[#allocation80_spill] sm:$0xff] %v5303_v21  ;;  %2149 = vrot.lane.b32.xlu1 %v2138_v53, %s3958_s18  ;;  %v2557_v9 = vmul.f32 %v5316_v14, %v4181_v40 }
 0x7d8   : > { %v5308_v33 = vpop.permute.xlu0 %3077 }
 0x7d9   : > { %2535 = vrot.lane.b32.xlu0 %v2527_v17, %s4051_s27  ;;  %v2168_v17 = vmul.f32 %v5028_v16, %v4187_v45  ;;  %v2559_v16 = vmul.f32 %v5316_v14, %v4183_v43 }
 0x7da   : > { %v5313_v12 = vpop.permute.xlu1 %1355 }
 0x7db   : > { %2175 = vrot.lane.b32.xlu1 %v2166_v28, %s4036_s11  ;;  %v2196_v28 = vmul.f32 %v5049_v7, %v4185_v44 }
 0x7dc   : > { %v5321_v53 = vpop.permute.xlu0 %2085 }
 0x7dd   : > { %7415 = vst [vmem:[#allocation81_spill] sm:$0xff] %v5321_v53  ;;  %2539 = vrot.lane.b32.xlu0 %v2529_v24, %s4051_s27  ;;  %v5339_v24 = vrot.slane %v4945_v54, 2 }
 0x7de   : > { %v5326_v21 = vpop.permute.xlu1 %1877 }
 0x7df   : > { %7416 = vst [vmem:[#allocation82_spill] sm:$0xff] %v5326_v21  ;;  %2179 = vrot.lane.b32.xlu1 %v2168_v17, %s4036_s11  ;;  %v2587_v54 = vmul.f32 %v5339_v24, %v4181_v40 }
 0x7e0   : > { %v5331_v29 = vpop.permute.xlu0 %1586 }
 0x7e1   : > { %2565 = vrot.lane.b32.xlu0 %v2557_v9, %s4052_s28  ;;  %v2198_v9 = vmul.f32 %v5049_v7, %v4187_v45  ;;  %v2589_v7 = vmul.f32 %v5339_v24, %v4183_v43 }
 0x7e2   : > { %v5336_v53 = vpop.permute.xlu1 %1901 }
 0x7e3   : > { %7417 = vst [vmem:[#allocation83_spill] sm:$0xff] %v5336_v53  ;;  %2205 = vrot.lane.b32.xlu1 %v2196_v28, %s4038_s12  ;;  %v2226_v28 = vmul.f32 %v5072_v55, %v4185_v44 }
 0x7e4   : > { %v5344_v17 = vpop.permute.xlu0 %2113 }
 0x7e5   : > { %7418 = vst [vmem:[#allocation84_spill] sm:$0xff] %v5344_v17  ;;  %2569 = vrot.lane.b32.xlu0 %v2559_v16, %s4052_s28  ;;  %v5362_v16 = vrot.slane %v5036_v56, 2 }
 0x7e6   : > { %v5349_v21 = vpop.permute.xlu1 %1905 }
 0x7e7   : > { %7419 = vst [vmem:[#allocation85_spill] sm:$0xff] %v5349_v21  ;;  %2209 = vrot.lane.b32.xlu1 %v2198_v9, %s4038_s12  ;;  %v2617_v56 = vmul.f32 %v5362_v16, %v4181_v40 }
 0x7e8   : > { %v5354_v53 = vpop.permute.xlu0 %2117 }
 0x7e9   : > { %7420 = vst [vmem:[#allocation86_spill] sm:$0xff] %v5354_v53  ;;  %2595 = vrot.lane.b32.xlu0 %v2587_v54, %s4053_s29  ;;  %v2228_v54 = vmul.f32 %v5072_v55, %v4187_v45  ;;  %v2619_v55 = vmul.f32 %v5362_v16, %v4183_v43 }
 0x7ea   : > { %v5359_v17 = vpop.permute.xlu1 %2922 }
 0x7eb   : > { %2235 = vrot.lane.b32.xlu1 %v2226_v28, %s3940_s7  ;;  %v2256_v28 = vmul.f32 %v5093_v47, %v4185_v44 }
 0x7ec   : > { %v5367_v9 = vpop.permute.xlu0 %2143 }
 0x7ed   : > { %7421 = vst [vmem:[#allocation87_spill] sm:$0xff] %v5367_v9  ;;  %2599 = vrot.lane.b32.xlu0 %v2589_v7, %s4053_s29  ;;  %v5385_v7 = vrot.slane %v5046_v0, 2 }
 0x7ee   : > { %v5372_v53 = vpop.permute.xlu1 %1907 }
 0x7ef   : > { %2239 = vrot.lane.b32.xlu1 %v2228_v54, %s3940_s7  ;;  %v2647_v0 = vmul.f32 %v5385_v7, %v4181_v40  ;;  %s4055_s7 = smov 27  }
 0x7f0   : > { %v5377_v21 = vpop.permute.xlu0 %2147 }
 0x7f1   : > { %7422 = vst [vmem:[#allocation88_spill] sm:$0xff] %v5377_v21  ;;  %2625 = vrot.lane.b32.xlu0 %v2617_v56, %s4054_s30  ;;  %v2258_v56 = vmul.f32 %v5093_v47, %v4187_v45  ;;  %v2649_v47 = vmul.f32 %v5385_v7, %v4183_v43 }
 0x7f2   : > { %v5382_v9 = vpop.permute.xlu1 %1933 }
 0x7f3   : > { %7423 = vst [vmem:[#allocation89_spill] sm:$0xff] %v5382_v9  ;;  %2265 = vrot.lane.b32.xlu1 %v2256_v28, %s4040_s14  ;;  %v2287_v28 = vmul.f32 %v5116_v20, %v4185_v44 }
 0x7f4   : > { %v5390_v54 = vpop.permute.xlu0 %2173 }
 0x7f5   : > { %7424 = vst [vmem:[#allocation90_spill] sm:$0xff] %v5390_v54  ;;  %2629 = vrot.lane.b32.xlu0 %v2619_v55, %s4054_s30 }
 0x7f6   : > { %v5395_v21 = vpop.permute.xlu1 %1421 }
 0x7f7   : > { %2269 = vrot.lane.b32.xlu1 %v2258_v56, %s4040_s14  ;;  %v2289_v56 = vmul.f32 %v5116_v20, %v4187_v45  ;;  %v2650_v20 = vmul.f32 %v5385_v7, %v4187_v45  ;;  %s4058_s14 = smov 7  }
 0x7f8   : > { %v5400_v9 = vpop.permute.xlu0 %2177 }
 0x7f9   : > { %7425 = vst [vmem:[#allocation91_spill] sm:$0xff] %v5400_v9  ;;  %2655 = vrot.lane.b32.xlu0 %v2647_v0, %s4055_s7  ;;  %v1133_v0 = vmul.f32 %v4588_v3, %v4183_v43 }
 0x7fa   : > { %v5405_v54 = vpop.permute.xlu1 %1937 }
 0x7fb   : > { %7426 = vst [vmem:[#allocation92_spill] sm:$0xff] %v5405_v54  ;;  %2296 = vrot.lane.b32.xlu1 %v2287_v28, %s4041_s15  ;;  %v2317_v28 = vmul.f32 %v5137_v60, %v4185_v44 }
 0x7fc   : > { %v5410_v55 = vpop.permute.xlu0 %2203 }
 0x7fd   : > { %7427 = vst [vmem:[#allocation93_spill] sm:$0xff] %v5410_v55  ;;  %2659 = vrot.lane.b32.xlu0 %v2649_v47, %s4055_s7  ;;  %v5428_v47 = vrot.slane %v4960_v41, 2 }
 0x7fe   : > { %v5415_v9 = vpop.permute.xlu1 %1961 }
 0x7ff   : > { %7428 = vst [vmem:[#allocation94_spill] sm:$0xff] %v5415_v9  ;;  %2300 = vrot.lane.b32.xlu1 %v2289_v56, %s4041_s15  ;;  %v5441_v9 = vrot.slane %v5082_v27, 4  ;;  %v2679_v41 = vmul.f32 %v5428_v47, %v4185_v44 }
 0x800   : > { %v5420_v54 = vpop.permute.xlu0 %2207 }
 0x801   : > { %7429 = vst [vmem:[#allocation95_spill] sm:$0xff] %v5420_v54  ;;  %1143 = vrot.lane.b32.xlu0 %v1133_v0, %s3956_s16  ;;  %v2319_v0 = vmul.f32 %v5137_v60, %v4187_v45  ;;  %v1163_v60 = vmul.f32 %v5441_v9, %v4181_v40 }
 0x802   : > { %v5425_v55 = vpop.permute.xlu1 %1965 }
 0x803   : > { %7430 = vst [vmem:[#allocation96_spill] sm:$0xff] %v5425_v55  ;;  %2326 = vrot.lane.b32.xlu1 %v2317_v28, %s4043_s19 }
 0x804   : > { %v5433_v56 = vpop.permute.xlu0 %2233 }
 0x805   : > { %7431 = vst [vmem:[#allocation97_spill] sm:$0xff] %v5433_v56  ;;  %2661 = vrot.lane.b32.xlu0 %v2650_v20, %s4055_s7  ;;  %v2347_v20 = vmul.f32 %v5160_v49, %v4185_v44 }
 0x806   : > { %v5438_v54 = vpop.permute.xlu1 %2984 }
 0x807   : > { %2330 = vrot.lane.b32.xlu1 %v2319_v0, %s4043_s19  ;;  %v2349_v0 = vmul.f32 %v5160_v49, %v4187_v45  ;;  %v2681_v49 = vmul.f32 %v5428_v47, %v4187_v45 }
 0x808   : > { %v5446_v28 = vpop.permute.xlu0 %2237 }
 0x809   : > { %7432 = vst [vmem:[#allocation98_spill] sm:$0xff] %v5446_v28  ;;  %2688 = vrot.lane.b32.xlu0 %v2679_v41, %s4056_s8  ;;  %v1165_v41 = vmul.f32 %v5441_v9, %v4183_v43 }
 0x80a   : > { %v5451_v56 = vpop.permute.xlu1 %1967 }
 0x80b   : > { %2356 = vrot.lane.b32.xlu1 %v2347_v20, %s4044_s20  ;;  %v2377_v20 = vmul.f32 %v5181_v19, %v4185_v44 }
 0x80c   : > { %v5456_v27 = vpop.permute.xlu0 %2263 }
 0x80d   : > { %7433 = vst [vmem:[#allocation99_spill] sm:$0xff] %v5456_v27  ;;  %1171 = vrot.lane.b32.xlu0 %v1163_v60, %s3957_s17  ;;  %v5474_v60 = vrot.slane %v4977_v38, 2 }
 0x80e   : > { %v5461_v28 = vpop.permute.xlu1 %1993 }
 0x80f   : > { %7434 = vst [vmem:[#allocation100_spill] sm:$0xff] %v5461_v28  ;;  %2360 = vrot.lane.b32.xlu1 %v2349_v0, %s4044_s20  ;;  %v5487_v28 = vrot.slane %v4998_v6, 4  ;;  %v2710_v38 = vmul.f32 %v5474_v60, %v4185_v44 }
 0x810   : > { %v5466_v55 = vpop.permute.xlu0 %2267 }
 0x811   : > { %7435 = vst [vmem:[#allocation101_spill] sm:$0xff] %v5466_v55  ;;  %1175 = vrot.lane.b32.xlu0 %v1165_v41, %s3957_s17  ;;  %v2379_v41 = vmul.f32 %v5181_v19, %v4187_v45  ;;  %v1195_v19 = vmul.f32 %v5487_v28, %v4181_v40 }
 0x812   : > { %v5471_v27 = vpop.permute.xlu1 %1487 }
 0x813   : > { %2386 = vrot.lane.b32.xlu1 %v2377_v20, %s4046_s23 }
 0x814   : > { %v5479_v0 = vpop.permute.xlu0 %2294 }
 0x815   : > { %7436 = vst [vmem:[#allocation102_spill] sm:$0xff] %v5479_v0  ;;  %2692 = vrot.lane.b32.xlu0 %v2681_v49, %s4056_s8  ;;  %v2407_v49 = vmul.f32 %v5202_v35, %v4185_v44 }
 0x816   : > { %v5484_v55 = vpop.permute.xlu1 %1997 }
 0x817   : > { %2390 = vrot.lane.b32.xlu1 %v2379_v41, %s4046_s23  ;;  %v2409_v41 = vmul.f32 %v5202_v35, %v4187_v45  ;;  %v2712_v35 = vmul.f32 %v5474_v60, %v4187_v45 }
 0x818   : > { %v5492_v20 = vpop.permute.xlu0 %2298 }
 0x819   : > { %7437 = vst [vmem:[#allocation103_spill] sm:$0xff] %v5492_v20  ;;  %2719 = vrot.lane.b32.xlu0 %v2710_v38, %s4057_s9  ;;  %v1197_v38 = vmul.f32 %v5487_v28, %v4183_v43 }
 0x81a   : > { %v5497_v0 = vpop.permute.xlu1 %2021 }
 0x81b   : > { %7438 = vst [vmem:[#allocation104_spill] sm:$0xff] %v5497_v0  ;;  %2416 = vrot.lane.b32.xlu1 %v2407_v49, %s4048_s24  ;;  %v2437_v49 = vmul.f32 %v5225_v34, %v4185_v44 }
 0x81c   : > { %v5502_v6 = vpop.permute.xlu0 %2324 }
 0x81d   : > { %7439 = vst [vmem:[#allocation105_spill] sm:$0xff] %v5502_v6  ;;  %1203 = vrot.lane.b32.xlu0 %v1195_v19, %s3958_s18  ;;  %v5520_v19 = vrot.slane %v5124_v22, 2 }
 0x81e   : > { %v5507_v20 = vpop.permute.xlu1 %2025 }
 0x81f   : > { %7440 = vst [vmem:[#allocation106_spill] sm:$0xff] %v5507_v20  ;;  %2420 = vrot.lane.b32.xlu1 %v2409_v41, %s4048_s24  ;;  %v5533_v20 = vrot.slane %v5157_v32, 4  ;;  %v2741_v22 = vmul.f32 %v5520_v19, %v4185_v44 }
 0x820   : > { %v5512_v0 = vpop.permute.xlu0 %2328 }
 0x821   : > { %7441 = vst [vmem:[#allocation107_spill] sm:$0xff] %v5512_v0  ;;  %1207 = vrot.lane.b32.xlu0 %v1197_v38, %s3958_s18  ;;  %v2439_v38 = vmul.f32 %v5225_v34, %v4187_v45  ;;  %v1227_v32 = vmul.f32 %v5533_v20, %v4181_v40 }
 0x822   : > { %v5517_v6 = vpop.permute.xlu1 %3046 }
 0x823   : > { %2446 = vrot.lane.b32.xlu1 %v2437_v49, %s4049_s25 }
 0x824   : > { %v5525_v41 = vpop.permute.xlu0 %2354 }
 0x825   : > { %7442 = vst [vmem:[#allocation108_spill] sm:$0xff] %v5525_v41  ;;  %2723 = vrot.lane.b32.xlu0 %v2712_v35, %s4057_s9  ;;  %v2468_v35 = vmul.f32 %v5246_v30, %v4185_v44 }
 0x826   : > { %v5530_v0 = vpop.permute.xlu1 %2027 }
 0x827   : > { %7443 = vst [vmem:[#allocation109_spill] sm:$0xff] %v5530_v0  ;;  %2450 = vrot.lane.b32.xlu1 %v2439_v38, %s4049_s25  ;;  %v2470_v38 = vmul.f32 %v5246_v30, %v4187_v45  ;;  %v2743_v30 = vmul.f32 %v5520_v19, %v4187_v45  ;;  %v5579_v0 = vrot.slane %v5054_v26, 4  ;;  %s4060_s25 = smov 5  }
 0x828   : > { %v5538_v49 = vpop.permute.xlu0 %2358 }
 0x829   : > { %7444 = vst [vmem:[#allocation110_spill] sm:$0xff] %v5538_v49  ;;  %2750 = vrot.lane.b32.xlu0 %v2741_v22, %s4058_s14  ;;  %v1229_v22 = vmul.f32 %v5533_v20, %v4183_v43  ;;  %v1260_v26 = vmul.f32 %v5579_v0, %v4181_v40 }
 0x82a   : > { %v5543_v41 = vpop.permute.xlu1 %2054 }
 0x82b   : > { %7445 = vst [vmem:[#allocation111_spill] sm:$0xff] %v5543_v41  ;;  %2477 = vrot.lane.b32.xlu1 %v2468_v35, %s3947_s10  ;;  %v2498_v35 = vmul.f32 %v5270_v59, %v4185_v44 }
 0x82c   : > { %v5548_v34 = vpop.permute.xlu0 %2384 }
 0x82d   : > { %7446 = vst [vmem:[#allocation112_spill] sm:$0xff] %v5548_v34  ;;  %1235 = vrot.lane.b32.xlu0 %v1227_v32, %s4036_s11  ;;  %v5566_v32 = vrot.slane %v5033_v11, 2 }
 0x82e   : > { %v5553_v49 = vpop.permute.xlu1 %1553 }
 0x82f   : > { %2481 = vrot.lane.b32.xlu1 %v2470_v38, %s3947_s10  ;;  %v2772_v11 = vmul.f32 %v5566_v32, %v4185_v44  ;;  %s4059_s10 = smov 6  }
 0x830   : > { %v5558_v41 = vpop.permute.xlu0 %2388 }
 0x831   : > { %7447 = vst [vmem:[#allocation113_spill] sm:$0xff] %v5558_v41  ;;  %1239 = vrot.lane.b32.xlu0 %v1229_v22, %s4036_s11  ;;  %v2500_v22 = vmul.f32 %v5270_v59, %v4187_v45 }
 0x832   : > { %v5563_v34 = vpop.permute.xlu1 %2058 }
 0x833   : > { %2507 = vrot.lane.b32.xlu1 %v2498_v35, %s4050_s26 }
 0x834   : > { %v5571_v38 = vpop.permute.xlu0 %2414 }
 0x835   : > { %7448 = vst [vmem:[#allocation114_spill] sm:$0xff] %v5571_v38  ;;  %2754 = vrot.lane.b32.xlu0 %v2743_v30, %s4058_s14  ;;  %v2528_v30 = vmul.f32 %v5293_v8, %v4185_v44 }
 0x836   : > { %v5576_v41 = vpop.permute.xlu1 %2083 }
 0x837   : > { %7449 = vst [vmem:[#allocation115_spill] sm:$0xff] %v5576_v41  ;;  %2511 = vrot.lane.b32.xlu1 %v2500_v22, %s4050_s26  ;;  %v2530_v22 = vmul.f32 %v5293_v8, %v4187_v45  ;;  %v2774_v8 = vmul.f32 %v5566_v32, %v4187_v45 }
 0x838   : > { %v5584_v35 = vpop.permute.xlu0 %2418 }
 0x839   : > { %7450 = vst [vmem:[#allocation116_spill] sm:$0xff] %v5584_v35  ;;  %2781 = vrot.lane.b32.xlu0 %v2772_v11, %s4059_s10  ;;  %v1262_v11 = vmul.f32 %v5579_v0, %v4183_v43 }
 0x83a   : > { %v5589_v38 = vpop.permute.xlu1 %2087 }
 0x83b   : > { %7451 = vst [vmem:[#allocation117_spill] sm:$0xff] %v5589_v38  ;;  %2537 = vrot.lane.b32.xlu1 %v2528_v30, %s4051_s27  ;;  %v2558_v30 = vmul.f32 %v5316_v14, %v4185_v44  ;;  %v5625_v38 = vrot.slane %v5235_v50, 4 }
 0x83c   : > { %v5594_v59 = vpop.permute.xlu0 %2444 }
 0x83d   : > { %7452 = vst [vmem:[#allocation118_spill] sm:$0xff] %v5594_v59  ;;  %1268 = vrot.lane.b32.xlu0 %v1260_v26, %s4038_s12  ;;  %v5612_v26 = vrot.slane %v5199_v52, 2  ;;  %v1293_v50 = vmul.f32 %v5625_v38, %v4181_v40 }
 0x83e   : > { %v5599_v35 = vpop.permute.xlu1 %3108 }
 0x83f   : > { %2541 = vrot.lane.b32.xlu1 %v2530_v22, %s4051_s27  ;;  %v2803_v52 = vmul.f32 %v5612_v26, %v4185_v44 }
 0x840   : > { %v5604_v41 = vpop.permute.xlu0 %2448 }
 0x841   : > { %7453 = vst [vmem:[#allocation119_spill] sm:$0xff] %v5604_v41  ;;  %1272 = vrot.lane.b32.xlu0 %v1262_v11, %s4038_s12  ;;  %v2560_v11 = vmul.f32 %v5316_v14, %v4187_v45 }
 0x842   : > { %v5609_v59 = vpop.permute.xlu1 %2089 }
 0x843   : > { %2567 = vrot.lane.b32.xlu1 %v2558_v30, %s4052_s28 }
 0x844   : > { %v5617_v22 = vpop.permute.xlu0 %2475 }
 0x845   : > { %7454 = vst [vmem:[#allocation120_spill] sm:$0xff] %v5617_v22  ;;  %2785 = vrot.lane.b32.xlu0 %v2774_v8, %s4059_s10  ;;  %v2588_v8 = vmul.f32 %v5339_v24, %v4185_v44 }
 0x846   : > { %v5622_v41 = vpop.permute.xlu1 %2115 }
 0x847   : > { %7455 = vst [vmem:[#allocation121_spill] sm:$0xff] %v5622_v41  ;;  %2571 = vrot.lane.b32.xlu1 %v2560_v11, %s4052_s28  ;;  %v2590_v11 = vmul.f32 %v5339_v24, %v4187_v45  ;;  %v2805_v24 = vmul.f32 %v5612_v26, %v4187_v45 }
 0x848   : > { %v5630_v30 = vpop.permute.xlu0 %2479 }
 0x849   : > { %7456 = vst [vmem:[#allocation122_spill] sm:$0xff] %v5630_v30  ;;  %2812 = vrot.lane.b32.xlu0 %v2803_v52, %s4060_s25  ;;  %v1295_v52 = vmul.f32 %v5625_v38, %v4183_v43 }
 0x84a   : > { %v5635_v22 = vpop.permute.xlu1 %2119 }
 0x84b   : > { %2597 = vrot.lane.b32.xlu1 %v2588_v8, %s4053_s29  ;;  %v2618_v8 = vmul.f32 %v5362_v16, %v4185_v44 }
 0x84c   : > { %v5640_v14 = vpop.permute.xlu0 %2505 }
 0x84d   : > { %7457 = vst [vmem:[#allocation123_spill] sm:$0xff] %v5640_v14  ;;  %1301 = vrot.lane.b32.xlu0 %v1293_v50, %s4041_s15  ;;  %v5658_v50 = vrot.slane %v5087_v36, 2 }
 0x84e   : > { %v5645_v30 = vpop.permute.xlu1 %2145 }
 0x84f   : > { %7458 = vst [vmem:[#allocation124_spill] sm:$0xff] %v5645_v30  ;;  %2601 = vrot.lane.b32.xlu1 %v2590_v11, %s4053_s29  ;;  %v5671_v30 = vrot.slane %v5108_v58, 4  ;;  %v2834_v36 = vmul.f32 %v5658_v50, %v4185_v44 }
 0x850   : > { %v5650_v41 = vpop.permute.xlu0 %2509 }
 0x851   : > { %7459 = vst [vmem:[#allocation125_spill] sm:$0xff] %v5650_v41  ;;  %1305 = vrot.lane.b32.xlu0 %v1295_v52, %s4041_s15  ;;  %v2620_v52 = vmul.f32 %v5362_v16, %v4187_v45  ;;  %v1326_v58 = vmul.f32 %v5671_v30, %v4181_v40 }
 0x852   : > { %v5655_v14 = vpop.permute.xlu1 %2149 }
 0x853   : > { %2627 = vrot.lane.b32.xlu1 %v2618_v8, %s4054_s30 }
 0x854   : > { %v5663_v11 = vpop.permute.xlu0 %2535 }
 0x855   : > { %7460 = vst [vmem:[#allocation126_spill] sm:$0xff] %v5663_v11  ;;  %2816 = vrot.lane.b32.xlu0 %v2805_v24, %s4060_s25  ;;  %v2648_v24 = vmul.f32 %v5385_v7, %v4185_v44  ;;  %v1328_v7 = vmul.f32 %v5671_v30, %v4183_v43 }
 0x856   : > { %v5668_v41 = vpop.permute.xlu1 %2175 }
 0x857   : > { %2631 = vrot.lane.b32.xlu1 %v2620_v52, %s4054_s30  ;;  %v1132_v52 = vmul.f32 %v4588_v3, %v4185_v44 }
 0x858   : > { %v5676_v8 = vpop.permute.xlu0 %2539 }
 0x859   : > { %7461 = vst [vmem:[#allocation127_spill] sm:$0xff] %v5676_v8  ;;  %2843 = vrot.lane.b32.xlu0 %v2834_v36, %s4061_s13 }
 0x85a   : > { %v5681_v11 = vpop.permute.xlu1 %2179 }
 0x85b   : > { %2657 = vrot.lane.b32.xlu1 %v2648_v24, %s4055_s7  ;;  %v1134_v24 = vmul.f32 %v4588_v3, %v4187_v45  ;;  %v5717_v3 = vrot.slane %v5313_v12, 4  ;;  %s4064_s7 = smov 112  }
 0x85c   : > { %v5686_v16 = vpop.permute.xlu0 %2565 }
 0x85d   : > { %7462 = vst [vmem:[#allocation128_spill] sm:$0xff] %v5686_v16  ;;  %1334 = vrot.lane.b32.xlu0 %v1326_v58, %s4043_s19  ;;  %v5704_v58 = vrot.slane %v5280_v48, 2  ;;  %v1359_v12 = vmul.f32 %v5717_v3, %v4181_v40 }
 0x85e   : > { %v5691_v8 = vpop.permute.xlu1 %2205 }
 0x85f   : > { %7463 = vst [vmem:[#allocation129_spill] sm:$0xff] %v5691_v8  ;;  %1141 = vrot.lane.b32.xlu1 %v1132_v52, %s3956_s16  ;;  %v2836_v52 = vmul.f32 %v5658_v50, %v4187_v45  ;;  %v2865_v48 = vmul.f32 %v5704_v58, %v4185_v44 }
 0x860   : > { %v5696_v36 = vpop.permute.xlu0 %2569 }
 0x861   : > { %7464 = vst [vmem:[#allocation130_spill] sm:$0xff] %v5696_v36  ;;  %1338 = vrot.lane.b32.xlu0 %v1328_v7, %s4043_s19  ;;  %v2678_v7 = vmul.f32 %v5428_v47, %v4181_v40 }
 0x862   : > { %v5701_v16 = vpop.permute.xlu1 %2209 }
 0x863   : > { %1145 = vrot.lane.b32.xlu1 %v1134_v24, %s3956_s16  ;;  %s4062_s16 = smov 3  }
 0x864   : > { %v5709_v8 = vpop.permute.xlu0 %2595 }
 0x865   : > { %7465 = vst [vmem:[#allocation131_spill] sm:$0xff] %v5709_v8  ;;  %2847 = vrot.lane.b32.xlu0 %v2836_v52, %s4061_s13  ;;  %v2680_v52 = vmul.f32 %v5428_v47, %v4183_v43  ;;  %v1361_v47 = vmul.f32 %v5717_v3, %v4183_v43 }
 0x866   : > { %v5714_v36 = vpop.permute.xlu1 %2235 }
 0x867   : > { %7466 = vst [vmem:[#allocation132_spill] sm:$0xff] %v5714_v36  ;;  %2686 = vrot.lane.b32.xlu1 %v2678_v7, %s4056_s8  ;;  %v1164_v7 = vmul.f32 %v5441_v9, %v4185_v44 }
 0x868   : > { %v5722_v24 = vpop.permute.xlu0 %2599 }
 0x869   : > { %7467 = vst [vmem:[#allocation133_spill] sm:$0xff] %v5722_v24  ;;  %2874 = vrot.lane.b32.xlu0 %v2865_v48, %s4062_s16 }
 0x86a   : > { %v5727_v8 = vpop.permute.xlu1 %2239 }
 0x86b   : > { %2690 = vrot.lane.b32.xlu1 %v2680_v52, %s4056_s8  ;;  %v1166_v52 = vmul.f32 %v5441_v9, %v4187_v45  ;;  %v5763_v9 = vrot.slane %v5165_v4, 4  ;;  %s4071_s8 = smov 25  }
 0x86c   : > { %v5732_v36 = vpop.permute.xlu0 %2625 }
 0x86d   : > { %7468 = vst [vmem:[#allocation134_spill] sm:$0xff] %v5732_v36  ;;  %1367 = vrot.lane.b32.xlu0 %v1359_v12, %s4044_s20  ;;  %v5750_v12 = vrot.slane %v5142_v57, 2  ;;  %v1392_v4 = vmul.f32 %v5763_v9, %v4181_v40 }
 0x86e   : > { %v5737_v24 = vpop.permute.xlu1 %2265 }
 0x86f   : > { %7469 = vst [vmem:[#allocation135_spill] sm:$0xff] %v5737_v24  ;;  %1173 = vrot.lane.b32.xlu1 %v1164_v7, %s3957_s17  ;;  %v2867_v7 = vmul.f32 %v5704_v58, %v4187_v45  ;;  %v2896_v57 = vmul.f32 %v5750_v12, %v4185_v44 }
 0x870   : > { %v5742_v48 = vpop.permute.xlu0 %2629 }
 0x871   : > { %7470 = vst [vmem:[#allocation136_spill] sm:$0xff] %v5742_v48  ;;  %1371 = vrot.lane.b32.xlu0 %v1361_v47, %s4044_s20  ;;  %v2709_v47 = vmul.f32 %v5474_v60, %v4181_v40 }
 0x872   : > { %v5747_v36 = vpop.permute.xlu1 %2269 }
 0x873   : > { %1177 = vrot.lane.b32.xlu1 %v1166_v52, %s3957_s17  ;;  %s4063_s17 = smov 2  }
 0x874   : > { %v5755_v24 = vpop.permute.xlu0 %2655 }
 0x875   : > { %7471 = vst [vmem:[#allocation137_spill] sm:$0xff] %v5755_v24  ;;  %2878 = vrot.lane.b32.xlu0 %v2867_v7, %s4062_s16  ;;  %v2711_v7 = vmul.f32 %v5474_v60, %v4183_v43  ;;  %v1394_v60 = vmul.f32 %v5763_v9, %v4183_v43 }
 0x876   : > { %v5760_v48 = vpop.permute.xlu1 %2296 }
 0x877   : > { %7472 = vst [vmem:[#allocation138_spill] sm:$0xff] %v5760_v48  ;;  %2717 = vrot.lane.b32.xlu1 %v2709_v47, %s4057_s9  ;;  %v1196_v47 = vmul.f32 %v5487_v28, %v4185_v44 }
 0x878   : > { %v5768_v52 = vpop.permute.xlu0 %2659 }
 0x879   : > { %7473 = vst [vmem:[#allocation139_spill] sm:$0xff] %v5768_v52  ;;  %2905 = vrot.lane.b32.xlu0 %v2896_v57, %s4063_s17 }
 0x87a   : > { %v5773_v24 = vpop.permute.xlu1 %2300 }
 0x87b   : > { %2721 = vrot.lane.b32.xlu1 %v2711_v7, %s4057_s9  ;;  %v1198_v7 = vmul.f32 %v5487_v28, %v4187_v45  ;;  %v5809_v28 = vrot.slane %v5395_v21, 4  ;;  %s3682_s9 = smul.u32 48, %s7783_s22  ;;  %s7762_s22 = smov 103  }
 0x87c   : > { %v5778_v48 = vpop.permute.xlu0 %1143 }
 0x87d   : > { %7474 = vst [vmem:[#allocation140_spill] sm:$0xff] %v5778_v48  ;;  %1400 = vrot.lane.b32.xlu0 %v1392_v4, %s4046_s23  ;;  %v5796_v4 = vrot.slane %v5359_v17, 2  ;;  %v1425_v21 = vmul.f32 %v5809_v28, %v4181_v40 }
 0x87e   : > { %v5783_v52 = vpop.permute.xlu1 %2326 }
 0x87f   : > { %7475 = vst [vmem:[#allocation141_spill] sm:$0xff] %v5783_v52  ;;  %1205 = vrot.lane.b32.xlu1 %v1196_v47, %s3958_s18  ;;  %v2898_v47 = vmul.f32 %v5750_v12, %v4187_v45  ;;  %v2927_v17 = vmul.f32 %v5796_v4, %v4183_v43 }
 0x880   : > { %v5788_v57 = vpop.permute.xlu0 %2661 }
 0x881   : > { %7476 = vst [vmem:[#allocation142_spill] sm:$0xff] %v5788_v57  ;;  %1404 = vrot.lane.b32.xlu0 %v1394_v60, %s4046_s23  ;;  %v2740_v60 = vmul.f32 %v5520_v19, %v4181_v40 }
 0x882   : > { %v5793_v48 = vpop.permute.xlu1 %2330 }
 0x883   : > { %1209 = vrot.lane.b32.xlu1 %v1198_v7, %s3958_s18 }
 0x884   : > { %v5801_v52 = vpop.permute.xlu0 %2688 }
 0x885   : > { %7477 = vst [vmem:[#allocation143_spill] sm:$0xff] %v5801_v52  ;;  %2909 = vrot.lane.b32.xlu0 %v2898_v47, %s4063_s17  ;;  %v2742_v47 = vmul.f32 %v5520_v19, %v4183_v43  ;;  %v1427_v19 = vmul.f32 %v5809_v28, %v4183_v43 }
 0x886   : > { %v5806_v57 = vpop.permute.xlu1 %2356 }
 0x887   : > { %7478 = vst [vmem:[#allocation144_spill] sm:$0xff] %v5806_v57  ;;  %2748 = vrot.lane.b32.xlu1 %v2740_v60, %s4058_s14  ;;  %v1228_v60 = vmul.f32 %v5533_v20, %v4185_v44 }
 0x888   : > { %v5814_v7 = vpop.permute.xlu0 %1171 }
 0x889   : > { %7479 = vst [vmem:[#allocation145_spill] sm:$0xff] %v5814_v7  ;;  %2936 = vrot.lane.b32.xlu0 %v2927_v17, %s4064_s7  ;;  %v5832_v17 = vmax.f32 %v5014_v23, 0.0 }
 0x88a   : > { %v5819_v52 = vpop.permute.xlu1 %2360 }
 0x88b   : > { %7480 = vst [vmem:[#allocation146_spill] sm:$0xff] %v5819_v52  ;;  %2752 = vrot.lane.b32.xlu1 %v2742_v47, %s4058_s14  ;;  %v5845_v52 = vrot.slane %v5196_v13, 2  ;;  %v2929_v23 = vmul.f32 %v5796_v4, %v5832_v17 }
 0x88c   : > { %v5824_v57 = vpop.permute.xlu0 %1175 }
 0x88d   : > { %7481 = vst [vmem:[#allocation147_spill] sm:$0xff] %v5824_v57  ;;  %1433 = vrot.lane.b32.xlu0 %v1425_v21, %s4048_s24  ;;  %v1230_v21 = vmul.f32 %v5533_v20, %v4187_v45  ;;  %v5858_v20 = vrot.slane %v5217_v15, 4  ;;  %v2958_v13 = vmul.f32 %v5845_v52, %v4183_v43 }
 0x88e   : > { %v5829_v7 = vpop.permute.xlu1 %2386 }
 0x88f   : > { %1237 = vrot.lane.b32.xlu1 %v1228_v60, %s4036_s11  ;;  %v1458_v15 = vmul.f32 %v5858_v20, %v4181_v40 }
 0x890   : > { %v5837_v47 = vpop.permute.xlu0 %2692 }
 0x891   : > { %7482 = vst [vmem:[#allocation148_spill] sm:$0xff] %v5837_v47  ;;  %1437 = vrot.lane.b32.xlu0 %v1427_v19, %s4048_s24  ;;  %v2771_v19 = vmul.f32 %v5566_v32, %v4181_v40 }
 0x892   : > { %v5842_v57 = vpop.permute.xlu1 %2390 }
 0x893   : > { %1241 = vrot.lane.b32.xlu1 %v1230_v21, %s4036_s11  ;;  %s4065_s11 = smov 111  }
 0x894   : > { %v5850_v60 = vpop.permute.xlu0 %2719 }
 0x895   : > { %7483 = vst [vmem:[#allocation149_spill] sm:$0xff] %v5850_v60  ;;  %2940 = vrot.lane.b32.xlu0 %v2929_v23, %s4064_s7  ;;  %v2773_v23 = vmul.f32 %v5566_v32, %v4183_v43  ;;  %v1460_v32 = vmul.f32 %v5858_v20, %v4183_v43 }
 0x896   : > { %v5855_v47 = vpop.permute.xlu1 %2416 }
 0x897   : > { %7484 = vst [vmem:[#allocation150_spill] sm:$0xff] %v5855_v47  ;;  %2779 = vrot.lane.b32.xlu1 %v2771_v19, %s4059_s10  ;;  %v1261_v19 = vmul.f32 %v5579_v0, %v4185_v44 }
 0x898   : > { %v5863_v21 = vpop.permute.xlu0 %1203 }
 0x899   : > { %7485 = vst [vmem:[#allocation151_spill] sm:$0xff] %v5863_v21  ;;  %2967 = vrot.lane.b32.xlu0 %v2958_v13, %s4065_s11 }
 0x89a   : > { %v5868_v60 = vpop.permute.xlu1 %2420 }
 0x89b   : > { %2783 = vrot.lane.b32.xlu1 %v2773_v23, %s4059_s10  ;;  %v1263_v23 = vmul.f32 %v5579_v0, %v4187_v45  ;;  %v5904_v0 = vrot.slane %v5471_v27, 4 }
 0x89c   : > { %v5873_v47 = vpop.permute.xlu0 %1207 }
 0x89d   : > { %7486 = vst [vmem:[#allocation152_spill] sm:$0xff] %v5873_v47  ;;  %1466 = vrot.lane.b32.xlu0 %v1458_v15, %s4050_s26  ;;  %v5891_v15 = vrot.slane %v5438_v54, 2  ;;  %v1491_v27 = vmul.f32 %v5904_v0, %v4181_v40 }
 0x89e   : > { %v5878_v21 = vpop.permute.xlu1 %2446 }
 0x89f   : > { %7487 = vst [vmem:[#allocation153_spill] sm:$0xff] %v5878_v21  ;;  %1270 = vrot.lane.b32.xlu1 %v1261_v19, %s4038_s12  ;;  %v2960_v19 = vmul.f32 %v5845_v52, %v5832_v17  ;;  %v2989_v54 = vmul.f32 %v5891_v15, %v4183_v43 }
 0x8a0   : > { %v5883_v13 = vpop.permute.xlu0 %2723 }
 0x8a1   : > { %7488 = vst [vmem:[#allocation154_spill] sm:$0xff] %v5883_v13  ;;  %1470 = vrot.lane.b32.xlu0 %v1460_v32, %s4050_s26  ;;  %v2802_v32 = vmul.f32 %v5612_v26, %v4181_v40 }
 0x8a2   : > { %v5888_v47 = vpop.permute.xlu1 %2450 }
 0x8a3   : > { %1274 = vrot.lane.b32.xlu1 %v1263_v23, %s4038_s12  ;;  %s4066_s12 = smov 110  }
 0x8a4   : > { %v5896_v21 = vpop.permute.xlu0 %2750 }
 0x8a5   : > { %7489 = vst [vmem:[#allocation155_spill] sm:$0xff] %v5896_v21  ;;  %2971 = vrot.lane.b32.xlu0 %v2960_v19, %s4065_s11  ;;  %v2804_v19 = vmul.f32 %v5612_v26, %v4183_v43  ;;  %v1493_v26 = vmul.f32 %v5904_v0, %v4183_v43 }
 0x8a6   : > { %v5901_v13 = vpop.permute.xlu1 %2477 }
 0x8a7   : > { %7490 = vst [vmem:[#allocation156_spill] sm:$0xff] %v5901_v13  ;;  %2810 = vrot.lane.b32.xlu1 %v2802_v32, %s4060_s25  ;;  %v1294_v32 = vmul.f32 %v5625_v38, %v4185_v44 }
 0x8a8   : > { %v5909_v23 = vpop.permute.xlu0 %1235 }
 0x8a9   : > { %7491 = vst [vmem:[#allocation157_spill] sm:$0xff] %v5909_v23  ;;  %2998 = vrot.lane.b32.xlu0 %v2989_v54, %s4066_s12 }
 0x8aa   : > { %v5914_v21 = vpop.permute.xlu1 %2481 }
 0x8ab   : > { %2814 = vrot.lane.b32.xlu1 %v2804_v19, %s4060_s25  ;;  %v1296_v19 = vmul.f32 %v5625_v38, %v4187_v45  ;;  %v5950_v38 = vrot.slane %v5275_v31, 4  ;;  %s7041_s25 = scalar_lea.vmem %s7179_s6, %s3682_s9 }
 0x8ac   : > { %v5919_v13 = vpop.permute.xlu0 %1239 }
 0x8ad   : > { %7492 = vst [vmem:[#allocation158_spill] sm:$0xff] %v5919_v13  ;;  %1499 = vrot.lane.b32.xlu0 %v1491_v27, %s4051_s27  ;;  %v5937_v27 = vrot.slane %v5251_v39, 2  ;;  %v1524_v31 = vmul.f32 %v5950_v38, %v4181_v40 }
 0x8ae   : > { %v5924_v23 = vpop.permute.xlu1 %2507 }
 0x8af   : > { %7493 = vst [vmem:[#allocation159_spill] sm:$0xff] %v5924_v23  ;;  %1303 = vrot.lane.b32.xlu1 %v1294_v32, %s4041_s15  ;;  %v2991_v32 = vmul.f32 %v5891_v15, %v5832_v17  ;;  %v3020_v39 = vmul.f32 %v5937_v27, %v4183_v43 }
 0x8b0   : > { %v5929_v54 = vpop.permute.xlu0 %2754 }
 0x8b1   : > { %7494 = vst [vmem:[#allocation160_spill] sm:$0xff] %v5929_v54  ;;  %1503 = vrot.lane.b32.xlu0 %v1493_v26, %s4051_s27  ;;  %v2833_v26 = vmul.f32 %v5658_v50, %v4181_v40 }
 0x8b2   : > { %v5934_v13 = vpop.permute.xlu1 %2511 }
 0x8b3   : > { %1307 = vrot.lane.b32.xlu1 %v1296_v19, %s4041_s15  ;;  %s4067_s15 = smov 109  }
 0x8b4   : > { %v5942_v23 = vpop.permute.xlu0 %2781 }
 0x8b5   : > { %7495 = vst [vmem:[#allocation161_spill] sm:$0xff] %v5942_v23  ;;  %3002 = vrot.lane.b32.xlu0 %v2991_v32, %s4066_s12  ;;  %v2835_v32 = vmul.f32 %v5658_v50, %v4183_v43  ;;  %v1526_v50 = vmul.f32 %v5950_v38, %v4183_v43 }
 0x8b6   : > { %v5947_v54 = vpop.permute.xlu1 %2537 }
 0x8b7   : > { %7496 = vst [vmem:[#allocation162_spill] sm:$0xff] %v5947_v54  ;;  %2841 = vrot.lane.b32.xlu1 %v2833_v26, %s4061_s13  ;;  %v1327_v26 = vmul.f32 %v5671_v30, %v4185_v44 }
 0x8b8   : > { %v5955_v19 = vpop.permute.xlu0 %1268 }
 0x8b9   : > { %7497 = vst [vmem:[#allocation163_spill] sm:$0xff] %v5955_v19  ;;  %3029 = vrot.lane.b32.xlu0 %v3020_v39, %s4067_s15 }
 0x8ba   : > { %v5960_v23 = vpop.permute.xlu1 %2541 }
 0x8bb   : > { %2845 = vrot.lane.b32.xlu1 %v2835_v32, %s4061_s13  ;;  %v1329_v32 = vmul.f32 %v5671_v30, %v4187_v45  ;;  %v5996_v30 = vrot.slane %v5553_v49, 4  ;;  %s4068_s13 = smov 108  }
 0x8bc   : > { %v5965_v54 = vpop.permute.xlu0 %1272 }
 0x8bd   : > { %7498 = vst [vmem:[#allocation164_spill] sm:$0xff] %v5965_v54  ;;  %1532 = vrot.lane.b32.xlu0 %v1524_v31, %s4052_s28  ;;  %v5983_v31 = vrot.slane %v5517_v6, 2  ;;  %v1557_v49 = vmul.f32 %v5996_v30, %v4181_v40 }
 0x8be   : > { %v5970_v19 = vpop.permute.xlu1 %2567 }
 0x8bf   : > { %7499 = vst [vmem:[#allocation165_spill] sm:$0xff] %v5970_v19  ;;  %1336 = vrot.lane.b32.xlu1 %v1327_v26, %s4043_s19  ;;  %v3022_v26 = vmul.f32 %v5937_v27, %v5832_v17  ;;  %v3051_v6 = vmul.f32 %v5983_v31, %v4183_v43 }
 0x8c0   : > { %v5975_v39 = vpop.permute.xlu0 %2785 }
 0x8c1   : > { %7500 = vst [vmem:[#allocation166_spill] sm:$0xff] %v5975_v39  ;;  %1536 = vrot.lane.b32.xlu0 %v1526_v50, %s4052_s28  ;;  %v2864_v50 = vmul.f32 %v5704_v58, %v4181_v40 }
 0x8c2   : > { %v5980_v54 = vpop.permute.xlu1 %2571 }
 0x8c3   : > { %1340 = vrot.lane.b32.xlu1 %v1329_v32, %s4043_s19  ;;  %s4069_s19 = smov 107  }
 0x8c4   : > { %v5988_v19 = vpop.permute.xlu0 %2812 }
 0x8c5   : > { %7501 = vst [vmem:[#allocation167_spill] sm:$0xff] %v5988_v19  ;;  %3033 = vrot.lane.b32.xlu0 %v3022_v26, %s4067_s15  ;;  %v2866_v26 = vmul.f32 %v5704_v58, %v4183_v43  ;;  %v1559_v58 = vmul.f32 %v5996_v30, %v4183_v43 }
 0x8c6   : > { %v5993_v39 = vpop.permute.xlu1 %2597 }
 0x8c7   : > { %7502 = vst [vmem:[#allocation168_spill] sm:$0xff] %v5993_v39  ;;  %2872 = vrot.lane.b32.xlu1 %v2864_v50, %s4062_s16  ;;  %v1360_v50 = vmul.f32 %v5717_v3, %v4185_v44 }
 0x8c8   : > { %v6001_v32 = vpop.permute.xlu0 %1301 }
 0x8c9   : > { %7503 = vst [vmem:[#allocation169_spill] sm:$0xff] %v6001_v32  ;;  %3060 = vrot.lane.b32.xlu0 %v3051_v6, %s4068_s13 }
 0x8ca   : > { %v6006_v19 = vpop.permute.xlu1 %2601 }
 0x8cb   : > { %2876 = vrot.lane.b32.xlu1 %v2866_v26, %s4062_s16  ;;  %v1362_v26 = vmul.f32 %v5717_v3, %v4187_v45  ;;  %v6042_v3 = vrot.slane %v5331_v29, 4 }
 0x8cc   : > { %v6011_v39 = vpop.permute.xlu0 %1305 }
 0x8cd   : > { %7504 = vst [vmem:[#allocation170_spill] sm:$0xff] %v6011_v39  ;;  %1565 = vrot.lane.b32.xlu0 %v1557_v49, %s4053_s29  ;;  %v6029_v49 = vrot.slane %v5308_v33, 2  ;;  %v1590_v29 = vmul.f32 %v6042_v3, %v4181_v40 }
 0x8ce   : > { %v6016_v32 = vpop.permute.xlu1 %2627 }
 0x8cf   : > { %7505 = vst [vmem:[#allocation171_spill] sm:$0xff] %v6016_v32  ;;  %1369 = vrot.lane.b32.xlu1 %v1360_v50, %s4044_s20  ;;  %v3053_v50 = vmul.f32 %v5983_v31, %v5832_v17  ;;  %v3082_v33 = vmul.f32 %v6029_v49, %v4183_v43 }
 0x8d0   : > { %v6021_v6 = vpop.permute.xlu0 %2816 }
 0x8d1   : > { %7506 = vst [vmem:[#allocation172_spill] sm:$0xff] %v6021_v6  ;;  %1569 = vrot.lane.b32.xlu0 %v1559_v58, %s4053_s29  ;;  %v2895_v58 = vmul.f32 %v5750_v12, %v4181_v40 }
 0x8d2   : > { %v6026_v39 = vpop.permute.xlu1 %2631 }
 0x8d3   : > { %1373 = vrot.lane.b32.xlu1 %v1362_v26, %s4044_s20  ;;  %s4070_s20 = smov 106  }
 0x8d4   : > { %v6034_v32 = vpop.permute.xlu0 %2843 }
 0x8d5   : > { %7507 = vst [vmem:[#allocation173_spill] sm:$0xff] %v6034_v32  ;;  %3064 = vrot.lane.b32.xlu0 %v3053_v50, %s4068_s13  ;;  %v2897_v50 = vmul.f32 %v5750_v12, %v4183_v43  ;;  %v1592_v12 = vmul.f32 %v6042_v3, %v4183_v43 }
 0x8d6   : > { %v6039_v6 = vpop.permute.xlu1 %2657 }
 0x8d7   : > { %7508 = vst [vmem:[#allocation174_spill] sm:$0xff] %v6039_v6  ;;  %2903 = vrot.lane.b32.xlu1 %v2895_v58, %s4063_s17  ;;  %v1393_v58 = vmul.f32 %v5763_v9, %v4185_v44 }
 0x8d8   : > { %v6047_v26 = vpop.permute.xlu0 %1334 }
 0x8d9   : > { %7509 = vst [vmem:[#allocation175_spill] sm:$0xff] %v6047_v26  ;;  %3091 = vrot.lane.b32.xlu0 %v3082_v33, %s4069_s19 }
 0x8da   : > { %v6052_v32 = vpop.permute.xlu1 %1141 }
 0x8db   : > { %2907 = vrot.lane.b32.xlu1 %v2897_v50, %s4063_s17  ;;  %v1395_v50 = vmul.f32 %v5763_v9, %v4187_v45 }
 0x8dc   : > { %v6057_v6 = vpop.permute.xlu0 %1338 }
 0x8dd   : > { %7510 = vst [vmem:[#allocation176_spill] sm:$0xff] %v6057_v6  ;;  %1598 = vrot.lane.b32.xlu0 %v1590_v29, %s4054_s30  ;;  %v6075_v29 = vrot.slane %v5599_v35, 2 }
 0x8de   : > { %v6062_v26 = vpop.permute.xlu1 %1145 }
 0x8df   : > { %7511 = vst [vmem:[#allocation177_spill] sm:$0xff] %v6062_v26  ;;  %1402 = vrot.lane.b32.xlu1 %v1393_v58, %s4046_s23  ;;  %v3084_v58 = vmul.f32 %v6029_v49, %v5832_v17  ;;  %v3113_v35 = vmul.f32 %v6075_v29, %v4183_v43 }
 0x8e0   : > { %v6067_v33 = vpop.permute.xlu0 %2847 }
 0x8e1   : > { %7512 = vst [vmem:[#allocation178_spill] sm:$0xff] %v6067_v33  ;;  %1602 = vrot.lane.b32.xlu0 %v1592_v12, %s4054_s30  ;;  %v2926_v12 = vmul.f32 %v5796_v4, %v4185_v44 }
 0x8e2   : > { %v6072_v6 = vpop.permute.xlu1 %2686 }
 0x8e3   : > { %1406 = vrot.lane.b32.xlu1 %v1395_v50, %s4046_s23  ;;  %v2928_v50 = vmul.f32 %v5796_v4, %v4187_v45  ;;  %v1428_v4 = vmul.f32 %v5809_v28, %v4187_v45 }
 0x8e4   : > { %v6080_v26 = vpop.permute.xlu0 %2874 }
 0x8e5   : > { %7513 = vst [vmem:[#allocation179_spill] sm:$0xff] %v6080_v26  ;;  %3095 = vrot.lane.b32.xlu0 %v3084_v58, %s4069_s19  ;;  %v3115_v58 = vmul.f32 %v6075_v29, %v5832_v17 }
 0x8e6   : > { %v6085_v33 = vpop.permute.xlu1 %2690 }
 0x8e7   : > { %7514 = vst [vmem:[#allocation180_spill] sm:$0xff] %v6085_v33  ;;  %2934 = vrot.lane.b32.xlu1 %v2926_v12, %s4064_s7  ;;  %v1426_v12 = vmul.f32 %v5809_v28, %v4185_v44 }
 0x8e8   : > { %v6090_v9 = vpop.permute.xlu0 %1367 }
 0x8e9   : > { %7515 = vst [vmem:[#allocation181_spill] sm:$0xff] %v6090_v9  ;;  %3122 = vrot.lane.b32.xlu0 %v3113_v35, %s4070_s20 }
 0x8ea   : > { %v6095_v26 = vpop.permute.xlu1 %1173 }
 0x8eb   : > { %7516 = vst [vmem:[#allocation182_spill] sm:$0xff] %v6095_v26  ;;  %2938 = vrot.lane.b32.xlu1 %v2928_v50, %s4064_s7  ;;  %v7539_v26 = vld [vmem:[#allocation14_spill] sm:$0xff] }
 0x8ec   : > { %v6100_v33 = vpop.permute.xlu0 %1371 }
 0x8ed   : > { %7517 = vst [vmem:[#allocation183_spill] sm:$0xff] %v6100_v33  ;;  %3126 = vrot.lane.b32.xlu0 %v3115_v58, %s4070_s20  ;;  %v2957_v58 = vmul.f32 %v5845_v52, %v4185_v44 }
 0x8ee   : > { %v6105_v9 = vpop.permute.xlu1 %1177 }
 0x8ef   : > { %7518 = vst [vmem:[#allocation184_spill] sm:$0xff] %v6105_v9  ;;  %1435 = vrot.lane.b32.xlu1 %v1426_v12, %s4048_s24  ;;  %v7536_v9 = vld [vmem:[#allocation15_spill] sm:$0xff] }
 0x8f0   : > { %v6108_v35 = vpop.permute.xlu0 %2878 }
 0x8f1   : > { %7519 = vst [vmem:[#allocation185_spill] sm:$0xff] %v6108_v35  ;;  %1638 = vrot.lane.b32.xlu0 %v4137_v10, %s4071_s8  ;;  %v2959_v10 = vmul.f32 %v5845_v52, %v4187_v45 }
 0x8f2   : > { %v6114_v17 = vpop.permute.xlu1 %2717 }
 0x8f3   : > { %7520 = vst [vmem:[#allocation186_spill] sm:$0xff] %v6114_v17  ;;  %1439 = vrot.lane.b32.xlu1 %v1428_v4, %s4048_s24  ;;  %v1459_v4 = vmul.f32 %v5858_v20, %v4185_v44 }
 0x8f4   : > { %v6117_v50 = vpop.permute.xlu0 %2905 }
 0x8f5   : > { %7521 = vst [vmem:[#allocation187_spill] sm:$0xff] %v6117_v50 }
 0x8f6   : > { %v6121_v33 = vpop.permute.xlu1 %2721 }
 0x8f7   : > { %7522 = vst [vmem:[#allocation188_spill] sm:$0xff] %v6121_v33  ;;  %2965 = vrot.lane.b32.xlu1 %v2957_v58, %s4065_s11  ;;  %v1461_v58 = vmul.f32 %v5858_v20, %v4187_v45  ;;  %v2990_v20 = vmul.f32 %v5891_v15, %v4187_v45 }
 0x8f8   : > { %v6124_v12 = vpop.permute.xlu0 %1400 }
 0x8f9   : > { %7523 = vst [vmem:[#allocation189_spill] sm:$0xff] %v6124_v12 }
 0x8fa   : > { %v6128_v35 = vpop.permute.xlu1 %1205 }
 0x8fb   : > { %7524 = vst [vmem:[#allocation190_spill] sm:$0xff] %v6128_v35  ;;  %2969 = vrot.lane.b32.xlu1 %v2959_v10, %s4065_s11  ;;  %v2988_v10 = vmul.f32 %v5891_v15, %v4185_v44 }
 0x8fc   : > { %v6131_v28 = vpop.permute.xlu0 %1404 }
 0x8fd   : > { %7525 = vst [vmem:[#allocation191_spill] sm:$0xff] %v6131_v28 }
 0x8fe   : > { %v6135_v50 = vpop.permute.xlu1 %1209 }
 0x8ff   : > { %7526 = vst [vmem:[#allocation192_spill] sm:$0xff] %v6135_v50  ;;  %1468 = vrot.lane.b32.xlu1 %v1459_v4, %s4050_s26  ;;  %v824_v4 = vrot.slane %v4464_v46, 4  ;;  %v1492_v46 = vmul.f32 %v5904_v0, %v4185_v44 }
 0x900   : > { %v6138_v33 = vpop.permute.xlu0 %2909 }
 0x901   : > { %7527 = vst [vmem:[#allocation193_spill] sm:$0xff] %v6138_v33  ;;  %v827_v15 = vmul.f32 %v824_v4, %v4185_v44 }
 0x902   : > { %v6142_v12 = vpop.permute.xlu1 %2748 }
 0x903   : > { %7528 = vst [vmem:[#allocation194_spill] sm:$0xff] %v6142_v12  ;;  %1472 = vrot.lane.b32.xlu1 %v1461_v58, %s4050_s26  ;;  %v855_v58 = vsel %vm531_vm2, %v4495_v61, %v4501_v5  ;;  %v857_v61 = vsel %vm531_vm2, %v4466_v18, %v4504_v42  ;;  %v888_v12 = vsel %vm564_vm3, %v4508_v25, %v4477_v63 }
 0x904   : > { %v6145_v52 = vpop.permute.xlu0 %2936 }
 0x905   : > { %7529 = vst [vmem:[#allocation195_spill] sm:$0xff] %v6145_v52 }
 0x906   : > { %v6149_v28 = vpop.permute.xlu1 %2752 }
 0x907   : > { %7530 = vst [vmem:[#allocation196_spill] sm:$0xff] %v6149_v28  ;;  %2996 = vrot.lane.b32.xlu1 %v2988_v10, %s4066_s12  ;;  %v826_v28 = vmul.f32 %v824_v4, %v4181_v40  ;;  %v856_v10 = vsel %vm531_vm2, %v4501_v5, %v4466_v18  ;;  %v828_v5 = vmul.f32 %v824_v4, %v4183_v43 }
 0x908   : > { %v6152_v50 = vpop.permute.xlu0 %1433  ;;  %v863_v35 = vadd.f32 %v856_v10, %v827_v15  ;;  %v889_v18 = vsel %vm564_vm3, %v4477_v63, %v4510_v1  ;;  %v7540_v15 = vld [vmem:[#allocation17_spill] sm:$0xff] }
 0x909   : > { %7531 = vst [vmem:[#allocation197_spill] sm:$0xff] %v6152_v50 }
 0x90a   : > { %v6157_v33 = vpop.permute.xlu1 %1237 }
 0x90b   : > { %7532 = vst [vmem:[#allocation198_spill] sm:$0xff] %v6157_v33  ;;  %3000 = vrot.lane.b32.xlu1 %v2990_v20, %s4066_s12  ;;  %v829_v20 = vmul.f32 %v824_v4, %v4187_v45  ;;  %v862_v33 = vadd.f32 %v855_v58, %v826_v28  ;;  %v7537_v58 = vld [vmem:[#allocation12_spill] sm:$0xff] }
 0x90c   : > { %v6163_v52 = vpop.permute.xlu0 %1437 }
 0x90d   : > { %7533 = vst [vmem:[#allocation199_spill] sm:$0xff] %v6163_v52  ;;  %v887_v52 = vsel %vm564_vm3, %v4506_v62, %v4508_v25  ;;  %v865_v17 = vadd.f32 %v4504_v42, %v829_v20  ;;  %v7535_v62 = vld [vmem:[#allocation16_spill] sm:$0xff]  ;;  %v1494_v42 = vmul.f32 %v5904_v0, %v4187_v45  ;;  %v953_v20 = vsel %vm952_vm15, %v4623_v2, %v4658_v51  ;;  %v7544_v2 = vld [vmem:[#allocation30_spill] sm:$0xff] }
 0x90e   : > { %v6179_v50 = vpop.permute.xlu1 %1241  ;;  %v920_v28 = vsel %vm919_vm13, %v7536_v9, %v7535_v62  ;;  %v894_v25 = vadd.f32 %v887_v52, %v862_v33  ;;  %v921_v10 = vsel %vm919_vm13, %v7535_v62, %v7539_v26  ;;  %v922_v9 = vsel %vm919_vm13, %v7539_v26, %v7540_v15  ;;  %v7543_v26 = vld [vmem:[#allocation26_spill] sm:$0xff] }
 0x90f   : > { %7534 = vst [vmem:[#allocation200_spill] sm:$0xff] %v6179_v50  ;;  %1501 = vrot.lane.b32.xlu1 %v1492_v46, %s4051_s27  ;;  %v864_v50 = vadd.f32 %v857_v61, %v828_v5  ;;  %v895_v46 = vadd.f32 %v888_v12, %v863_v35  ;;  %v897_v63 = vadd.f32 %v4510_v1, %v865_v17  ;;  %v7542_v5 = vld [vmem:[#allocation18_spill] sm:$0xff]  ;;  %v1668_v0 = vrot.slane %v5022_v37, 2  ;;  %v7545_v12 = vld [vmem:[#allocation29_spill] sm:$0xff]  ;;  %v7548_v37 = vld [vmem:[#allocation19_spill] sm:$0xff] }
 0x910   : > { %1632 = vmax.xlane.f32.xlu0 %v7537_v58  ;;  %v6194_v4 = vpop.permute.xlu0 %2940  ;;  %v927_v52 = vadd.f32 %v920_v28, %v894_v25  ;;  %v954_v62 = vsel %vm952_vm15, %v4658_v51, %v7542_v5  ;;  %v955_v17 = vsel %vm952_vm15, %v7542_v5, %v7543_v26  ;;  %v986_v25 = vsel %vm597_vm4, %v7544_v2, %v7548_v37 }
 0x911   : > { %7538 = vst [vmem:[#allocation16_spill] sm:$0xff] %v6194_v4  ;;  %v896_v33 = vadd.f32 %v889_v18, %v864_v50  ;;  %v928_v1 = vadd.f32 %v921_v10, %v895_v46  ;;  %v930_v35 = vadd.f32 %v7540_v15, %v897_v63  ;;  %v985_v50 = vsel %vm597_vm4, %v7545_v12, %v7544_v2  ;;  %v7546_v18 = vld [vmem:[#allocation13_spill] sm:$0xff]  ;;  %v7549_v63 = vld [vmem:[#allocation54_spill] sm:$0xff]  ;;  %v7555_v2 = vld [vmem:[#allocation60_spill] sm:$0xff] }
 0x912   : > { %v6208_v61 = vpop.permute.xlu1 %2779  ;;  %v960_v58 = vadd.f32 %v953_v20, %v927_v52  ;;  %v3019_v10 = vmul.f32 %v5937_v27, %v4185_v44  ;;  %v7550_v15 = vld [vmem:[#allocation45_spill] sm:$0xff] }
 0x913   : > { %7541 = vst [vmem:[#allocation15_spill] sm:$0xff] %v6208_v61  ;;  %1505 = vrot.lane.b32.xlu1 %v1494_v42, %s4051_s27  ;;  %v929_v51 = vadd.f32 %v922_v9, %v896_v33  ;;  %v961_v42 = vadd.f32 %v954_v62, %v928_v1  ;;  %v963_v46 = vadd.f32 %v7543_v26, %v930_v35  ;;  %v7552_v9 = vld [vmem:[#allocation31_spill] sm:$0xff]  ;;  %v7553_v1 = vld [vmem:[#allocation52_spill] sm:$0xff]  ;;  %v7554_v35 = vld [vmem:[#allocation50_spill] sm:$0xff] }
 0x914   : > { %3151 = vmax.xlane.f32.xlu0 %v7546_v18  ;;  %v6223_v28 = vpop.permute.xlu0 %2967  ;;  %v1699_v5 = vsel %vm531_vm2, %v7550_v15, %v7549_v63  ;;  %v987_v20 = vsel %vm597_vm4, %v7548_v37, %v7552_v9  ;;  %v1672_v33 = vmul.f32 %v1668_v0, %v4183_v43  ;;  %v1697_v26 = vsel %vm531_vm2, %v7554_v35, %v7553_v1  ;;  %v7556_v63 = vld [vmem:[#allocation57_spill] sm:$0xff]  ;;  %v7561_v43 = vld [vmem:[#allocation48_spill] sm:$0xff] }
 0x915   : > { %7547 = vst [vmem:[#allocation12_spill] sm:$0xff] %v6223_v28  ;;  %v962_v18 = vadd.f32 %v955_v17, %v929_v51  ;;  %v992_v28 = vadd.f32 %v985_v50, %v960_v58  ;;  %v993_v52 = vadd.f32 %v986_v25, %v961_v42  ;;  %v995_v62 = vadd.f32 %v7552_v9, %v963_v46  ;;  %v7558_v46 = vld [vmem:[#allocation46_spill] sm:$0xff]  ;;  %v7559_v9 = vld [vmem:[#allocation56_spill] sm:$0xff]  ;;  %v7563_v4 = vld [vmem:[#allocation33_spill] sm:$0xff] }
 0x916   : > { %v6234_v12 = vpop.permute.xlu1 %2783  ;;  %v1729_v17 = vsel %vm564_vm3, %v7556_v63, %v7555_v2  ;;  %v1670_v51 = vmul.f32 %v1668_v0, %v4181_v40  ;;  %v1698_v58 = vsel %vm531_vm2, %v7553_v1, %v7550_v15  ;;  %v1705_v37 = vadd.f32 %v1699_v5, %v1672_v33  ;;  %v7560_v2 = vld [vmem:[#allocation63_spill] sm:$0xff]  ;;  %v7564_v15 = vld [vmem:[#allocation32_spill] sm:$0xff] }
 0x917   : > { %7551 = vst [vmem:[#allocation14_spill] sm:$0xff] %v6234_v12  ;;  %3027 = vrot.lane.b32.xlu1 %v3019_v10, %s4067_s15  ;;  %v3021_v25 = vmul.f32 %v5937_v27, %v4187_v45  ;;  %v6256_v10 = vadd.f32 %v987_v20, %v962_v18  ;;  %v1671_v42 = vmul.f32 %v1668_v0, %v4185_v44  ;;  %v7565_v20 = vld [vmem:[#allocation61_spill] sm:$0xff]  ;;  %v7566_v1 = vld [vmem:[#allocation47_spill] sm:$0xff]  ;;  %vm1817_vm2 = vcmask 1006592  }
 0x918   : > { %v6248_v50 = vpop.permute.xlu0 %1466  ;;  %v1727_v35 = vsel %vm564_vm3, %v7559_v9, %v7558_v46  ;;  %v1759_v40 = vsel %vm919_vm13, %v7561_v43, %v7560_v2  ;;  %v1017_v5 = vsel %vm7329_vm5, %v7564_v15, %v7563_v4  ;;  %v1703_v33 = vadd.f32 %v1697_v26, %v1670_v51  ;;  %v7567_v2 = vld [vmem:[#allocation69_spill] sm:$0xff]  ;;  %v7568_v12 = vld [vmem:[#allocation67_spill] sm:$0xff] }
 0x919   : > { %7557 = vst [vmem:[#allocation17_spill] sm:$0xff] %v6248_v50  ;;  %v1728_v27 = vsel %vm564_vm3, %v7558_v46, %v7556_v63  ;;  %v1735_v0 = vadd.f32 %v1729_v17, %v1705_v37  ;;  %v1704_v18 = vadd.f32 %v1698_v58, %v1671_v42  ;;  %v1757_v9 = vsel %vm919_vm13, %v7566_v1, %v7565_v20  ;;  %v7570_v58 = vld [vmem:[#allocation20_spill] sm:$0xff]  ;;  %v7571_v42 = vld [vmem:[#allocation49_spill] sm:$0xff] }
 0x91a   : > { %v6265_v50 = vpop.permute.xlu1 %1270  ;;  %v1733_v61 = vadd.f32 %v1727_v35, %v1703_v33  ;;  %v1758_v26 = vsel %vm919_vm13, %v7565_v20, %v7561_v43  ;;  %v1525_v17 = vmul.f32 %v5950_v38, %v4185_v44  ;;  %v1018_v37 = vsel %vm7329_vm5, %v7563_v4, %v7570_v58  ;;  %v7572_v46 = vld [vmem:[#allocation65_spill] sm:$0xff] }
 0x91b   : > { %7562 = vst [vmem:[#allocation18_spill] sm:$0xff] %v6265_v50  ;;  %3031 = vrot.lane.b32.xlu1 %v3021_v25, %s4067_s15  ;;  %v1789_v50 = vsel %vm952_vm15, %v7568_v12, %v7567_v2  ;;  %v1765_v51 = vadd.f32 %v1759_v40, %v1735_v0  ;;  %v1734_v25 = vadd.f32 %v1728_v27, %v1704_v18  ;;  %v7573_v35 = vld [vmem:[#allocation73_spill] sm:$0xff]  ;;  %vm1848_vm3 = vcmask 998400   ;;  %v7576_v18 = vld [vmem:[#allocation70_spill] sm:$0xff]  ;;  %v7577_v2 = vld [vmem:[#allocation51_spill] sm:$0xff] }
 0x91c   : > { %v6283_v63 = vpop.permute.xlu0 %1470  ;;  %v1787_v15 = vsel %vm952_vm15, %v7572_v46, %v7571_v42  ;;  %v7574_v33 = vld [vmem:[#allocation53_spill] sm:$0xff]  ;;  %v1763_v40 = vadd.f32 %v1757_v9, %v1733_v61  ;;  %v1788_v0 = vsel %vm952_vm15, %v7571_v42, %v7568_v12  ;;  %v6302_v4 = vadd.f32 %v1017_v5, %v992_v28  ;;  %v7583_v42 = vld [vmem:[#allocation59_spill] sm:$0xff] }
 0x91d   : > { %7569 = vst [vmem:[#allocation26_spill] sm:$0xff] %v6283_v63  ;;  %v1820_v1 = vsel %vm1817_vm2, %v7574_v33, %v7573_v35  ;;  %v1795_v20 = vadd.f32 %v1789_v50, %v1765_v51  ;;  %v1764_v27 = vadd.f32 %v1758_v26, %v1734_v25  ;;  %v1818_v46 = vsel %vm1817_vm2, %v7577_v2, %v7576_v18  ;;  %v7578_v63 = vld [vmem:[#allocation78_spill] sm:$0xff]  ;;  %v7579_v35 = vld [vmem:[#allocation76_spill] sm:$0xff]  ;;  %v7580_v26 = vld [vmem:[#allocation55_spill] sm:$0xff] }
 0x91e   : > { %v6296_v43 = vpop.permute.xlu1 %1274  ;;  %v1793_v61 = vadd.f32 %v1787_v15, %v1763_v40  ;;  %v1819_v12 = vsel %vm1817_vm2, %v7576_v18, %v7574_v33  ;;  %v1527_v9 = vmul.f32 %v5950_v38, %v4187_v45  ;;  %v6315_v28 = vadd.f32 %v1018_v37, %v993_v52  ;;  %v7581_v51 = vld [vmem:[#allocation74_spill] sm:$0xff] }
 0x91f   : > { %7575 = vst [vmem:[#allocation30_spill] sm:$0xff] %v6296_v43  ;;  %1534 = vrot.lane.b32.xlu1 %v1525_v17, %s4052_s28  ;;  %v1851_v43 = vsel %vm1848_vm3, %v7579_v35, %v7578_v63  ;;  %v1826_v50 = vadd.f32 %v1820_v1, %v1795_v20  ;;  %v1794_v5 = vadd.f32 %v1788_v0, %v1764_v27  ;;  %v7582_v25 = vld [vmem:[#allocation82_spill] sm:$0xff]  ;;  %v7586_v27 = vld [vmem:[#allocation80_spill] sm:$0xff]  ;;  %vm2060_vm13 = vcmask 801792  }
 0x920   : > { %v1849_v17 = vsel %vm1848_vm3, %v7581_v51, %v7580_v26  ;;  %v1881_v63 = vsel %vm597_vm4, %v7583_v42, %v7582_v25  ;;  %v7584_v40 = vld [vmem:[#allocation34_spill] sm:$0xff]  ;;  %v1824_v1 = vadd.f32 %v1818_v46, %v1793_v61  ;;  %v1850_v38 = vsel %vm1848_vm3, %v7580_v26, %v7579_v35  ;;  %v6331_v37 = vpop.permute.xlu0 %2971  ;;  %v7591_v26 = vld [vmem:[#allocation92_spill] sm:$0xff] }
 0x921   : > { %v1019_v33 = vsel %vm7329_vm5, %v7570_v58, %v7584_v40  ;;  %v1857_v52 = vadd.f32 %v1851_v43, %v1826_v50  ;;  %7585 = vst [vmem:[#allocation29_spill] sm:$0xff] %v6331_v37  ;;  %v6335_v0 = vadd.f32 %v7584_v40, %v995_v62  ;;  %v1825_v20 = vadd.f32 %v1819_v12, %v1794_v5  ;;  %v7587_v18 = vld [vmem:[#allocation58_spill] sm:$0xff]  ;;  %v7588_v58 = vld [vmem:[#allocation85_spill] sm:$0xff]  ;;  %v7594_v40 = vld [vmem:[#allocation35_spill] sm:$0xff] }
 0x922   : > { %v6323_v15 = vpop.permute.xlu1 %2810  ;;  %v1879_v2 = vsel %vm597_vm4, %v7587_v18, %v7586_v27  ;;  %v1911_v46 = vsel %vm7329_vm5, %v7588_v58, %v5372_v53  ;;  %v1855_v61 = vadd.f32 %v1849_v17, %v1824_v1  ;;  %v1880_v43 = vsel %vm597_vm4, %v7586_v27, %v7583_v42  ;;  %v7589_v12 = vld [vmem:[#allocation62_spill] sm:$0xff]  ;;  %v7593_v17 = vld [vmem:[#allocation36_spill] sm:$0xff] }
 0x923   : > { %1538 = vrot.lane.b32.xlu1 %v1527_v9, %s4052_s28  ;;  %v1887_v35 = vadd.f32 %v1881_v63, %v1857_v52  ;;  %v3050_v50 = vmul.f32 %v5983_v31, %v4185_v44  ;;  %v1856_v62 = vadd.f32 %v1850_v38, %v1825_v20  ;;  %v7590_v9 = vld [vmem:[#allocation83_spill] sm:$0xff]  ;;  %v7592_v51 = vld [vmem:[#allocation66_spill] sm:$0xff]  ;;  %v1049_v42 = vsel %vm663_vm7, %v7594_v40, %v7593_v17  ;;  %v7595_v20 = vld [vmem:[#allocation89_spill] sm:$0xff] }
 0x924   : > { %v1909_v5 = vsel %vm7329_vm5, %v7590_v9, %v7589_v12  ;;  %v1941_v25 = vsel %vm663_vm7, %v7592_v51, %v7591_v26  ;;  %v1885_v63 = vadd.f32 %v1879_v2, %v1855_v61  ;;  %v1910_v1 = vsel %vm7329_vm5, %v7589_v12, %v7588_v58  ;;  %v7596_v27 = vld [vmem:[#allocation64_spill] sm:$0xff]  ;;  %v6372_v58 = vpop.permute.xlu0 %2998  ;;  %v7600_v12 = vld [vmem:[#allocation94_spill] sm:$0xff] }
 0x925   : > { %v1917_v38 = vadd.f32 %v1911_v46, %v1887_v35  ;;  %vm1114_vm4 = vcmask 818176   ;;  %v1886_v52 = vadd.f32 %v1880_v43, %v1856_v62  ;;  %v1939_v18 = vsel %vm663_vm7, %v7596_v27, %v7595_v20  ;;  %v7597_v9 = vld [vmem:[#allocation96_spill] sm:$0xff]  ;;  %v7598_v43 = vld [vmem:[#allocation21_spill] sm:$0xff]  ;;  %v7605_v27 = vld [vmem:[#allocation106_spill] sm:$0xff] }
 0x926   : > { %v6354_v53 = vpop.permute.xlu1 %2814  ;;  %v1971_v26 = vsel %vm1081_vm14, %v7597_v9, %v5451_v56  ;;  %v1915_v37 = vadd.f32 %v1909_v5, %v1885_v63  ;;  %v1940_v2 = vsel %vm663_vm7, %v7595_v20, %v7592_v51  ;;  %v3052_v46 = vmul.f32 %v5983_v31, %v4187_v45  ;;  %v7599_v62 = vld [vmem:[#allocation68_spill] sm:$0xff]  ;;  %v7604_v20 = vld [vmem:[#allocation109_spill] sm:$0xff] }
 0x927   : > { %3058 = vrot.lane.b32.xlu1 %v3050_v50, %s4068_s13  ;;  %v1947_v61 = vadd.f32 %v1941_v25, %v1917_v38  ;;  %v1050_v35 = vsel %vm663_vm7, %v7593_v17, %v7598_v43  ;;  %v1916_v50 = vadd.f32 %v1910_v1, %v1886_v52  ;;  %v1969_v56 = vsel %vm1081_vm14, %v7600_v12, %v7599_v62  ;;  %v7601_v5 = vld [vmem:[#allocation72_spill] sm:$0xff]  ;;  %v7603_v38 = vld [vmem:[#allocation71_spill] sm:$0xff] }
 0x928   : > { %v2001_v40 = vsel %vm1114_vm4, %v7601_v5, %v5484_v55  ;;  %v1945_v25 = vadd.f32 %v1939_v18, %v1915_v37  ;;  %v1970_v31 = vsel %vm1081_vm14, %v7599_v62, %v7597_v9  ;;  %v7602_v1 = vld [vmem:[#allocation100_spill] sm:$0xff]  ;;  %v2032_v55 = vsel %vm2029_vm6, %v7605_v27, %v7604_v20  ;;  %v7608_v62 = vld [vmem:[#allocation79_spill] sm:$0xff] }
 0x929   : > { %v1977_v63 = vadd.f32 %v1971_v26, %v1947_v61  ;;  %v1946_v17 = vadd.f32 %v1940_v2, %v1916_v50  ;;  %v1999_v52 = vsel %vm1114_vm4, %v7603_v38, %v7602_v1  ;;  %v2000_v37 = vsel %vm1114_vm4, %v7602_v1, %v7601_v5  ;;  %v7606_v61 = vld [vmem:[#allocation75_spill] sm:$0xff] }
 0x92a   : > { %v6385_v51 = vpop.permute.xlu1 %1303  ;;  %v1975_v12 = vadd.f32 %v1969_v56, %v1945_v25  ;;  %v1558_v9 = vmul.f32 %v5996_v30, %v4185_v44  ;;  %v1026_v26 = vadd.f32 %v1019_v33, %v6256_v10  ;;  %v2063_v38 = vsel %vm2060_vm13, %v7608_v62, %v5563_v34  ;;  %v6417_v33 = vpop.permute.xlu0 %1499  ;;  %v7609_v34 = vld [vmem:[#allocation111_spill] sm:$0xff] }
 0x92b   : > { %3062 = vrot.lane.b32.xlu1 %v3052_v46, %s4068_s13  ;;  %v2007_v18 = vadd.f32 %v2001_v40, %v1977_v63  ;;  %v1976_v2 = vadd.f32 %v1970_v31, %v1946_v17  ;;  %v7607_v46 = vld [vmem:[#allocation104_spill] sm:$0xff]  ;;  %v6412_v25 = vadd.f32 %v1049_v42, %v6302_v4  ;;  %v2031_v40 = vsel %vm2029_vm6, %v7606_v61, %v7605_v27  ;;  %v7610_v17 = vld [vmem:[#allocation77_spill] sm:$0xff] }
 0x92c   : > { %v2030_v50 = vsel %vm2029_vm6, %v7607_v46, %v7606_v61  ;;  %v2005_v5 = vadd.f32 %v1999_v52, %v1975_v12  ;;  %v6421_v31 = vadd.f32 %v1050_v35, %v6315_v28  ;;  %v2061_v1 = vsel %vm2060_vm13, %v7610_v17, %v7609_v34  ;;  %v7611_v4 = vld [vmem:[#allocation117_spill] sm:$0xff] }
 0x92d   : > { %v2038_v10 = vadd.f32 %v2032_v55, %v2007_v18  ;;  %v2006_v63 = vadd.f32 %v2000_v37, %v1976_v2  ;;  %v2093_v42 = vsel %vm696_vm8, %v7611_v4, %v5609_v59  ;;  %v2062_v20 = vsel %vm2060_vm13, %v7609_v34, %v7608_v62  ;;  %v7612_v28 = vld [vmem:[#allocation37_spill] sm:$0xff]  ;;  %v7614_v18 = vld [vmem:[#allocation115_spill] sm:$0xff]  ;;  %v7615_v59 = vld [vmem:[#allocation86_spill] sm:$0xff] }
 0x92e   : > { %v6409_v56 = vpop.permute.xlu1 %1307  ;;  %v2036_v52 = vadd.f32 %v2030_v50, %v2005_v5  ;;  %v1560_v55 = vmul.f32 %v5996_v30, %v4187_v45  ;;  %v1051_v35 = vsel %vm663_vm7, %v7598_v43, %v7612_v28  ;;  %v7613_v37 = vld [vmem:[#allocation81_spill] sm:$0xff]  ;;  %v2123_v2 = vsel %vm729_vm10, %v7615_v59, %v5635_v22  ;;  %v7617_v5 = vld [vmem:[#allocation84_spill] sm:$0xff]  ;;  %v6462_v17 = vpop.permute.xlu0 %1503 }
 0x92f   : > { %1567 = vrot.lane.b32.xlu1 %v1558_v9, %s4053_s29  ;;  %v2069_v27 = vadd.f32 %v2063_v38, %v2038_v10  ;;  %v2037_v12 = vadd.f32 %v2031_v40, %v2006_v63  ;;  %v2091_v9 = vsel %vm696_vm8, %v7614_v18, %v7613_v37  ;;  %v6447_v46 = vadd.f32 %v7612_v28, %v6335_v0  ;;  %v7616_v38 = vld [vmem:[#allocation121_spill] sm:$0xff]  ;;  %v7618_v22 = vld [vmem:[#allocation88_spill] sm:$0xff] }
 0x930   : > { %v2067_v30 = vadd.f32 %v2061_v1, %v2036_v52  ;;  %v2092_v43 = vsel %vm696_vm8, %v7613_v37, %v7611_v4  ;;  %v2121_v40 = vsel %vm729_vm10, %v7617_v5, %v7616_v38  ;;  %v2153_v10 = vsel %vm762_vm11, %v7618_v22, %v5655_v14  ;;  %v7619_v52 = vld [vmem:[#allocation124_spill] sm:$0xff]  ;;  %v7621_v14 = vld [vmem:[#allocation91_spill] sm:$0xff] }
 0x931   : > { %v2099_v50 = vadd.f32 %v2093_v42, %v2069_v27  ;;  %v2068_v62 = vadd.f32 %v2062_v20, %v2037_v12  ;;  %vm1243_vm7 = vcmask 629760   ;;  %v2122_v63 = vsel %vm729_vm10, %v7616_v38, %v7615_v59  ;;  %v7620_v20 = vld [vmem:[#allocation87_spill] sm:$0xff] }
 0x932   : > { %v6443_v61 = vpop.permute.xlu1 %2841  ;;  %v2097_v0 = vadd.f32 %v2091_v9, %v2067_v30  ;;  %v3081_v1 = vmul.f32 %v6029_v49, %v4185_v44  ;;  %v6466_v4 = vadd.f32 %v1051_v35, %v1026_v26  ;;  %v2151_v27 = vsel %vm762_vm11, %v7620_v20, %v7619_v52  ;;  %v7622_v26 = vld [vmem:[#allocation39_spill] sm:$0xff]  ;;  %v7623_v35 = vld [vmem:[#allocation38_spill] sm:$0xff]  ;;  %v6508_v20 = vpop.permute.xlu0 %3002 }
 0x933   : > { %1571 = vrot.lane.b32.xlu1 %v1560_v55, %s4053_s29  ;;  %v2129_v34 = vadd.f32 %v2123_v2, %v2099_v50  ;;  %v2098_v42 = vadd.f32 %v2092_v43, %v2068_v62  ;;  %v2183_v55 = vsel %vm1243_vm7, %v7621_v14, %v5681_v11  ;;  %v2152_v37 = vsel %vm762_vm11, %v7619_v52, %v7618_v22  ;;  %v7624_v2 = vld [vmem:[#allocation90_spill] sm:$0xff]  ;;  %v7625_v30 = vld [vmem:[#allocation95_spill] sm:$0xff] }
 0x934   : > { %v2127_v12 = vadd.f32 %v2121_v40, %v2097_v0  ;;  %vm1276_vm15 = vcmask 621568   ;;  %v1082_v9 = vsel %vm1081_vm14, %v7623_v35, %v7622_v26  ;;  %v2181_v11 = vsel %vm1243_vm7, %v7624_v2, %v5668_v41  ;;  %v7626_v40 = vld [vmem:[#allocation22_spill] sm:$0xff]  ;;  %v7627_v0 = vld [vmem:[#allocation129_spill] sm:$0xff] }
 0x935   : > { %v2159_v18 = vadd.f32 %v2153_v10, %v2129_v34  ;;  %v2128_v59 = vadd.f32 %v2122_v63, %v2098_v42  ;;  %v2213_v43 = vsel %vm1276_vm15, %v7625_v30, %v5701_v16  ;;  %v2182_v62 = vsel %vm1243_vm7, %v5668_v41, %v7621_v14  ;;  %v7628_v63 = vld [vmem:[#allocation93_spill] sm:$0xff]  ;;  %v7629_v16 = vld [vmem:[#allocation98_spill] sm:$0xff]  ;;  %v7630_v14 = vld [vmem:[#allocation132_spill] sm:$0xff] }
 0x936   : > { %v6474_v28 = vpop.permute.xlu1 %2845  ;;  %v2157_v50 = vadd.f32 %v2151_v27, %v2127_v12  ;;  %v3083_v5 = vmul.f32 %v6029_v49, %v4187_v45  ;;  %v1083_v22 = vsel %vm1081_vm14, %v7622_v26, %v7626_v40  ;;  %v2211_v34 = vsel %vm1276_vm15, %v7628_v63, %v7627_v0  ;;  %v7637_v63 = vld [vmem:[#allocation102_spill] sm:$0xff] }
 0x937   : > { %3089 = vrot.lane.b32.xlu1 %v3081_v1, %s4069_s19  ;;  %v2189_v38 = vadd.f32 %v2183_v55, %v2159_v18  ;;  %v2158_v10 = vadd.f32 %v2152_v37, %v2128_v59  ;;  %v2243_v1 = vsel %vm458_vm1, %v7629_v16, %v5727_v8  ;;  %v2212_v49 = vsel %vm1276_vm15, %v7627_v0, %v7625_v30  ;;  %v7631_v55 = vld [vmem:[#allocation97_spill] sm:$0xff]  ;;  %v7633_v30 = vld [vmem:[#allocation135_spill] sm:$0xff] }
 0x938   : > { %v2187_v41 = vadd.f32 %v2181_v11, %v2157_v50  ;;  %vm2271_vm2 = vcmask 605184   ;;  %v2241_v12 = vsel %vm458_vm1, %v7631_v55, %v7630_v14  ;;  %v7632_v8 = vld [vmem:[#allocation101_spill] sm:$0xff]  ;;  %v1591_v18 = vmul.f32 %v6042_v3, %v4185_v44 }
 0x939   : > { %v2219_v52 = vadd.f32 %v2213_v43, %v2189_v38  ;;  %v2188_v27 = vadd.f32 %v2182_v62, %v2158_v10  ;;  %v2274_v37 = vsel %vm2271_vm2, %v7632_v8, %v5747_v36  ;;  %v2242_v35 = vsel %vm458_vm1, %v7630_v14, %v7629_v16  ;;  %v7634_v43 = vld [vmem:[#allocation99_spill] sm:$0xff] }
 0x93a   : > { %v6503_v42 = vpop.permute.xlu1 %1336  ;;  %v2217_v26 = vadd.f32 %v2211_v34, %v2187_v41  ;;  %vm1309_vm3 = vcmask 457728   ;;  %v6523_v2 = vadd.f32 %v1082_v9, %v6412_v25  ;;  %v2272_v50 = vsel %vm2271_vm2, %v7634_v43, %v7633_v30  ;;  %v7635_v36 = vld [vmem:[#allocation103_spill] sm:$0xff]  ;;  %v7636_v9 = vld [vmem:[#allocation138_spill] sm:$0xff] }
 0x93b   : > { %3093 = vrot.lane.b32.xlu1 %v3083_v5, %s4069_s19  ;;  %v2249_v59 = vadd.f32 %v2243_v1, %v2219_v52  ;;  %v2218_v11 = vadd.f32 %v2212_v49, %v2188_v27  ;;  %v2304_v62 = vsel %vm1309_vm3, %v7635_v36, %v5773_v24  ;;  %v2273_v10 = vsel %vm2271_vm2, %v7633_v30, %v7632_v8  ;;  %v7638_v16 = vld [vmem:[#allocation107_spill] sm:$0xff]  ;;  %v6548_v27 = vpop.permute.xlu0 %3029  ;;  %v7640_v8 = vld [vmem:[#allocation105_spill] sm:$0xff]  ;;  %v7644_v30 = vld [vmem:[#allocation108_spill] sm:$0xff] }
 0x93c   : > { %v2247_v5 = vadd.f32 %v2241_v12, %v2217_v26  ;;  %vm1342_vm1 = vcmask 449536   ;;  %v2302_v34 = vsel %vm1309_vm3, %v7637_v63, %v7636_v9  ;;  %v1593_v1 = vmul.f32 %v6042_v3, %v4187_v45  ;;  %v7639_v12 = vld [vmem:[#allocation141_spill] sm:$0xff] }
 0x93d   : > { %v2280_v0 = vadd.f32 %v2274_v37, %v2249_v59  ;;  %v2248_v25 = vadd.f32 %v2242_v35, %v2218_v11  ;;  %v2334_v24 = vsel %vm1342_vm1, %v7638_v16, %v5793_v48  ;;  %v2303_v49 = vsel %vm1309_vm3, %v7636_v9, %v7635_v36  ;;  %v7641_v37 = vld [vmem:[#allocation146_spill] sm:$0xff] }
 0x93e   : > { %v6531_v38 = vpop.permute.xlu1 %1340  ;;  %v2278_v41 = vadd.f32 %v2272_v50, %v2247_v5  ;;  %vm1375_vm6 = vcmask 441344   ;;  %v6551_v14 = vadd.f32 %v1083_v22, %v6421_v31  ;;  %v2332_v48 = vsel %vm1342_vm1, %v7640_v8, %v7639_v12  ;;  %v7643_v22 = vld [vmem:[#allocation144_spill] sm:$0xff]  ;;  %v7645_v50 = vld [vmem:[#allocation113_spill] sm:$0xff]  ;;  %v7649_v8 = vld [vmem:[#allocation150_spill] sm:$0xff] }
 0x93f   : > { %1600 = vrot.lane.b32.xlu1 %v1591_v18, %s4054_s30  ;;  %v2310_v52 = vadd.f32 %v2304_v62, %v2280_v0  ;;  %v2279_v55 = vadd.f32 %v2273_v10, %v2248_v25  ;;  %v7642_v18 = vld [vmem:[#allocation110_spill] sm:$0xff]  ;;  %v2333_v59 = vsel %vm1342_vm1, %v7639_v12, %v7638_v16  ;;  %vm1408_vm13 = vcmask 433152   ;;  %v7646_v25 = vld [vmem:[#allocation40_spill] sm:$0xff] }
 0x940   : > { %v2364_v3 = vsel %vm1375_vm6, %v7642_v18, %v7641_v37  ;;  %v2308_v35 = vadd.f32 %v2302_v34, %v2278_v41  ;;  %v2362_v43 = vsel %vm1375_vm6, %v7644_v30, %v7643_v22  ;;  %v2394_v36 = vsel %vm1408_vm13, %v7645_v50, %v5842_v57  ;;  %v7647_v34 = vld [vmem:[#allocation112_spill] sm:$0xff]  ;;  %v7651_v37 = vld [vmem:[#allocation119_spill] sm:$0xff] }
 0x941   : > { %v2340_v11 = vadd.f32 %v2334_v24, %v2310_v52  ;;  %v2309_v31 = vadd.f32 %v2303_v49, %v2279_v55  ;;  %vm1441_vm2 = vcmask 424960   ;;  %v2363_v5 = vsel %vm1375_vm6, %v7643_v22, %v7642_v18  ;;  %v7648_v57 = vld [vmem:[#allocation116_spill] sm:$0xff]  ;;  %v6590_v55 = vpop.permute.xlu0 %1532  ;;  %v7653_v22 = vld [vmem:[#allocation118_spill] sm:$0xff] }
 0x942   : > { %v6559_v26 = vpop.permute.xlu1 %2872  ;;  %v2338_v62 = vadd.f32 %v2332_v48, %v2308_v35  ;;  %v3112_v0 = vmul.f32 %v6075_v29, %v4185_v44  ;;  %v1084_v9 = vsel %vm1081_vm14, %v7626_v40, %v7646_v25  ;;  %v2392_v16 = vsel %vm1408_vm13, %v7647_v34, %v5829_v7  ;;  %v7650_v48 = vld [vmem:[#allocation114_spill] sm:$0xff] }
 0x943   : > { %1604 = vrot.lane.b32.xlu1 %v1593_v1, %s4054_s30  ;;  %v2370_v10 = vadd.f32 %v2364_v3, %v2340_v11  ;;  %v2339_v63 = vadd.f32 %v2333_v59, %v2309_v31  ;;  %v2424_v24 = vsel %vm1441_vm2, %v7648_v57, %v5868_v60  ;;  %v2393_v49 = vsel %vm1408_vm13, %v5829_v7, %v7645_v50  ;;  %v7652_v31 = vld [vmem:[#allocation153_spill] sm:$0xff] }
 0x944   : > { %v2368_v41 = vadd.f32 %v2362_v43, %v2338_v62  ;;  %vm2452_vm5 = vcmask 416768   ;;  %v1092_v40 = vadd.f32 %v7646_v25, %v6447_v46  ;;  %v2422_v60 = vsel %vm1441_vm2, %v7650_v48, %v7649_v8  ;;  %v7654_v43 = vld [vmem:[#allocation122_spill] sm:$0xff]  ;;  %v7657_v25 = vld [vmem:[#allocation156_spill] sm:$0xff]  ;;  %v7662_v48 = vld [vmem:[#allocation123_spill] sm:$0xff] }
 0x945   : > { %v2400_v52 = vadd.f32 %v2394_v36, %v2370_v10  ;;  %v2369_v12 = vadd.f32 %v2363_v5, %v2339_v63  ;;  %v2455_v18 = vsel %vm2452_vm5, %v7651_v37, %v5888_v47  ;;  %v2423_v7 = vsel %vm1441_vm2, %v7649_v8, %v7648_v57  ;;  %v7659_v63 = vld [vmem:[#allocation125_spill] sm:$0xff]  ;;  %v7661_v8 = vld [vmem:[#allocation159_spill] sm:$0xff] }
 0x946   : > { %v6585_v1 = vpop.permute.xlu1 %2876  ;;  %v2398_v3 = vadd.f32 %v2392_v16, %v2368_v41  ;;  %v3114_v59 = vmul.f32 %v6075_v29, %v4187_v45  ;;  %v1091_v46 = vadd.f32 %v1084_v9, %v6466_v4  ;;  %v2453_v30 = vsel %vm2452_vm5, %v7653_v22, %v7652_v31  ;;  %v7655_v29 = vld [vmem:[#allocation42_spill] sm:$0xff]  ;;  %v7656_v4 = vld [vmem:[#allocation41_spill] sm:$0xff]  ;;  %v7658_v9 = vld [vmem:[#allocation120_spill] sm:$0xff]  ;;  %v6631_v41 = vpop.permute.xlu0 %1536 }
 0x947   : > { %3120 = vrot.lane.b32.xlu1 %v3112_v0, %s4070_s20  ;;  %v2430_v35 = vadd.f32 %v2424_v24, %v2400_v52  ;;  %v2399_v11 = vadd.f32 %v2393_v49, %v2369_v12  ;;  %v2485_v47 = vsel %vm798_vm12, %v7654_v43, %v5914_v21  ;;  %v2454_v62 = vsel %vm2452_vm5, %v7652_v31, %v7651_v37  ;;  %v7660_v49 = vld [vmem:[#allocation23_spill] sm:$0xff]  ;;  %v7665_v22 = vld [vmem:[#allocation162_spill] sm:$0xff] }
 0x948   : > { %v2428_v36 = vadd.f32 %v2422_v60, %v2398_v3  ;;  %vm1474_vm14 = vcmask 261120   ;;  %v1115_v10 = vsel %vm1114_vm4, %v7656_v4, %v7655_v29  ;;  %v2483_v21 = vsel %vm798_vm12, %v7658_v9, %v7657_v25  ;;  %v7671_v9 = vld [vmem:[#allocation133_spill] sm:$0xff] }
 0x949   : > { %v2461_v5 = vadd.f32 %v2455_v18, %v2430_v35  ;;  %v2429_v0 = vadd.f32 %v2423_v7, %v2399_v11  ;;  %v2515_v34 = vsel %vm1474_vm14, %v7659_v63, %v5934_v13  ;;  %v2484_v57 = vsel %vm798_vm12, %v7657_v25, %v7654_v43  ;;  %v7663_v13 = vld [vmem:[#allocation127_spill] sm:$0xff] }
 0x94a   : > { %v6613_v50 = vpop.permute.xlu1 %1369  ;;  %v2459_v16 = vadd.f32 %v2453_v30, %v2428_v36  ;;  %vm7334_vm5 = vcmask 252928   ;;  %v1116_v52 = vsel %vm1114_vm4, %v7655_v29, %v7660_v49  ;;  %v2513_v60 = vsel %vm1474_vm14, %v7662_v48, %v7661_v8  ;;  %v7666_v30 = vld [vmem:[#allocation126_spill] sm:$0xff]  ;;  %v7668_v29 = vld [vmem:[#allocation43_spill] sm:$0xff] }
 0x94b   : > { %3124 = vrot.lane.b32.xlu1 %v3114_v59, %s4070_s20  ;;  %v2491_v24 = vadd.f32 %v2485_v47, %v2461_v5  ;;  %v2460_v12 = vadd.f32 %v2454_v62, %v2429_v0  ;;  %v2545_v37 = vsel %vm7334_vm5, %v7663_v13, %v5960_v23  ;;  %v2514_v7 = vsel %vm1474_vm14, %v7661_v8, %v7659_v63  ;;  %v7664_v59 = vld [vmem:[#allocation3_spill] sm:$0xff]  ;;  %v7667_v23 = vld [vmem:[#allocation130_spill] sm:$0xff]  ;;  %v7670_v0 = vld [vmem:[#allocation128_spill] sm:$0xff] }
 0x94c   : > { %v2489_v3 = vadd.f32 %v2483_v21, %v2459_v16  ;;  %vm7332_vm12 = vcmask 244736   ;;  %v1122_v11 = vadd.f32 %v1115_v10, %v6523_v2  ;;  %v2543_v43 = vsel %vm7334_vm5, %v7666_v30, %v7665_v22  ;;  %v7669_v10 = vld [vmem:[#allocation165_spill] sm:$0xff]  ;;  %v7673_v8 = vld [vmem:[#allocation168_spill] sm:$0xff]  ;;  %v7674_v48 = vld [vmem:[#allocation131_spill] sm:$0xff] }
 0x94d   : > { %v2521_v35 = vadd.f32 %v2515_v34, %v2491_v24  ;;  %v2490_v31 = vadd.f32 %v2484_v57, %v2460_v12  ;;  %v2575_v47 = vsel %vm7332_vm12, %v7667_v23, %v5980_v54  ;;  %v2544_v62 = vsel %vm7334_vm5, %v7665_v22, %v7663_v13  ;;  %v6673_v57 = vpop.permute.xlu0 %3033  ;;  %v7672_v24 = vld [vmem:[#allocation5_spill] sm:$0xff]  ;;  %v7677_v22 = vld [vmem:[#allocation134_spill] sm:$0xff] }
 0x94e   : > { %v6642_v18 = vpop.permute.xlu1 %1373  ;;  %v2519_v36 = vadd.f32 %v2513_v60, %v2489_v3  ;;  %v1117_v2 = vsel %vm1114_vm4, %v7660_v49, %v7668_v29  ;;  %v2573_v25 = vsel %vm7332_vm12, %v7670_v0, %v7669_v10  ;;  %v2605_v54 = vsel %vm7333_vm0, %v7671_v9, %v6006_v19  ;;  %v7675_v60 = vld [vmem:[#allocation136_spill] sm:$0xff] }
 0x94f   : > { %1636 = vrot.lane.b32.xlu1 %v7664_v59, %s4071_s8  ;;  %v2551_v5 = vadd.f32 %v2545_v37, %v2521_v35  ;;  %v2520_v4 = vadd.f32 %v2514_v7, %v2490_v31  ;;  %v2574_v34 = vsel %vm7332_vm12, %v7669_v10, %v7667_v23  ;;  %v1123_v49 = vadd.f32 %v1116_v52, %v6551_v14  ;;  %v7676_v52 = vld [vmem:[#allocation171_spill] sm:$0xff]  ;;  %v7682_v0 = vld [vmem:[#allocation44_spill] sm:$0xff] }
 0x950   : > { %v2549_v63 = vadd.f32 %v2543_v43, %v2519_v36  ;;  %v2603_v19 = vsel %vm7333_vm0, %v7674_v48, %v7673_v8  ;;  %v2635_v13 = vsel %vm7335_vm9, %v7675_v60, %v6026_v39  ;;  %v1125_v37 = vadd.f32 %v7668_v29, %v1092_v40  ;;  %v7678_v36 = vld [vmem:[#allocation174_spill] sm:$0xff]  ;;  %v7681_v29 = vld [vmem:[#allocation139_spill] sm:$0xff] }
 0x951   : > { %v2581_v16 = vadd.f32 %v2575_v47, %v2551_v5  ;;  %v2550_v12 = vadd.f32 %v2544_v62, %v2520_v4  ;;  %v2604_v7 = vsel %vm7333_vm0, %v7673_v8, %v7671_v9  ;;  %v1124_v31 = vadd.f32 %v1117_v2, %v1091_v46  ;;  %v7679_v62 = vld [vmem:[#allocation137_spill] sm:$0xff]  ;;  %v7680_v46 = vld [vmem:[#allocation142_spill] sm:$0xff]  ;;  %v6705_v9 = vpop.permute.xlu0 %3060 }
 0x952   : > { %v6668_v21 = vpop.permute.xlu1 %2903  ;;  %v2579_v3 = vadd.f32 %v2573_v25, %v2549_v63  ;;  %vm2663_vm4 = vcmask 220160   ;;  %v2633_v30 = vsel %vm7335_vm9, %v7677_v22, %v7676_v52  ;;  %v2634_v39 = vsel %vm7335_vm9, %v7676_v52, %v7675_v60  ;;  %v7683_v63 = vld [vmem:[#allocation140_spill] sm:$0xff]  ;;  %v7685_v60 = vld [vmem:[#allocation143_spill] sm:$0xff]  ;;  %v7688_v22 = vld [vmem:[#allocation182_spill] sm:$0xff] }
 0x953   : > { %1640 = vrot.lane.b32.xlu1 %v7672_v24, %s4071_s8  ;;  %v2611_v35 = vadd.f32 %v2605_v54, %v2581_v16  ;;  %v2580_v14 = vadd.f32 %v2574_v34, %v2550_v12  ;;  %vm2694_vm12 = vcmask 211968   ;;  %v2664_v5 = vsel %vm2663_vm4, %v7679_v62, %v7678_v36  ;;  %v7684_v16 = vld [vmem:[#allocation177_spill] sm:$0xff] }
 0x954   : > { %v2609_v23 = vadd.f32 %v2603_v19, %v2579_v3  ;;  %vm2725_vm0 = vcmask 64512   ;;  %vm2756_vm5 = vcmask 56320   ;;  %v2666_v2 = vsel %vm2663_vm4, %v7681_v29, %v7680_v46  ;;  %v7686_v3 = vld [vmem:[#allocation180_spill] sm:$0xff] }
 0x955   : > { %v2641_v40 = vadd.f32 %v2635_v13, %v2611_v35  ;;  %v2610_v47 = vadd.f32 %v2604_v7, %v2580_v14  ;;  %v2665_v10 = vsel %vm2663_vm4, %v7678_v36, %v7681_v29  ;;  %v1147_v25 = vsel %vm696_vm8, %v7682_v0, %v6052_v32  ;;  %v7692_v29 = vld [vmem:[#allocation149_spill] sm:$0xff] }
 0x956   : > { %v6691_v43 = vpop.permute.xlu1 %2907  ;;  %v2639_v4 = vadd.f32 %v2633_v30, %v2609_v23  ;;  %v1148_v34 = vsel %vm696_vm8, %v6052_v32, %v7683_v63  ;;  %v1149_v12 = vsel %vm696_vm8, %v7683_v63, %v7684_v16  ;;  %vm2787_vm9 = vcmask 48128   ;;  %v7687_v32 = vld [vmem:[#allocation148_spill] sm:$0xff]  ;;  %v7689_v30 = vld [vmem:[#allocation145_spill] sm:$0xff]  ;;  %v6745_v63 = vpop.permute.xlu0 %1565 }
 0x957   : > { %v2640_v54 = vadd.f32 %v2634_v39, %v2610_v47  ;;  %v2672_v48 = vadd.f32 %v2666_v2, %v2641_v40  ;;  %v2695_v13 = vsel %vm2694_vm12, %v6072_v6, %v7685_v60  ;;  %v2696_v7 = vsel %vm2694_vm12, %v7685_v60, %v7686_v3  ;;  %v7690_v6 = vld [vmem:[#allocation147_spill] sm:$0xff]  ;;  %v7693_v2 = vld [vmem:[#allocation186_spill] sm:$0xff] }
 0x958   : > { %v2670_v19 = vadd.f32 %v2664_v5, %v2639_v4  ;;  %v1154_v14 = vadd.f32 %v1147_v25, %v1122_v11  ;;  %v2697_v52 = vsel %vm2694_vm12, %v7686_v3, %v7687_v32  ;;  %v1179_v23 = vsel %vm729_vm10, %v7689_v30, %v7688_v22  ;;  %v7691_v11 = vld [vmem:[#allocation184_spill] sm:$0xff]  ;;  %v7695_v25 = vld [vmem:[#allocation154_spill] sm:$0xff]  ;;  %v7700_v32 = vld [vmem:[#allocation155_spill] sm:$0xff] }
 0x959   : > { %v2671_v35 = vadd.f32 %v2665_v10, %v2640_v54  ;;  %vm2818_vm8 = vcmask 39936   ;;  %v1155_v39 = vadd.f32 %v1148_v34, %v1123_v49  ;;  %v1156_v40 = vadd.f32 %v1149_v12, %v1124_v31  ;;  %v7696_v12 = vld [vmem:[#allocation190_spill] sm:$0xff] }
 0x95a   : > { %v6713_v8 = vpop.permute.xlu1 %1402  ;;  %v1157_v47 = vadd.f32 %v7684_v16, %v1125_v37  ;;  %v1180_v36 = vsel %vm729_vm10, %v7688_v22, %v7690_v6  ;;  %v2701_v62 = vadd.f32 %v2695_v13, %v2670_v19  ;;  %v1181_v46 = vsel %vm729_vm10, %v7690_v6, %v7691_v11  ;;  %v7694_v37 = vld [vmem:[#allocation188_spill] sm:$0xff]  ;;  %v7697_v19 = vld [vmem:[#allocation151_spill] sm:$0xff] }
 0x95b   : > { %v2702_v5 = vadd.f32 %v2696_v7, %v2671_v35  ;;  %v2726_v4 = vsel %vm2725_vm0, %v7693_v2, %v7692_v29  ;;  %vm2849_vm12 = vcmask 31744   ;;  %v2703_v49 = vadd.f32 %v2697_v52, %v2672_v48  ;;  %v7698_v13 = vld [vmem:[#allocation152_spill] sm:$0xff]  ;;  %v7701_v52 = vld [vmem:[#allocation194_spill] sm:$0xff] }
 0x95c   : > { %v1186_v31 = vadd.f32 %v1179_v23, %v1154_v14  ;;  %v2727_v0 = vsel %vm2725_vm0, %v7692_v29, %v7694_v37  ;;  %v2728_v54 = vsel %vm2725_vm0, %v7694_v37, %v7695_v25  ;;  %v1187_v34 = vadd.f32 %v1180_v36, %v1155_v39  ;;  %v7699_v35 = vld [vmem:[#allocation192_spill] sm:$0xff]  ;;  %v7705_v29 = vld [vmem:[#allocation157_spill] sm:$0xff] }
 0x95d   : > { %v1189_v16 = vadd.f32 %v7691_v11, %v1157_v47  ;;  %v1211_v60 = vsel %vm762_vm11, %v7697_v19, %v7696_v12  ;;  %v1212_v48 = vsel %vm762_vm11, %v7696_v12, %v7698_v13  ;;  %vm2880_vm10 = vcmask 23552   ;;  %v7702_v39 = vld [vmem:[#allocation196_spill] sm:$0xff]  ;;  %v7709_v19 = vld [vmem:[#allocation15_spill] sm:$0xff] }
 0x95e   : > { %v6737_v10 = vpop.permute.xlu1 %1406  ;;  %v1188_v3 = vadd.f32 %v1181_v46, %v1156_v40  ;;  %v2732_v7 = vadd.f32 %v2726_v4, %v2701_v62  ;;  %v1213_v14 = vsel %vm762_vm11, %v7698_v13, %v7699_v35  ;;  %v2757_v22 = vsel %vm2756_vm5, %v7701_v52, %v7700_v32  ;;  %v7703_v6 = vld [vmem:[#allocation160_spill] sm:$0xff]  ;;  %v7704_v46 = vld [vmem:[#allocation198_spill] sm:$0xff] }
 0x95f   : > { %v2733_v30 = vadd.f32 %v2727_v0, %v2702_v5  ;;  %v2734_v23 = vadd.f32 %v2728_v54, %v2703_v49  ;;  %v2758_v47 = vsel %vm2756_vm5, %v7700_v32, %v7702_v39  ;;  %v2759_v36 = vsel %vm2756_vm5, %v7702_v39, %v7703_v6  ;;  %v7706_v4 = vld [vmem:[#allocation158_spill] sm:$0xff]  ;;  %v7707_v25 = vld [vmem:[#allocation200_spill] sm:$0xff]  ;;  %v6782_v32 = vpop.permute.xlu0 %1569 }
 0x960   : > { %vm2911_vm0 = vcmask 15360   ;;  %v1218_v62 = vadd.f32 %v1211_v60, %v1186_v31  ;;  %v1219_v11 = vadd.f32 %v1212_v48, %v1187_v34  ;;  %v1244_v2 = vsel %vm1243_vm7, %v7705_v29, %v7704_v46  ;;  %v7708_v34 = vld [vmem:[#allocation161_spill] sm:$0xff]  ;;  %v7710_v13 = vld [vmem:[#allocation14_spill] sm:$0xff] }
 0x961   : > { %v1245_v5 = vsel %vm1243_vm7, %v7704_v46, %v7706_v4  ;;  %v1220_v49 = vadd.f32 %v1213_v14, %v1188_v3  ;;  %v1221_v37 = vadd.f32 %v7699_v35, %v1189_v16  ;;  %v2763_v0 = vadd.f32 %v2757_v22, %v2732_v7  ;;  %v7711_v35 = vld [vmem:[#allocation166_spill] sm:$0xff] }
 0x962   : > { %v2935_v40 = vpop.permute.xlu1 %2934  ;;  %v1246_v54 = vsel %vm1243_vm7, %v7706_v4, %v7707_v25  ;;  %vm2942_vm5 = vcmask 916480   ;;  %v2764_v12 = vadd.f32 %v2758_v47, %v2733_v30  ;;  %v2765_v31 = vadd.f32 %v2759_v36, %v2734_v23  ;;  %v7712_v30 = vld [vmem:[#allocation18_spill] sm:$0xff]  ;;  %v7713_v23 = vld [vmem:[#allocation163_spill] sm:$0xff]  ;;  %v7714_v47 = vld [vmem:[#allocation164_spill] sm:$0xff] }
 0x963   : > { %v2788_v60 = vsel %vm2787_vm9, %v7709_v19, %v7708_v34  ;;  %v2789_v48 = vsel %vm2787_vm9, %v7708_v34, %v7710_v13  ;;  %v1251_v3 = vadd.f32 %v1244_v2, %v1218_v62  ;;  %v1252_v16 = vadd.f32 %v1245_v5, %v1219_v11  ;;  %v7715_v36 = vld [vmem:[#allocation167_spill] sm:$0xff]  ;;  %v7716_v29 = vld [vmem:[#allocation30_spill] sm:$0xff] }
 0x964   : > { %v1254_v7 = vadd.f32 %v7707_v25, %v1221_v37  ;;  %v2790_v14 = vsel %vm2787_vm9, %v7710_v13, %v7711_v35  ;;  %v1253_v22 = vadd.f32 %v1246_v54, %v1220_v49  ;;  %v1277_v39 = vsel %vm1276_vm15, %v7713_v23, %v7712_v30  ;;  %v7717_v49 = vld [vmem:[#allocation172_spill] sm:$0xff]  ;;  %v7718_v25 = vld [vmem:[#allocation169_spill] sm:$0xff]  ;;  %v7720_v35 = vld [vmem:[#allocation170_spill] sm:$0xff]  ;;  %v6819_v23 = vpop.permute.xlu0 %3064 }
 0x965   : > { %v1278_v6 = vsel %vm1276_vm15, %v7712_v30, %v7714_v47  ;;  %v2819_v62 = vsel %vm2818_vm8, %v6323_v15, %v7715_v36  ;;  %v2794_v11 = vadd.f32 %v2788_v60, %v2763_v0  ;;  %v2795_v46 = vadd.f32 %v2789_v48, %v2764_v12  ;;  %v7719_v0 = vld [vmem:[#allocation173_spill] sm:$0xff] }
 0x966   : > { %v2939_v52 = vpop.permute.xlu1 %2938  ;;  %v1279_v2 = vsel %vm1276_vm15, %v7714_v47, %v7716_v29  ;;  %v2820_v4 = vsel %vm2818_vm8, %v7715_v36, %v6354_v53  ;;  %vm2973_vm9 = vcmask 908288   ;;  %v2796_v5 = vadd.f32 %v2790_v14, %v2765_v31  ;;  %v7721_v14 = vld [vmem:[#allocation179_spill] sm:$0xff] }
 0x967   : > { %v2821_v37 = vsel %vm2818_vm8, %v6354_v53, %v7717_v49  ;;  %v1310_v15 = vsel %vm1309_vm3, %v7718_v25, %v6385_v51  ;;  %v2850_v54 = vsel %vm2849_vm12, %v6443_v61, %v7719_v0  ;;  %v1284_v12 = vadd.f32 %v1277_v39, %v1251_v3  ;;  %v7723_v39 = vld [vmem:[#allocation175_spill] sm:$0xff]  ;;  %v7726_v49 = vld [vmem:[#allocation185_spill] sm:$0xff] }
 0x968   : > { %v1285_v34 = vadd.f32 %v1278_v6, %v1252_v16  ;;  %v1287_v19 = vadd.f32 %v7716_v29, %v1254_v7  ;;  %v2825_v60 = vadd.f32 %v2819_v62, %v2794_v11  ;;  %v1286_v48 = vadd.f32 %v1279_v2, %v1253_v22  ;;  %v7722_v22 = vld [vmem:[#allocation178_spill] sm:$0xff]  ;;  %v7724_v6 = vld [vmem:[#allocation187_spill] sm:$0xff] }
 0x969   : > { %v2826_v31 = vadd.f32 %v2820_v4, %v2795_v46  ;;  %v1311_v53 = vsel %vm1309_vm3, %v6385_v51, %v7720_v35  ;;  %v2881_v30 = vsel %vm2880_vm10, %v6559_v26, %v7721_v14  ;;  %v2827_v47 = vadd.f32 %v2821_v37, %v2796_v5  ;;  %v7725_v46 = vld [vmem:[#allocation176_spill] sm:$0xff]  ;;  %v7727_v25 = vld [vmem:[#allocation195_spill] sm:$0xff] }
 0x96a   : > { %v1436_v13 = vpop.permute.xlu1 %1435  ;;  %v1317_v61 = vadd.f32 %v1310_v15, %v1284_v12  ;;  %v1312_v3 = vsel %vm1309_vm3, %v7720_v35, %v6409_v56  ;;  %v2856_v16 = vadd.f32 %v2850_v54, %v2825_v60  ;;  %v2851_v7 = vsel %vm2849_vm12, %v7719_v0, %v6474_v28  ;;  %v7728_v60 = vld [vmem:[#allocation193_spill] sm:$0xff] }
 0x96b   : > { %v2852_v51 = vsel %vm2849_vm12, %v6474_v28, %v7722_v22  ;;  %v1343_v26 = vsel %vm1342_vm1, %v7723_v39, %v6503_v42  ;;  %v2912_v36 = vsel %vm2911_vm0, %v6668_v21, %v7724_v6  ;;  %v1318_v62 = vadd.f32 %v1311_v53, %v1285_v34  ;;  %v6851_v34 = vpop.permute.xlu0 %3091 }
 0x96c   : > { %v1320_v11 = vadd.f32 %v6409_v56, %v1287_v19  ;;  %v1344_v29 = vsel %vm1342_vm1, %v6503_v42, %v7725_v46  ;;  %v2887_v2 = vadd.f32 %v2881_v30, %v2856_v16  ;;  %v1319_v5 = vadd.f32 %v1312_v3, %v1286_v48  ;;  %v7730_v30 = vld [vmem:[#allocation183_spill] sm:$0xff]  ;;  %v7731_v3 = vld [vmem:[#allocation16_spill] sm:$0xff] }
 0x96d   : > { %v2882_v28 = vsel %vm2880_vm10, %v7721_v14, %v6585_v1  ;;  %v2883_v37 = vsel %vm2880_vm10, %v6585_v1, %v7726_v49  ;;  %v2943_v21 = vsel %vm2942_vm5, %v2935_v40, %v7727_v25  ;;  %v2857_v15 = vadd.f32 %v2851_v7, %v2826_v31  ;;  %v7729_v31 = vld [vmem:[#allocation181_spill] sm:$0xff]  ;;  %v7732_v7 = vld [vmem:[#allocation12_spill] sm:$0xff] }
 0x96e   : > { %v1440_v4 = vpop.permute.xlu1 %1439  ;;  %v2858_v56 = vadd.f32 %v2852_v51, %v2827_v47  ;;  %v1350_v0 = vadd.f32 %v1343_v26, %v1317_v61  ;;  %v2918_v54 = vadd.f32 %v2912_v36, %v2887_v2  ;;  %v1351_v12 = vadd.f32 %v1344_v29, %v1318_v62  ;;  %v7733_v62 = vld [vmem:[#allocation189_spill] sm:$0xff] }
 0x96f   : > { %v1345_v42 = vsel %vm1342_vm1, %v7725_v46, %v6531_v38  ;;  %v2913_v19 = vsel %vm2911_vm0, %v7724_v6, %v6691_v43  ;;  %v2914_v1 = vsel %vm2911_vm0, %v6691_v43, %v7728_v60  ;;  %v2888_v40 = vadd.f32 %v2882_v28, %v2857_v15  ;;  %v7734_v46 = vld [vmem:[#allocation191_spill] sm:$0xff]  ;;  %v6883_v49 = vpop.permute.xlu0 %1598 }
 0x970   : > { %v2889_v48 = vadd.f32 %v2883_v37, %v2858_v56  ;;  %v1376_v35 = vsel %vm1375_vm6, %v7729_v31, %v6613_v50  ;;  %v2949_v53 = vadd.f32 %v2943_v21, %v2918_v54  ;;  %v1377_v47 = vsel %vm1375_vm6, %v6613_v50, %v7730_v30 }
 0x971   : > { %v2944_v61 = vsel %vm2942_vm5, %v7727_v25, %v2939_v52  ;;  %v2945_v16 = vsel %vm2942_vm5, %v2939_v52, %v7731_v3  ;;  %v1353_v22 = vadd.f32 %v6531_v38, %v1320_v11  ;;  %v2919_v51 = vadd.f32 %v2913_v19, %v2888_v40  ;;  %v7736_v25 = vld [vmem:[#allocation199_spill] sm:$0xff] }
 0x972   : > { %v2966_v14 = vpop.permute.xlu1 %2965  ;;  %v2920_v39 = vadd.f32 %v2914_v1, %v2889_v48  ;;  %v1352_v6 = vadd.f32 %v1345_v42, %v1319_v5  ;;  %v1383_v36 = vadd.f32 %v1376_v35, %v1350_v0  ;;  %v1409_v50 = vsel %vm1408_vm13, %v7733_v62, %v6713_v8  ;;  %v7735_v5 = vld [vmem:[#allocation197_spill] sm:$0xff] }
 0x973   : > { %v2974_v43 = vsel %vm2973_vm9, %v2966_v14, %v7732_v7  ;;  %v1410_v29 = vsel %vm1408_vm13, %v6713_v8, %v7734_v46  ;;  %v1384_v52 = vadd.f32 %v1377_v47, %v1351_v12  ;;  %v1378_v2 = vsel %vm1375_vm6, %v7730_v30, %v6642_v18  ;;  %v7737_v8 = vld [vmem:[#allocation29_spill] sm:$0xff]  ;;  %v7739_v30 = vld [vmem:[#allocation26_spill] sm:$0xff] }
 0x974   : > { %v6872_v26 = vadd.f32 %v2974_v43, %v2949_v53  ;;  %v2950_v38 = vadd.f32 %v2944_v61, %v2919_v51  ;;  %v2951_v11 = vadd.f32 %v2945_v16, %v2920_v39  ;;  %v1442_v37 = vsel %vm1441_vm2, %v7735_v5, %v1436_v13  ;;  %v7738_v53 = vld [vmem:[#allocation17_spill] sm:$0xff]  ;;  %v6904_v16 = vpop.permute.xlu0 %1602 }
 0x975   : > { %v1443_v21 = vsel %vm1441_vm2, %v1436_v13, %v7736_v25  ;;  %v1416_v0 = vadd.f32 %v1409_v50, %v1383_v36  ;;  %v1417_v54 = vadd.f32 %v1410_v29, %v1384_v52  ;;  %v1386_v19 = vadd.f32 %v6642_v18, %v1353_v22 }
 0x976   : > { %v2970_v28 = vpop.permute.xlu1 %2969  ;;  %v1411_v60 = vsel %vm1408_vm13, %v7734_v46, %v6737_v10  ;;  %v1385_v1 = vadd.f32 %v1378_v2, %v1352_v6  ;;  %v1444_v35 = vsel %vm1441_vm2, %v7736_v25, %v1440_v4  ;;  %vm1634_vm7 = vcmask 5124  }
 0x977   : > { %v2975_v15 = vsel %vm2973_vm9, %v7732_v7, %v2970_v28  ;;  %v2976_v56 = vsel %vm2973_vm9, %v2970_v28, %v7737_v8  ;;  %v1449_v40 = vadd.f32 %v1442_v37, %v1416_v0  ;;  %v1450_v48 = vadd.f32 %v1443_v21, %v1417_v54 }
 0x978   : > { %v2981_v12 = vadd.f32 %v2975_v15, %v2950_v38  ;;  %v2982_v42 = vadd.f32 %v2976_v56, %v2951_v11  ;;  %v1419_v31 = vadd.f32 %v6737_v10, %v1386_v19  ;;  %v1418_v18 = vadd.f32 %v1411_v60, %v1385_v1  ;;  %v6910_v36 = vpop.permute.xlu0 %3095 }
 0x979   : > { %vm3153_vm15 = vcmask 7174   ;;  %vm3004_vm3 = vcmask 900096   ;;  %vm3035_vm1 = vcmask 891904   ;;  %vm7740_vm6 = vcmask 252928  }
 0x97a   : > { %v1469_v13 = vpop.permute.xlu1 %1468  ;;  %v1452_v7 = vadd.f32 %v1440_v4, %v1419_v31  ;;  %v1451_v43 = vadd.f32 %v1444_v35, %v1418_v18  ;;  %vm3066_vm2 = vcmask 883712   ;;  %vm3097_vm4 = vcmask 875520   ;;  %vm7743_vm0 = vmmov %vm7740_vm6 }
 0x97b   : > { %v1475_v14 = vsel %vm1474_vm14, %v7738_v53, %v1469_v13  ;;  %v1476_v47 = vsel %vm1474_vm14, %v1469_v13, %v7739_v30  ;;  %vm3128_vm8 = vcmask 867328   ;;  %vm7742_vm10 = vcmask 244736  }
 0x97c   : > { %v1482_v61 = vadd.f32 %v1475_v14, %v1449_v40  ;;  %v1483_v3 = vadd.f32 %v1476_v47, %v1450_v48  ;;  %v6912_v50 = vpop.permute.xlu0 %3122  ;;  %vm7744_vm5 = vmmov %vm7742_vm10  ;;  %vm7745_vm9 = vcmask 236544  }
 0x97e   : > { %v1473_v22 = vpop.permute.xlu1 %1472 }
 0x97f   : > { %v1477_v10 = vsel %vm1474_vm14, %v7739_v30, %v1473_v22  ;;  %v1485_v51 = vadd.f32 %v1473_v22, %v1452_v7  ;;  %vm7741_vm14 = vmmov %vm7740_vm6 }
 0x980   : > { %v6908_v39 = vadd.f32 %v1477_v10, %v1451_v43  ;;  %v6914_v52 = vpop.permute.xlu0 %3126 }
 0x982   : > { %v2997_v6 = vpop.permute.xlu1 %2996 }
 0x983   : > { %v3005_v54 = vsel %vm3004_vm3, %v2997_v6, %v6372_v58 }
 0x984   : > { %v6916_v4 = vpop.permute.xlu0 %1638  ;;  %v3011_v31 = vadd.f32 %v3005_v54, %v6872_v26 }
 0x986   : > { %v3001_v62 = vpop.permute.xlu1 %3000 }
 0x987   : > { %v3006_v19 = vsel %vm3004_vm3, %v6372_v58, %v3001_v62  ;;  %v3007_v60 = vsel %vm3004_vm3, %v3001_v62, %v6508_v20  ;;  %vm7746_vm3 = vmmov %vm7745_vm9 }
 0x988   : > { %v3012_v35 = vadd.f32 %v3006_v19, %v2981_v12  ;;  %v3013_v53 = vadd.f32 %v3007_v60, %v2982_v42 }
 0x98a   : > { %v1502_v46 = vpop.permute.xlu1 %1501 }
 0x98b   : > { %v1508_v1 = vsel %vm7740_vm6, %v6417_v33, %v1502_v46  ;;  %v1509_v48 = vsel %vm7741_vm14, %v1502_v46, %v6462_v17  ;;  %vm7748_vm6 = vcmask 228352  }
 0x98c   : > { %v1515_v20 = vadd.f32 %v1508_v1, %v1482_v61  ;;  %v1516_v47 = vadd.f32 %v1509_v48, %v1483_v3  ;;  %vm7749_vm14 = vmmov %vm7748_vm6 }
 0x98e   : > { %v1506_v29 = vpop.permute.xlu1 %1505 }
 0x98f   : > { %v1510_v18 = vsel %vm7743_vm0, %v6462_v17, %v1506_v29  ;;  %vm1657_vm0 = vcmask 201732  }
 0x992   : > { %v3028_v2 = vpop.permute.xlu1 %3027 }
 0x993   : > { %v3036_v13 = vsel %vm3035_vm1, %v3028_v2, %v6548_v27 }
 0x994   : > { %v3042_v26 = vadd.f32 %v3036_v13, %v3011_v31 }
 0x996   : > { %v3032_v38 = vpop.permute.xlu1 %3031 }
 0x997   : > { %v3037_v58 = vsel %vm3035_vm1, %v6548_v27, %v3032_v38  ;;  %v3038_v33 = vsel %vm3035_vm1, %v3032_v38, %v6673_v57  ;;  %v1518_v27 = vadd.f32 %v1506_v29, %v1485_v51  ;;  %vm7747_vm1 = vmmov %vm7744_vm5 }
 0x998   : > { %v3043_v61 = vadd.f32 %v3037_v58, %v3012_v35  ;;  %v3044_v7 = vadd.f32 %v3038_v33, %v3013_v53 }
 0x999   : > { %v1633_v11 = vpop.xlane.xlu0 %1632 }
 0x99a   : > { %1635 = vst.msk [vmem:[#allocation2 + $0x4] sm:$0x30] %vm1634_vm7, %v1633_v11  ;;  %v1535_v28 = vpop.permute.xlu1 %1534 }
 0x99b   : > { %v1541_v14 = vsel %vm7742_vm10, %v6590_v55, %v1535_v28  ;;  %v1542_v12 = vsel %vm7744_vm5, %v1535_v28, %v6631_v41  ;;  %vm1642_vm10 = vcmask 203776   ;;  %vm7753_vm5 = vcmask 1047558  }
 0x99c   : > { %v1548_v43 = vadd.f32 %v1541_v14, %v1515_v20  ;;  %v1549_v17 = vadd.f32 %v1542_v12, %v1516_v47  ;;  %v7752_v20 = vld [vmem:[#allocation4_spill] sm:$0xff] }
 0x99d   : > { %v3152_v5 = vpop.xlane.xlu0 %3151 }
 0x99e   : > { %3154 = vst.msk [vmem:[#allocation2 + $0x6] sm:$0xc0] %vm3153_vm15, %v3152_v5  ;;  %v1539_v37 = vpop.permute.xlu1 %1538 }
 0x99f   : > { %v1543_v10 = vsel %vm7747_vm1, %v6631_v41, %v1539_v37  ;;  %vm7756_vm1 = vmmov %vm7753_vm5 }
 0x9a2   : > { %v3059_v25 = vpop.permute.xlu1 %3058 }
 0x9a3   : > { %v3067_v30 = vsel %vm3066_vm2, %v3059_v25, %v6705_v9 }
 0x9a4   : > { %v3073_v22 = vadd.f32 %v3067_v30, %v3042_v26 }
 0x9a6   : > { %v3063_v21 = vpop.permute.xlu1 %3062 }
 0x9a7   : > { %v3068_v51 = vsel %vm3066_vm2, %v6705_v9, %v3063_v21  ;;  %v3069_v6 = vsel %vm3066_vm2, %v3063_v21, %v6819_v23  ;;  %v1517_v23 = vadd.f32 %v1510_v18, %v6908_v39  ;;  %vm7750_vm2 = vmmov %vm7746_vm3 }
 0x9a8   : > { %v3074_v28 = vadd.f32 %v3068_v51, %v3043_v61  ;;  %v3075_v5 = vadd.f32 %v3069_v6, %v3044_v7  ;;  %v3166_v6 = vld [vmem:[#allocation2] sm:$0xff] }
 0x9aa   : > { %v1568_v15 = vpop.permute.xlu1 %1567 }
 0x9ab   : > { %v1574_v57 = vsel %vm7745_vm9, %v6745_v63, %v1568_v15  ;;  %v1575_v3 = vsel %vm7746_vm3, %v1568_v15, %v6782_v32  ;;  %vm7754_vm9 = vmmov %vm7753_vm5  ;;  %vm7755_vm3 = vcmask 1045508  }
 0x9ac   : > { %v1581_v63 = vadd.f32 %v1574_v57, %v1548_v43  ;;  %v1582_v38 = vadd.f32 %v1575_v3, %v1549_v17 }
 0x9ae   : > { %v1572_v8 = vpop.permute.xlu1 %1571 }
 0x9af   : > { %v1576_v21 = vsel %vm7750_vm2, %v6782_v32, %v1572_v8 }
 0x9b2   : > { %v3090_v56 = vpop.permute.xlu1 %3089 }
 0x9b3   : > { %v3098_v55 = vsel %vm3097_vm4, %v3090_v56, %v6851_v34 }
 0x9b4   : > { %v3104_v62 = vadd.f32 %v3098_v55, %v3073_v22 }
 0x9b6   : > { %v3094_v0 = vpop.permute.xlu1 %3093 }
 0x9b7   : > { %v3099_v11 = vsel %vm3097_vm4, %v6851_v34, %v3094_v0  ;;  %v3100_v41 = vsel %vm3097_vm4, %v3094_v0, %v6910_v36  ;;  %v1550_v34 = vadd.f32 %v1543_v10, %v1517_v23  ;;  %vm7751_vm4 = vmmov %vm7748_vm6 }
 0x9b8   : > { %v3105_v54 = vadd.f32 %v3099_v11, %v3074_v28  ;;  %v3106_v36 = vadd.f32 %v3100_v41, %v3075_v5  ;;  %v7758_v11 = vmov 0.0   ;;  %v3255_v41 = vld [vmem:[%s7178_s5] sm:$0xff] }
 0x9b9   : > { %v1583_v1 = vadd.f32 %v1576_v21, %v1550_v34 }
 0x9ba   : > { %v1601_v40 = vpop.permute.xlu1 %1600 }
 0x9bb   : > { %v1607_v46 = vsel %vm7748_vm6, %v6883_v49, %v1601_v40  ;;  %v1608_v29 = vsel %vm7749_vm14, %v1601_v40, %v6904_v16  ;;  %v1551_v49 = vadd.f32 %v1539_v37, %v1518_v27  ;;  %vm7757_vm6 = vmmov %vm7755_vm3  ;;  %vm7759_vm14 = vcmask 130048  }
 0x9bc   : > { %v6969_v15 = vadd.f32 %v1607_v46, %v1581_v63  ;;  %v6971_v56 = vadd.f32 %v1608_v29, %v1582_v38 }
 0x9bd   : > { %v1584_v60 = vadd.f32 %v1572_v8, %v1551_v49  ;;  %v3256_v49 = vld [vmem:[%s7178_s5 + $0x8] sm:$0xff] }
 0x9be   : > { %v1605_v42 = vpop.permute.xlu1 %1604  ;;  %v1618_v13 = vmax.f32 %v6969_v15, 0.0  ;;  %v1619_v31 = vmax.f32 %v6971_v56, 0.0 }
 0x9bf   : > { %v1609_v39 = vsel %vm7751_vm4, %v6904_v16, %v1605_v42  ;;  %v6986_v8 = vadd.f32 %v1605_v42, %v1584_v60 }
 0x9c0   : > { %v6988_v35 = vadd.f32 %v1609_v39, %v1583_v1 }
 0x9c1   : > { %v1621_v47 = vmax.f32 %v6986_v8, 0.0 }
 0x9c2   : > { %v3121_v2 = vpop.permute.xlu1 %3120  ;;  %v1620_v18 = vmax.f32 %v6988_v35, 0.0 }
 0x9c3   : > { %v3129_v9 = vsel %vm3128_vm8, %v3121_v2, %v6912_v50  ;;  %v3178_v2 = vld [vmem:[%s7177_s4] sm:$0xf] }
 0x9c4   : > { %v6965_v25 = vadd.f32 %v3129_v9, %v3104_v62 }
 0x9c6   : > { %v3138_v0 = vmax.f32 %v6965_v25, 0.0  ;;  %v3125_v19 = vpop.permute.xlu1 %3124 }
 0x9c7   : > { %v3130_v37 = vsel %vm3128_vm8, %v6912_v50, %v3125_v19  ;;  %v3131_v32 = vsel %vm3128_vm8, %v3125_v19, %v6914_v52  ;;  %vm1653_vm8 = vcmask 1045708  }
 0x9c8   : > { %v6980_v40 = vadd.f32 %v3130_v37, %v3105_v54  ;;  %v6982_v48 = vadd.f32 %v3131_v32, %v3106_v36  ;;  %v3155_v16 = vadd.f32 %v3138_v0, %v7664_v59 }
 0x9ca   : > { %v3139_v50 = vmax.f32 %v6980_v40, 0.0  ;;  %v3140_v52 = vmax.f32 %v6982_v48, 0.0  ;;  %v1637_v53 = vpop.permute.xlu1 %1636  ;;  %v3158_v12 = vsel %vm7753_vm5, %v3155_v16, -inf }
 0x9cb   : > { %v1643_v58 = vsel %vm1642_vm10, %v1637_v53, %v6916_v4  ;;  %v1649_v30 = vadd.f32 %v1637_v53, %v1618_v13  ;;  %v7760_v53 = vld [vmem:[#allocation6_spill] sm:$0xff] }
 0x9cc   : > { %v3156_v33 = vadd.f32 %v3139_v50, %v7752_v20  ;;  %v3157_v14 = vadd.f32 %v3140_v52, %v7672_v24  ;;  %v1650_v59 = vadd.f32 %v1643_v58, %v1619_v31 }
 0x9cd   : > { %v1654_v57 = vsel %vm1653_vm8, %v1649_v30, -inf }
 0x9ce   : > { %v1641_v26 = vpop.permute.xlu1 %1640  ;;  %v3159_v42 = vsel %vm7754_vm9, %v3156_v33, -inf  ;;  %v1655_v55 = vsel %vm7755_vm3, %v1650_v59, -inf  ;;  %v3160_v43 = vsel %vm7756_vm1, %v3157_v14, -inf }
 0x9cf   : > { %v1644_v24 = vsel %vm1642_vm10, %v6916_v4, %v1641_v26  ;;  %v1652_v27 = vadd.f32 %v1641_v26, %v1621_v47  ;;  %v3161_v61 = vmax.f32 %v3158_v12, %v3159_v42  ;;  %v1659_v10 = vmax.f32 %v1654_v57, %v1655_v55 }
 0x9d0   : > { %v1651_v7 = vadd.f32 %v1644_v24, %v1620_v18  ;;  %v7761_v24 = vld [vmem:[#allocation7_spill] sm:$0xff] }
 0x9d1   : > { %v1658_v22 = vsel %vm1657_vm0, %v1652_v27, -inf  ;;  %v3162_v3 = vmax.f32 %v3161_v61, %v3160_v43 }
 0x9d2   : > { %v1656_v17 = vsel %vm7757_vm6, %v1651_v7, -inf }
 0x9d3   : > { %v1660_v51 = vmax.f32 %v1656_v17, %v1658_v22  ;;  %3163 = vmax.xlane.f32.xlu0 %v3162_v3 }
 0x9d5   : > { %v1661_v4 = vmax.f32 %v1659_v10, %v1660_v51  ;;  %v7763_v10 = vld [vmem:[#allocation11_spill] sm:$0xff] }
 0x9d6   : > { %v7764_v51 = vmax.f32 %v7763_v10, 0.0 }
 0x9d7   : > { %1662 = vmax.xlane.f32.xlu1 %v1661_v4 }
 0x9e9   : > { %3170 = vperm.xlu0 %3911, %v3166_v6  }
 0xa5c   : > { %v3164_v63 = vpop.xlane.xlu0 %3163 }
 0xa5d   : > { %3165 = vst.msk [vmem:[#allocation2 + $0x8] sm:$0xc0] %vm3153_vm15, %v3164_v63  ;;  %vm3263_vm15 = vcmask 1043456  }
 0xa60   : > { %v1663_v62 = vpop.xlane.xlu1 %1662 }
 0xa61   : > { %1664 = vst.msk [vmem:[#allocation2 + $0x6] sm:$0x30] %vm1634_vm7, %v1663_v62 }
 0xa64   : > { %v3171_v38 = vpop.permute.xlu0 %3170 }
 0xa68   : > { %v3167_v46 = vld [vmem:[#allocation2 + $0x8] sm:$0xff] }
 0xa69   : > { %3175 = vperm.xlu1 %3910, %v3167_v46   ;;  %v7765_v46 = vld [vmem:[#allocation8_spill] sm:$0xff] }
 0xae4   : > { %v3176_v29 = vpop.permute.xlu1 %3175 }
 0xae5   : > { %3670 = vmatpush3.msra.mxu1 %v3176_v29  ;;  %v7766_v29 = vmax.f32 %v7765_v46, 0.0 }
 0xae6   : > { %3671 = vmatprep.subr.mxu1 %v7758_v11 }
 0xae7   : > { %3672 = vmatpush3.msra.mxu1 %v3171_v38 }
 0xae8   : > { %3674 = vmatmul.mubr.msk.f32.vlgmr.msra.gmra.mxu1 %vm7759_vm14, %v3178_v2 }
 0xae9   : > { %3678 = vmatprep.mubr.msk.f32.mxu1 %vm2849_vm12, %v3255_v41 }
 0xba8   : > { %v3248_v9 = vpop.f32.mrf.mxu1 }
 0xba9   : > { %vm3252_vm7 = vcmp.ge.f32.partialorder %v3248_v9, 0.0  ;;  %v3253_v23 = vmul.f32 0.01, %v3248_v9 }
 0xbaa   : > { %v3675_v28 = vpop.f32.mrf.mxu1 }
 0xbab   : > { %v3254_v5 = vsel %vm3252_vm7, %v3248_v9, %v3253_v23  ;;  %v7767_v9 = vld [vmem:[#allocation9_spill] sm:$0xff] }
 0xbac   : > { %3676 = vmatprep.subr.msk.mxu1 %vm3263_vm15, %v3254_v5  ;;  %v7768_v23 = vmax.f32 %v7767_v9, 0.0 }
 0xbad   : > { %3677 = vmatpush3.msk.msra.mxu1 %vm3263_vm15, %v3254_v5  ;;  %v7769_v5 = vld [vmem:[#allocation27_spill] sm:$0xff] }
 0xbae   : > { %3679 = vmatmul.mubr.msk.f32.vlgmr.msra.gmra.mxu1 %vm2849_vm12, %v3256_v49  ;;  %v7770_v49 = vmax.f32 %v7769_v5, 0.0  ;;  %vm7779_vm12 = vcmask 842752  }
 0xbaf   : > { %vm7780_vm2 = vmmov %vm7779_vm12 }
 0xbb0   : > { %vm7781_vm4 = vmmov %vm7780_vm2 }
 0xc6e   : > { %v3680_v21 = vpop.f32.mrf.mxu1 }
 0xc6f   : > { %v3652_v34 = vmul.f32 -1.442695, %v3680_v21 }
 0xc70   : > { %v3333_v54 = vpop.f32.mrf.mxu1 }
 0xc71   : > { %v3651_v36 = vmul.f32 -1.442695, %v3333_v54  ;;  %3919 = vpow2.f32 %v3652_v34 }
 0xc73   : > { %3921 = vpow2.f32 %v3651_v36  ;;  %v7771_v36 = vld [vmem:[#allocation10_spill] sm:$0xff] }
 0xc7e   : > { %v3920_v19 = vpop.eup %3919 }
 0xc7f   : > { %v3349_v37 = vadd.f32 1.0, %v3920_v19  ;;  %v7772_v19 = vmax.f32 %v7771_v36, 0.0 }
 0xc80   : > { %v3922_v60 = vpop.eup %3921 }
 0xc81   : > { %v3348_v39 = vadd.f32 1.0, %v3922_v60 }
 0xc83   : > { %3923 = vrcp.f32 %v3348_v39  ;;  %v7773_v39 = vld [vmem:[#allocation24_spill] sm:$0xff] }
 0xc84   : > { %3925 = vrcp.f32 %v3349_v37  ;;  %v7774_v37 = vmax.f32 %v7773_v39, 0.0 }
 0xc90   : > { %v3924_v32 = vpop.eup %3923 }
 0xc91   : > { %3356 = vperm.xlu1 %3910, %v3924_v32   ;;  %v3926_v1 = vpop.eup %3925 }
 0xc95   : > { %3477 = vperm.xlu1 %3910, %v3926_v1  }
 0xd0c   : > { %v3357_v16 = vpop.permute.xlu1 %3356 }
 0xd0d   : > { %v3359_v58 = vmul.f32 %v3357_v16, %v7760_v53  ;;  %v3360_v59 = vmul.f32 %v3357_v16, %v4185_v44  ;;  %v3361_v25 = vmul.f32 %v3357_v16, %v7761_v24  ;;  %v3362_v48 = vmul.f32 %v3357_v16, %v4187_v45 }
 0xd0e   : > { %v3384_v43 = vrot.slane %v3357_v16, 2  ;;  %v3444_v8 = vrot.slane %v3357_v16, 4 }
 0xd0f   : > { %3367 = vrot.lane.b32.xlu1 %v3359_v58, %s4046_s23 }
 0xd10   : > { %v3478_v20 = vpop.permute.xlu1 %3477  ;;  %v3388_v4 = vmul.f32 %v3384_v43, %v7764_v51  ;;  %v3415_v63 = vmul.f32 %v3384_v43, %v7760_v53  ;;  %v3386_v2 = vmul.f32 %v3384_v43, %v7766_v29  ;;  %v3417_v38 = vmul.f32 %v3384_v43, %v7761_v24 }
 0xd11   : > { %v3479_v33 = vrot.slane %v3478_v20, 4  ;;  %v3571_v14 = vmul.f32 %v3478_v20, %v3138_v0  ;;  %v3572_v30 = vmul.f32 %v3478_v20, %v3139_v50  ;;  %v3573_v26 = vmul.f32 %v3478_v20, %v3140_v52 }
 0xd12   : > { %v7055_v42 = vrot.slane %v3478_v20, 6  ;;  %v3423_v62 = vrot.slane %v3415_v63, 6  ;;  %v3394_v11 = vrot.slane %v3386_v2, 6  ;;  %v3425_v41 = vrot.slane %v3417_v38, 6 }
 0xd13   : > { %3574 = vst [vmem:[%s7041_s25 + $0x18] sm:$0xc0] %v3571_v14  ;;  %3575 = vst [vmem:[%s7041_s25 + $0x20] sm:$0xc0] %v3572_v30  ;;  %3369 = vrot.lane.b32.xlu1 %v3360_v59, %s4046_s23  ;;  %v3481_v12 = vmul.f32 %v3479_v33, %v7760_v53  ;;  %v3483_v40 = vmul.f32 %v3479_v33, %v7761_v24  ;;  %v3482_v52 = vmul.f32 %v3479_v33, %v4185_v44  ;;  %v7775_v59 = vld [vmem:[#allocation28_spill] sm:$0xff] }
 0xd14   : > { %3576 = vst [vmem:[%s7041_s25 + $0x28] sm:$0xc0] %v3573_v26  ;;  %v3512_v27 = vmul.f32 %v7055_v42, %v1618_v13  ;;  %v3484_v55 = vmul.f32 %v3479_v33, %v4187_v45  ;;  %v3514_v7 = vmul.f32 %v7055_v42, %v1620_v18  ;;  %v3513_v13 = vmul.f32 %v7055_v42, %v1619_v31 }
 0xd15   : > { %v3489_v0 = vrot.slane %v3481_v12, 4  ;;  %v3491_v50 = vrot.slane %v3483_v40, 4  ;;  %v3490_v61 = vrot.slane %v3482_v52, 4  ;;  %v3541_v3 = vmul.f32 %v7055_v42, %v7760_v53 }
 0xd16   : > { %v3520_v57 = vrot.slane %v3512_v27, 2  ;;  %v3492_v15 = vrot.slane %v3484_v55, 4  ;;  %v3522_v22 = vrot.slane %v3514_v7, 2  ;;  %v3521_v35 = vrot.slane %v3513_v13, 2 }
 0xd17   : > { %3371 = vrot.lane.b32.xlu1 %v3361_v25, %s4046_s23  ;;  %3493 = vrot.lane.b32.xlu0 %v3489_v0, %s4046_s23  ;;  %v3549_v18 = vrot.slane %v3541_v3, 2  ;;  %v3515_v17 = vmul.f32 %v7055_v42, %v1621_v47  ;;  %v3396_v31 = vrot.slane %v3388_v4, 6  ;;  %v3542_v6 = vmul.f32 %v7055_v42, %v4185_v44 }
 0xd18   : > { %v3387_v28 = vmul.f32 %v3384_v43, %v7768_v23  ;;  %v3446_v21 = vmul.f32 %v3444_v8, %v7770_v49  ;;  %v3389_v60 = vmul.f32 %v3384_v43, %v7772_v19  ;;  %v3448_v32 = vmul.f32 %v3444_v8, %v7774_v37 }
 0xd19   : > { %v3523_v56 = vrot.slane %v3515_v17, 2  ;;  %v3550_v47 = vrot.slane %v3542_v6, 2  ;;  %v3416_v53 = vmul.f32 %v3384_v43, %v4185_v44  ;;  %v3543_v58 = vmul.f32 %v7055_v42, %v7761_v24  ;;  %v7777_v24 = vld [vmem:[#allocation25_spill] sm:$0xff] }
 0xd1a   : > { %v3395_v34 = vrot.slane %v3387_v28, 6  ;;  %v3454_v54 = vrot.slane %v3446_v21, 4  ;;  %v3397_v1 = vrot.slane %v3389_v60, 6  ;;  %v3456_v16 = vrot.slane %v3448_v32, 4 }
 0xd1b   : > { %3373 = vrot.lane.b32.xlu1 %v3362_v48, %s4046_s23  ;;  %3497 = vrot.lane.b32.xlu0 %v3491_v50, %s4046_s23  ;;  %v3424_v20 = vrot.slane %v3416_v53, 6  ;;  %v3551_v33 = vrot.slane %v3543_v58, 2  ;;  %v3418_v14 = vmul.f32 %v3384_v43, %v4187_v45  ;;  %v7776_v26 = vmax.f32 %v7775_v59, 0.0 }
 0xd1c   : > { %v7778_v25 = vmax.f32 %v7777_v24, 0.0  ;;  %v3544_v48 = vmul.f32 %v7055_v42, %v4187_v45 }
 0xd1d   : > { %v3426_v30 = vrot.slane %v3418_v14, 6  ;;  %v3447_v44 = vmul.f32 %v3444_v8, %v7776_v26 }
 0xd1e   : > { %v3449_v0 = vmul.f32 %v3444_v8, %v7778_v25  ;;  %v3552_v50 = vrot.slane %v3544_v48, 2 }
 0xd1f   : > { %3495 = vrot.lane.b32.xlu1 %v3490_v61, %s4046_s23  ;;  %3524 = vrot.lane.b32.xlu0 %v3520_v57, %s7762_s22  ;;  %v3455_v12 = vrot.slane %v3447_v44, 4 }
 0xd20   : > { %v3457_v40 = vrot.slane %v3449_v0, 4 }
 0xd23   : > { %3499 = vrot.lane.b32.xlu1 %v3492_v15, %s4046_s23  ;;  %3528 = vrot.lane.b32.xlu0 %v3522_v22, %s7762_s22 }
 0xd27   : > { %3526 = vrot.lane.b32.xlu1 %v3521_v35, %s7762_s22  ;;  %3553 = vrot.lane.b32.xlu0 %v3549_v18, %s4046_s23 }
 0xd2b   : > { %3530 = vrot.lane.b32.xlu1 %v3523_v56, %s7762_s22  ;;  %3402 = vrot.lane.b32.xlu0 %v3396_v31, %s4046_s23 }
 0xd2f   : > { %3555 = vrot.lane.b32.xlu1 %v3550_v47, %s4046_s23  ;;  %3427 = vrot.lane.b32.xlu0 %v3423_v62, %s4046_s23 }
 0xd33   : > { %3398 = vrot.lane.b32.xlu1 %v3394_v11, %s4046_s23  ;;  %3431 = vrot.lane.b32.xlu0 %v3425_v41, %s4046_s23 }
 0xd37   : > { %3400 = vrot.lane.b32.xlu1 %v3395_v34, %s4046_s23  ;;  %3458 = vrot.lane.b32.xlu0 %v3454_v54, %s3958_s18 }
 0xd3b   : > { %3404 = vrot.lane.b32.xlu1 %v3397_v1, %s4046_s23  ;;  %3462 = vrot.lane.b32.xlu0 %v3456_v16, %s3958_s18 }
 0xd3f   : > { %3429 = vrot.lane.b32.xlu1 %v3424_v20, %s4046_s23  ;;  %3557 = vrot.lane.b32.xlu0 %v3551_v33, %s4046_s23 }
 0xd43   : > { %3433 = vrot.lane.b32.xlu1 %v3426_v30, %s4046_s23 }
 0xd47   : > { %3460 = vrot.lane.b32.xlu1 %v3455_v12, %s3958_s18 }
 0xd4b   : > { %3464 = vrot.lane.b32.xlu1 %v3457_v40, %s3958_s18 }
 0xd4f   : > { %3559 = vrot.lane.b32.xlu1 %v3552_v50, %s4046_s23 }
 0xd81   : > { %v3368_v52 = vpop.permute.xlu1 %3367 }
 0xd85   : > { %v3370_v27 = vpop.permute.xlu1 %3369 }
 0xd86   : > { %v3375_v61 = vsel %vm1408_vm13, %v3368_v52, %v3370_v27 }
 0xd87   : > { %3381 = vst [vmem:[%s7041_s25] sm:$0x3] %v3375_v61 }
 0xd89   : > { %v3494_v57 = vpop.permute.xlu0 %3493  ;;  %v3372_v55 = vpop.permute.xlu1 %3371 }
 0xd8a   : > { %v3376_v7 = vsel %vm1408_vm13, %v3370_v27, %v3372_v55 }
 0xd8b   : > { %3382 = vst [vmem:[%s7041_s25 + $0x8] sm:$0x3] %v3376_v7 }
 0xd8d   : > { %v3498_v43 = vpop.permute.xlu0 %3497  ;;  %v3374_v45 = vpop.permute.xlu1 %3373 }
 0xd8e   : > { %v3377_v42 = vsel %vm1408_vm13, %v3372_v55, %v3374_v45 }
 0xd8f   : > { %3383 = vst [vmem:[%s7041_s25 + $0x10] sm:$0x3] %v3377_v42 }
 0xd91   : > { %v3525_v15 = vpop.permute.xlu0 %3524  ;;  %v3496_v22 = vpop.permute.xlu1 %3495 }
 0xd92   : > { %v3501_v13 = vsel %vm1408_vm13, %v3494_v57, %v3496_v22  ;;  %v3502_v3 = vsel %vm1408_vm13, %v3496_v22, %v3498_v43 }
 0xd93   : > { %3507 = vst [vmem:[%s7041_s25 + $0x18] sm:$0x3] %v3501_v13  ;;  %3508 = vst [vmem:[%s7041_s25 + $0x20] sm:$0x3] %v3502_v3 }
 0xd95   : > { %v3529_v35 = vpop.permute.xlu0 %3528  ;;  %v3500_v18 = vpop.permute.xlu1 %3499 }
 0xd96   : > { %v3503_v17 = vsel %vm1408_vm13, %v3498_v43, %v3500_v18 }
 0xd97   : > { %3509 = vst [vmem:[%s7041_s25 + $0x28] sm:$0x3] %v3503_v17 }
 0xd99   : > { %v3554_v10 = vpop.permute.xlu0 %3553  ;;  %v3527_v51 = vpop.permute.xlu1 %3526 }
 0xd9a   : > { %v3532_v4 = vsel %vm7779_vm12, %v3525_v15, %v3527_v51  ;;  %v3533_v56 = vsel %vm7780_vm2, %v3527_v51, %v3529_v35 }
 0xd9b   : > { %3538 = vst [vmem:[%s7041_s25 + $0x18] sm:$0xc] %v3532_v4  ;;  %3539 = vst [vmem:[%s7041_s25 + $0x20] sm:$0xc] %v3533_v56 }
 0xd9d   : > { %v3403_v31 = vpop.permute.xlu0 %3402  ;;  %v3531_v6 = vpop.permute.xlu1 %3530 }
 0xd9e   : > { %v3534_v63 = vsel %vm7781_vm4, %v3529_v35, %v3531_v6 }
 0xd9f   : > { %3540 = vst [vmem:[%s7041_s25 + $0x28] sm:$0xc] %v3534_v63 }
 0xda1   : > { %v3428_v8 = vpop.permute.xlu0 %3427  ;;  %v3556_v47 = vpop.permute.xlu1 %3555 }
 0xda2   : > { %v3561_v62 = vsel %vm1408_vm13, %v3554_v10, %v3556_v47 }
 0xda3   : > { %3567 = vst [vmem:[%s7041_s25 + $0x18] sm:$0x30] %v3561_v62 }
 0xda5   : > { %v3432_v46 = vpop.permute.xlu0 %3431  ;;  %v3399_v29 = vpop.permute.xlu1 %3398 }
 0xda9   : > { %v3459_v2 = vpop.permute.xlu0 %3458  ;;  %v3401_v38 = vpop.permute.xlu1 %3400 }
 0xdaa   : > { %v3406_v11 = vsel %vm1408_vm13, %v3399_v29, %v3401_v38  ;;  %v3407_v41 = vsel %vm1408_vm13, %v3401_v38, %v3403_v31 }
 0xdab   : > { %3412 = vst [vmem:[%s7041_s25] sm:$0xc] %v3406_v11  ;;  %3413 = vst [vmem:[%s7041_s25 + $0x8] sm:$0xc] %v3407_v41 }
 0xdad   : > { %v3463_v9 = vpop.permute.xlu0 %3462  ;;  %v3405_v23 = vpop.permute.xlu1 %3404 }
 0xdae   : > { %v3408_v28 = vsel %vm1408_vm13, %v3403_v31, %v3405_v23 }
 0xdaf   : > { %3414 = vst [vmem:[%s7041_s25 + $0x10] sm:$0xc] %v3408_v28 }
 0xdb1   : > { %v3558_v5 = vpop.permute.xlu0 %3557  ;;  %v3430_v49 = vpop.permute.xlu1 %3429 }
 0xdb2   : > { %v3562_v21 = vsel %vm1408_vm13, %v3556_v47, %v3558_v5  ;;  %v3435_v34 = vsel %vm1408_vm13, %v3428_v8, %v3430_v49  ;;  %v3436_v54 = vsel %vm1408_vm13, %v3430_v49, %v3432_v46 }
 0xdb3   : > { %3568 = vst [vmem:[%s7041_s25 + $0x20] sm:$0x30] %v3562_v21  ;;  %3441 = vst [vmem:[%s7041_s25] sm:$0x30] %v3435_v34 }
 0xdb4   : > { %3442 = vst [vmem:[%s7041_s25 + $0x8] sm:$0x30] %v3436_v54 }
 0xdb5   : > { %v3434_v36 = vpop.permute.xlu1 %3433 }
 0xdb6   : > { %v3437_v19 = vsel %vm1408_vm13, %v3432_v46, %v3434_v36 }
 0xdb7   : > { %3443 = vst [vmem:[%s7041_s25 + $0x10] sm:$0x30] %v3437_v19 }
 0xdb9   : > { %v3461_v60 = vpop.permute.xlu1 %3460 }
 0xdba   : > { %v3466_v39 = vsel %vm762_vm11, %v3459_v2, %v3461_v60  ;;  %v3467_v37 = vsel %vm762_vm11, %v3461_v60, %v3463_v9 }
 0xdbb   : > { %3472 = vst [vmem:[%s7041_s25] sm:$0xc0] %v3466_v39  ;;  %3473 = vst [vmem:[%s7041_s25 + $0x8] sm:$0xc0] %v3467_v37 }
 0xdbd   : > { %v3465_v32 = vpop.permute.xlu1 %3464 }
 0xdbe   : > { %v3468_v1 = vsel %vm762_vm11, %v3463_v9, %v3465_v32 }
 0xdbf   : > { %3474 = vst [vmem:[%s7041_s25 + $0x10] sm:$0xc0] %v3468_v1 }
 0xdc1   : > { %v3560_v16 = vpop.permute.xlu1 %3559 }
 0xdc2   : > { %v3563_v53 = vsel %vm1408_vm13, %v3558_v5, %v3560_v16 }
 0xdc3   : > { %3569 = vst [vmem:[%s7041_s25 + $0x28] sm:$0x30] %v3563_v53 }
 0xdc4 PF: > { %s16_s21 = sadd.s32 1, %s3935_s21  }
 0xdc5   : > { %p13_p4 = scmp.ge.s32.totalorder %s16_s21, 4  }
 0xdc7   :  { %15 = sbr.rel (!%p13_p4) target bundleno = 1 (0x1), region = 74 }

</bundles_post_ra>
